<compile_context>
chip_gen: v6e
topology: v6e:2x2x1
jax: 0.10.0
libtpu: 0.0.40
codegen_flags: <defaults>
</compile_context>

<pallas_src>
import functools
import numpy as np
import jax
import jax.numpy as jnp
from jax.experimental import pallas as pl
from jax.experimental.pallas import tpu as pltpu

USER_NUM = 16
NEWS_NUM = 16
N_NODES = USER_NUM + NEWS_NUM
EMB_DIM = 128
CAT_NUM = 4
SNAPSHOTS_NUM = 4
K_HOP = 2              # "2hop" per the module filename (config.hop)
HISTORY_LENGTH = 100
NUM_CAND = 9           # 1 positive + 8 negatives


# ---------------------------------------------------------------------------
# Pallas kernel: whole forward (T GCRNN steps + gathers + scoring + NCE loss)
# ---------------------------------------------------------------------------
def gcrnn_fused_kernel(prop_ref, seed_ref, h0_ref, c0_ref, wih_ref, whh_ref,
                       b_ref, selu_ref, selc_ref, score_ref, loss_ref,
                       *, emb_dim, t_steps, num_cand):
    """Single invocation, everything VMEM-resident.

    prop_ref : (T, N, N) bf16  precomputed sum_k alpha_k * P_eff^k per step
    seed_ref : (T, N, 1) f32   accumulated seed (user_seed_) masks
    h0/c0    : (N, D)   f32    initial node_emb / cx
    wih/whh  : (D, 4D)  bf16   W_ih^T / W_hh^T
    b_ref    : (1, 4D)  f32    b_ih + b_hh
    selu_ref : (T, C, N) f32   one-hot (click time, click node) selectors
    selc_ref : (J, C, N) f32   one-hot candidate-news selectors
    score_ref: (C, J)   f32    candidate scores
    loss_ref : (1, 1)   f32    NCE (cross-entropy, label 0) loss
    """
    D = emb_dim
    n_clicks = selu_ref.shape[1]

    h = h0_ref[...]          # node_emb  (N, D) f32
    c = c0_ref[...]          # cx        (N, D) f32
    wih = wih_ref[...]       # (D, 4D) bf16
    whh = whh_ref[...]       # (D, 4D) bf16
    b = b_ref[...]           # (1, 4D) f32
    user_embs = jnp.zeros((n_clicks, D), jnp.float32)

    # Statically unrolled time loop: T is small, all state lives in VMEM/vregs.
    for t in range(t_steps):
        # K-hop LightGCN propagation (DGL send_and_recv + "node with no
        # in-edge keeps h" select) folded host-side into one dense operator
        # -> a single MXU pass per step.
        acc = jnp.dot(prop_ref[t], h.astype(jnp.bfloat16),
                      preferred_element_type=jnp.float32)          # (N, D) f32

        # LSTMCell(acc, (h, c)) -- PyTorch gate order i | f | g | o.
        gates = (jnp.dot(acc.astype(jnp.bfloat16), wih,
                         preferred_element_type=jnp.float32)
                 + jnp.dot(h.astype(jnp.bfloat16), whh,
                           preferred_element_type=jnp.float32)
                 + b)                                              # (N, 4D)
        i_g = jax.nn.sigmoid(gates[:, 0 * D:1 * D])
        f_g = jax.nn.sigmoid(gates[:, 1 * D:2 * D])
        g_g = jnp.tanh(gates[:, 2 * D:3 * D])
        o_g = jax.nn.sigmoid(gates[:, 3 * D:4 * D])
        c_new = f_g * c + i_g * g_g
        h_new = o_g * jnp.tanh(c_new)

        seed = seed_ref[t] > 0.0                                   # (N, 1)
        h = jnp.where(seed, h_new, acc)   # node_emb <- h_accum, seed rows <- LSTM h
        c = jnp.where(seed, c_new, c)     # cx: seed rows <- LSTM c

        # Click-time user-embedding gather as an exact one-hot f32 matmul
        # against this step's node_emb (replaces the HBM hist + XLA gather).
        user_embs = user_embs + jnp.dot(selu_ref[t], h,
                                        preferred_element_type=jnp.float32)

    # candidate_score[c, j] = user_embs[c] . node_emb_final[cand[c, j]]
    # computed as (user . every node) then one-hot column selection.
    s_full = jax.lax.dot_general(user_embs, h, (((1,), (1,)), ((), ())),
                                 preferred_element_type=jnp.float32)   # (C, N)
    lane = jax.lax.broadcasted_iota(jnp.int32, (n_clicks, num_cand), 1)
    score = jnp.zeros((n_clicks, num_cand), jnp.float32)
    for j in range(num_cand):
        col = jnp.sum(selc_ref[j] * s_full, axis=-1, keepdims=True)    # (C, 1)
        score = jnp.where(lane == j, col, score)
    # NOTE: 9-wide last dim -> masked store; accepted per review (negligible).
    score_ref[...] = score

    # NCE loss == cross-entropy with label 0 (log-sum-exp).
    m = jnp.max(score, axis=-1, keepdims=True)
    lse = m + jnp.log(jnp.sum(jnp.exp(score - m), axis=-1, keepdims=True))
    loss = jnp.mean(lse - score[:, 0:1])
    loss_ref[...] = loss.reshape(1, 1)


def gcrnn_fused_call(prop, seed, h0, c0, wih, whh, b, selu, selc):
    t_steps = prop.shape[0]
    n_clicks = selu.shape[1]
    num_cand = selc.shape[0]
    kern = functools.partial(gcrnn_fused_kernel, emb_dim=EMB_DIM,
                             t_steps=t_steps, num_cand=num_cand)
    vmem = lambda: pl.BlockSpec(memory_space=pltpu.MemorySpace.VMEM)
    return pl.pallas_call(
        kern,
        out_shape=(jax.ShapeDtypeStruct((n_clicks, num_cand), jnp.float32),
                   jax.ShapeDtypeStruct((1, 1), jnp.float32)),
        in_specs=[vmem() for _ in range(9)],
        out_specs=(vmem(), vmem()),
        # No grid -> single invocation, nothing double-buffered.  Explicit
        # VMEM budget (fits v7x's 64 MiB) so a scaled-up N fails loudly.
        compiler_params=pltpu.CompilerParams(vmem_limit_bytes=32 * 1024 * 1024),
    )(prop, seed, h0, c0, wih, whh, b, selu, selc)


@jax.jit
def device_forward(prop, seed, h0, c0, wih, whh, b, selu, selc):
    """Whole device path == one pallas_call dispatch."""
    score, loss = gcrnn_fused_call(prop, seed, h0, c0, wih, whh, b, selu, selc)
    return score, loss[0, 0]


# ---------------------------------------------------------------------------
# Plain-JAX / numpy glue (graph construction, seed bookkeeping, selector build)
# ---------------------------------------------------------------------------
def init_params(key):
    ks = jax.random.split(key, 8)
    bound = 1.0 / np.sqrt(EMB_DIM)
    uni = lambda k, shape: jax.random.uniform(k, shape, jnp.float32, -bound, bound)
    return dict(
        user_emb=jax.random.normal(ks[0], (USER_NUM, EMB_DIM), jnp.float32),
        # TODO(synk): NewsEncoder (title-token text encoder) has no clean Pallas
        # equivalent here; replaced with a deterministic news embedding table.
        news_emb=jax.random.normal(ks[1], (NEWS_NUM, EMB_DIM), jnp.float32),
        cat_emb=jax.random.normal(ks[2], (CAT_NUM, EMB_DIM), jnp.float32),  # unused in unique_category path
        c0_emb=jax.random.normal(ks[3], (N_NODES, EMB_DIM), jnp.float32),
        w_ih=uni(ks[4], (4 * EMB_DIM, EMB_DIM)),
        w_hh=uni(ks[5], (4 * EMB_DIM, EMB_DIM)),
        b_ih=uni(ks[6], (4 * EMB_DIM,)),
        b_hh=uni(ks[7], (4 * EMB_DIM,)),
    )


def build_graph():
    """Dense bipartite click graph g and per-snapshot subgraphs sub_g[t]."""
    adj = np.zeros((N_NODES, N_NODES), np.float32)       # adj[dst, src]
    for u in range(USER_NUM):
        for n in (u % NEWS_NUM, (u + 3) % NEWS_NUM):
            v = USER_NUM + n
            adj[v, u] = 1.0
            adj[u, v] = 1.0
    sub_adj = []
    for t in range(SNAPSHOTS_NUM):
        a = np.zeros_like(adj)
        d, s = np.nonzero(adj)
        keep = (d + s + t) % 2 == 0
        a[d[keep], s[keep]] = 1.0
        sub_adj.append(a)
    deg = np.clip(adj.sum(axis=1), 1.0, None)            # g.in_degrees().clamp(min=1)
    return adj, sub_adj, deg


def build_time_operators(sub_adj, deg, seed_list, latest, history_length):
    """Per time step: fused propagation operator (sum_k alpha_k P_eff^k) and seed mask."""
    rsqrt_deg = 1.0 / np.sqrt(deg)
    coeff = np.outer(rsqrt_deg, rsqrt_deg).astype(np.float32)  # rsqrt(deg_dst*deg_src)
    alpha = np.full(K_HOP + 1, 1.0 / (K_HOP + 1), np.float32)  # _init_lightgcn default

    # backward pass: accumulate future-needed nodes + per-time masked adjacency
    gcn_seed_per_time, gcn_adj_per_time = [], []
    future_needed = set()
    check_lifetime = np.zeros(N_NODES)
    for i in range(latest, -1, -1):
        check_lifetime[list(seed_list[i])] = history_length
        future_needed = future_needed.union(seed_list[i])
        dst_mask = np.zeros((N_NODES, 1), np.float32)
        if future_needed:
            dst_mask[sorted(future_needed), 0] = 1.0
        gcn_seed_per_time.append(sorted(future_needed))
        gcn_adj_per_time.append(sub_adj[i] * dst_mask)   # in-edges of needed nodes only
        check_lifetime[check_lifetime > 0] -= 1
        future_needed = future_needed - set(np.where(check_lifetime == 0)[0])

    t_steps = latest + 1
    prop = np.zeros((t_steps, N_NODES, N_NODES), np.float32)
    seed_mask = np.zeros((t_steps, N_NODES, 1), np.float32)
    for i in range(t_steps):
        inverse = latest - i
        anorm = (gcn_adj_per_time[inverse] * coeff).astype(np.float32)
        has_in = (anorm.sum(axis=1) > 0).astype(np.float32)
        # nodes with no in-edges keep h -> identity self-loop on those rows
        p_eff = anorm + np.diag(1.0 - has_in).astype(np.float32)
        m = alpha[0] * np.eye(N_NODES, dtype=np.float32)
        pk = np.eye(N_NODES, dtype=np.float32)
        for k in range(K_HOP):
            pk = p_eff @ pk
            m = m + alpha[k + 1] * pk
        prop[i] = m                                       # sum_k alpha_k * P_eff^k
        seeds = gcn_seed_per_time[inverse]
        if seeds:
            seed_mask[i, seeds, 0] = 1.0
    return prop, seed_mask


def build_click_gather_indices(seed_list, seed_entid, train_t, latest):
    """Compose entity_embs/argsort/unique bookkeeping into per-click (time, node) pairs."""
    ent_nodes, ent_times, ent_keys = [], [], []
    for i in range(latest + 1):
        for node in sorted(seed_list[i]):
            ent_nodes.append(node)
            ent_times.append(i)
            # NOTE: stride is `latest` (== latest_train_time) to match the original
            # module's keying exactly (it does NOT use latest+1).
            ent_keys.append(node * latest + i)
    ent_nodes = np.asarray(ent_nodes, np.int32)
    ent_times = np.asarray(ent_times, np.int32)
    order = np.argsort(np.asarray(ent_keys), kind="stable")
    click_keys = np.asarray(seed_entid) * latest + np.asarray(train_t)
    _, inv = np.unique(click_keys, return_inverse=True)
    sel = order[inv]
    return ent_times[sel].astype(np.int32), ent_nodes[sel].astype(np.int32)


def build_selection_matrices(click_t, click_n, cand_nodes, t_steps):
    """One-hot selectors so the in-kernel gathers become exact MXU matmuls."""
    n_clicks = click_t.shape[0]
    selu = np.zeros((t_steps, n_clicks, N_NODES), np.float32)
    selu[click_t, np.arange(n_clicks), click_n] = 1.0
    num_cand = cand_nodes.shape[1]
    selc = np.zeros((num_cand, n_clicks, N_NODES), np.float32)
    for cc in range(n_clicks):
        for jj in range(num_cand):
            selc[jj, cc, cand_nodes[cc, jj]] = 1.0
    return selu, selc


def gcrnn_forward(params, user_batch, time_batch, ns_idx, sub_adj, deg):
    latest = SNAPSHOTS_NUM - 1
    seed_list = [set() for _ in range(latest + 1)]
    seed_entid, train_t = [], []
    for time_list, user in zip(time_batch, user_batch):
        for t in time_list:
            seed_list[t].add(user)
            seed_entid.append(user)
            train_t.append(t)

    # All graph / seed-lifetime bookkeeping, propagation-operator construction
    # and gather-index -> one-hot conversion is host-side numpy; a single
    # batched H2D transfer feeds one jitted dispatch containing ONE pallas_call.
    prop, seed_mask = build_time_operators(sub_adj, deg, seed_list, latest,
                                           HISTORY_LENGTH)
    click_t, click_n = build_click_gather_indices(seed_list, seed_entid,
                                                  train_t, latest)
    cand_nodes = np.asarray(ns_idx) + USER_NUM
    selu, selc = build_selection_matrices(click_t, click_n, cand_nodes,
                                          latest + 1)

    node_emb0 = jnp.concatenate([params['user_emb'], params['news_emb']], axis=0)
    c0 = params['c0_emb']
    # bf16 MXU operands (f32 accumulation): W_ih^T, W_hh^T, propagation operator.
    # Bias / state / elementwise gate math stay f32.
    wih = jnp.asarray(params['w_ih'].T, jnp.bfloat16)      # (D, 4D)
    whh = jnp.asarray(params['w_hh'].T, jnp.bfloat16)      # (D, 4D)
    b = (params['b_ih'] + params['b_hh']).reshape(1, -1)   # (1, 4D) f32

    score, loss = device_forward(jnp.asarray(prop, jnp.bfloat16),
                                 jnp.asarray(seed_mask),
                                 node_emb0, c0, wih, whh, b,
                                 jnp.asarray(selu), jnp.asarray(selc))
    return score, loss


if __name__ == "__main__":
    key = jax.random.PRNGKey(0)
    params = init_params(key)
    _, sub_adj, deg = build_graph()

    user_batch = [0, 1, 2, 5]
    time_batch = [[0, 2], [1], [3], [2, 3]]
    num_clicks = sum(len(t) for t in time_batch)
    ns_idx = np.array(jax.random.randint(jax.random.PRNGKey(1),
                                         (num_clicks, NUM_CAND), 0, NEWS_NUM))

    score, loss = gcrnn_forward(params, user_batch, time_batch, ns_idx, sub_adj, deg)
    jax.block_until_ready((score, loss))
    assert score.shape == (num_clicks, NUM_CAND)
    assert np.all(np.isfinite(np.asarray(score)))
    assert np.isfinite(float(loss))
    print("KERNEL_OK")
</pallas_src>

<mosaic_0001>
module attributes {stable_mosaic.version = 11 : i64} {
  func.func @gcrnn_fused_kernel(%arg0: memref<4x32x32xbf16, #tpu.memory_space<vmem>>, %arg1: memref<4x32x1xf32, #tpu.memory_space<vmem>>, %arg2: memref<32x128xf32, #tpu.memory_space<vmem>>, %arg3: memref<32x128xf32, #tpu.memory_space<vmem>>, %arg4: memref<128x512xbf16, #tpu.memory_space<vmem>>, %arg5: memref<128x512xbf16, #tpu.memory_space<vmem>>, %arg6: memref<1x512xf32, #tpu.memory_space<vmem>>, %arg7: memref<4x6x32xf32, #tpu.memory_space<vmem>>, %arg8: memref<9x6x32xf32, #tpu.memory_space<vmem>>, %arg9: memref<6x9xf32, #tpu.memory_space<vmem>>, %arg10: memref<1x1xf32, #tpu.memory_space<vmem>>) attributes {dimension_semantics = [], scalar_prefetch = 0 : i64, scratch_operands = 0 : i64, tpu.core_type = #tpu.core_type<tc>} {
    %c0 = arith.constant 0 : index
    %c0_0 = arith.constant 0 : index
    %0 = vector.load %arg2[%c0, %c0_0] : memref<32x128xf32, #tpu.memory_space<vmem>>, vector<32x128xf32>
    %c0_1 = arith.constant 0 : index
    %c0_2 = arith.constant 0 : index
    %1 = vector.load %arg3[%c0_1, %c0_2] : memref<32x128xf32, #tpu.memory_space<vmem>>, vector<32x128xf32>
    %c0_3 = arith.constant 0 : index
    %c0_4 = arith.constant 0 : index
    %2 = vector.load %arg4[%c0_3, %c0_4] : memref<128x512xbf16, #tpu.memory_space<vmem>>, vector<128x512xbf16>
    %c0_5 = arith.constant 0 : index
    %c0_6 = arith.constant 0 : index
    %3 = vector.load %arg5[%c0_5, %c0_6] : memref<128x512xbf16, #tpu.memory_space<vmem>>, vector<128x512xbf16>
    %c0_7 = arith.constant 0 : index
    %c0_8 = arith.constant 0 : index
    %4 = vector.load %arg6[%c0_7, %c0_8] : memref<1x512xf32, #tpu.memory_space<vmem>>, vector<1x512xf32>
    %cst = arith.constant 0.000000e+00 : f32
    %5 = vector.broadcast %cst : f32 to vector<6x128xf32>
    %c0_9 = arith.constant 0 : index
    %c0_10 = arith.constant 0 : index
    %c0_11 = arith.constant 0 : index
    %6 = vector.load %arg0[%c0_9, %c0_10, %c0_11] : memref<4x32x32xbf16, #tpu.memory_space<vmem>>, vector<1x32x32xbf16>
    %7 = vector.shape_cast %6 : vector<1x32x32xbf16> to vector<32x32xbf16>
    %8 = arith.truncf %0 : vector<32x128xf32> to vector<32x128xbf16>
    %cst_12 = arith.constant dense<0.000000e+00> : vector<32x128xf32>
    %9 = tpu.matmul %7, %8, %cst_12 {dimension_numbers = #tpu.dot_dimension_numbers<[1], [0], [0], [1], [0, 0, 1, 1], [], []>} : vector<32x32xbf16>, vector<32x128xbf16>, vector<32x128xf32> -> vector<32x128xf32>
    %10 = arith.truncf %9 : vector<32x128xf32> to vector<32x128xbf16>
    %cst_13 = arith.constant dense<0.000000e+00> : vector<32x512xf32>
    %11 = tpu.matmul %10, %2, %cst_13 {dimension_numbers = #tpu.dot_dimension_numbers<[1], [0], [0], [1], [0, 0, 1, 1], [], []>} : vector<32x128xbf16>, vector<128x512xbf16>, vector<32x512xf32> -> vector<32x512xf32>
    %12 = arith.truncf %0 : vector<32x128xf32> to vector<32x128xbf16>
    %cst_14 = arith.constant dense<0.000000e+00> : vector<32x512xf32>
    %13 = tpu.matmul %12, %3, %cst_14 {dimension_numbers = #tpu.dot_dimension_numbers<[1], [0], [0], [1], [0, 0, 1, 1], [], []>} : vector<32x128xbf16>, vector<128x512xbf16>, vector<32x512xf32> -> vector<32x512xf32>
    %14 = arith.addf %11, %13 : vector<32x512xf32>
    %15 = vector.broadcast %4 : vector<1x512xf32> to vector<32x512xf32>
    %16 = arith.addf %14, %15 : vector<32x512xf32>
    %17 = vector.extract_strided_slice %16 {offsets = [0, 0], sizes = [32, 128], strides = [1, 1]} : vector<32x512xf32> to vector<32x128xf32>
    %18 = arith.negf %17 : vector<32x128xf32>
    %19 = math.exp %18 : vector<32x128xf32>
    %cst_15 = arith.constant 1.000000e+00 : f32
    %20 = vector.broadcast %cst_15 : f32 to vector<32x128xf32>
    %21 = arith.addf %20, %19 : vector<32x128xf32>
    %22 = arith.divf %20, %21 : vector<32x128xf32>
    %23 = vector.extract_strided_slice %16 {offsets = [0, 128], sizes = [32, 128], strides = [1, 1]} : vector<32x512xf32> to vector<32x128xf32>
    %24 = arith.negf %23 : vector<32x128xf32>
    %25 = math.exp %24 : vector<32x128xf32>
    %cst_16 = arith.constant 1.000000e+00 : f32
    %26 = vector.broadcast %cst_16 : f32 to vector<32x128xf32>
    %27 = arith.addf %26, %25 : vector<32x128xf32>
    %28 = arith.divf %26, %27 : vector<32x128xf32>
    %29 = vector.extract_strided_slice %16 {offsets = [0, 256], sizes = [32, 128], strides = [1, 1]} : vector<32x512xf32> to vector<32x128xf32>
    %30 = math.tanh %29 : vector<32x128xf32>
    %31 = vector.extract_strided_slice %16 {offsets = [0, 384], sizes = [32, 128], strides = [1, 1]} : vector<32x512xf32> to vector<32x128xf32>
    %32 = arith.negf %31 : vector<32x128xf32>
    %33 = math.exp %32 : vector<32x128xf32>
    %cst_17 = arith.constant 1.000000e+00 : f32
    %34 = vector.broadcast %cst_17 : f32 to vector<32x128xf32>
    %35 = arith.addf %34, %33 : vector<32x128xf32>
    %36 = arith.divf %34, %35 : vector<32x128xf32>
    %37 = arith.mulf %28, %1 : vector<32x128xf32>
    %38 = arith.mulf %22, %30 : vector<32x128xf32>
    %39 = arith.addf %37, %38 : vector<32x128xf32>
    %40 = math.tanh %39 : vector<32x128xf32>
    %41 = arith.mulf %36, %40 : vector<32x128xf32>
    %c0_18 = arith.constant 0 : index
    %c0_19 = arith.constant 0 : index
    %c0_20 = arith.constant 0 : index
    %42 = vector.load %arg1[%c0_18, %c0_19, %c0_20] : memref<4x32x1xf32, #tpu.memory_space<vmem>>, vector<1x32x1xf32>
    %43 = vector.shape_cast %42 : vector<1x32x1xf32> to vector<32x1xf32>
    %cst_21 = arith.constant 0.000000e+00 : f32
    %44 = vector.broadcast %cst_21 : f32 to vector<32x1xf32>
    %45 = arith.cmpf ogt, %43, %44 : vector<32x1xf32>
    %46 = vector.shape_cast %45 : vector<32x1xi1> to vector<32x1xi1>
    %47 = vector.broadcast %46 : vector<32x1xi1> to vector<32x128xi1>
    %48 = arith.select %47, %41, %9 : vector<32x128xi1>, vector<32x128xf32>
    %49 = vector.shape_cast %45 : vector<32x1xi1> to vector<32x1xi1>
    %50 = vector.broadcast %49 : vector<32x1xi1> to vector<32x128xi1>
    %51 = arith.select %50, %39, %1 : vector<32x128xi1>, vector<32x128xf32>
    %c0_22 = arith.constant 0 : index
    %c0_23 = arith.constant 0 : index
    %c0_24 = arith.constant 0 : index
    %52 = vector.load %arg7[%c0_22, %c0_23, %c0_24] : memref<4x6x32xf32, #tpu.memory_space<vmem>>, vector<1x6x32xf32>
    %53 = vector.shape_cast %52 : vector<1x6x32xf32> to vector<6x32xf32>
    %cst_25 = arith.constant dense<0.000000e+00> : vector<6x128xf32>
    %54 = tpu.matmul %53, %48, %cst_25 {dimension_numbers = #tpu.dot_dimension_numbers<[1], [0], [0], [1], [0, 0, 1, 1], [], []>} : vector<6x32xf32>, vector<32x128xf32>, vector<6x128xf32> -> vector<6x128xf32>
    %55 = arith.addf %5, %54 : vector<6x128xf32>
    %c1 = arith.constant 1 : index
    %c0_26 = arith.constant 0 : index
    %c0_27 = arith.constant 0 : index
    %56 = vector.load %arg0[%c1, %c0_26, %c0_27] : memref<4x32x32xbf16, #tpu.memory_space<vmem>>, vector<1x32x32xbf16>
    %57 = vector.shape_cast %56 : vector<1x32x32xbf16> to vector<32x32xbf16>
    %58 = arith.truncf %48 : vector<32x128xf32> to vector<32x128xbf16>
    %cst_28 = arith.constant dense<0.000000e+00> : vector<32x128xf32>
    %59 = tpu.matmul %57, %58, %cst_28 {dimension_numbers = #tpu.dot_dimension_numbers<[1], [0], [0], [1], [0, 0, 1, 1], [], []>} : vector<32x32xbf16>, vector<32x128xbf16>, vector<32x128xf32> -> vector<32x128xf32>
    %60 = arith.truncf %59 : vector<32x128xf32> to vector<32x128xbf16>
    %cst_29 = arith.constant dense<0.000000e+00> : vector<32x512xf32>
    %61 = tpu.matmul %60, %2, %cst_29 {dimension_numbers = #tpu.dot_dimension_numbers<[1], [0], [0], [1], [0, 0, 1, 1], [], []>} : vector<32x128xbf16>, vector<128x512xbf16>, vector<32x512xf32> -> vector<32x512xf32>
    %62 = arith.truncf %48 : vector<32x128xf32> to vector<32x128xbf16>
    %cst_30 = arith.constant dense<0.000000e+00> : vector<32x512xf32>
    %63 = tpu.matmul %62, %3, %cst_30 {dimension_numbers = #tpu.dot_dimension_numbers<[1], [0], [0], [1], [0, 0, 1, 1], [], []>} : vector<32x128xbf16>, vector<128x512xbf16>, vector<32x512xf32> -> vector<32x512xf32>
    %64 = arith.addf %61, %63 : vector<32x512xf32>
    %65 = vector.broadcast %4 : vector<1x512xf32> to vector<32x512xf32>
    %66 = arith.addf %64, %65 : vector<32x512xf32>
    %67 = vector.extract_strided_slice %66 {offsets = [0, 0], sizes = [32, 128], strides = [1, 1]} : vector<32x512xf32> to vector<32x128xf32>
    %68 = arith.negf %67 : vector<32x128xf32>
    %69 = math.exp %68 : vector<32x128xf32>
    %cst_31 = arith.constant 1.000000e+00 : f32
    %70 = vector.broadcast %cst_31 : f32 to vector<32x128xf32>
    %71 = arith.addf %70, %69 : vector<32x128xf32>
    %72 = arith.divf %70, %71 : vector<32x128xf32>
    %73 = vector.extract_strided_slice %66 {offsets = [0, 128], sizes = [32, 128], strides = [1, 1]} : vector<32x512xf32> to vector<32x128xf32>
    %74 = arith.negf %73 : vector<32x128xf32>
    %75 = math.exp %74 : vector<32x128xf32>
    %cst_32 = arith.constant 1.000000e+00 : f32
    %76 = vector.broadcast %cst_32 : f32 to vector<32x128xf32>
    %77 = arith.addf %76, %75 : vector<32x128xf32>
    %78 = arith.divf %76, %77 : vector<32x128xf32>
    %79 = vector.extract_strided_slice %66 {offsets = [0, 256], sizes = [32, 128], strides = [1, 1]} : vector<32x512xf32> to vector<32x128xf32>
    %80 = math.tanh %79 : vector<32x128xf32>
    %81 = vector.extract_strided_slice %66 {offsets = [0, 384], sizes = [32, 128], strides = [1, 1]} : vector<32x512xf32> to vector<32x128xf32>
    %82 = arith.negf %81 : vector<32x128xf32>
    %83 = math.exp %82 : vector<32x128xf32>
    %cst_33 = arith.constant 1.000000e+00 : f32
    %84 = vector.broadcast %cst_33 : f32 to vector<32x128xf32>
    %85 = arith.addf %84, %83 : vector<32x128xf32>
    %86 = arith.divf %84, %85 : vector<32x128xf32>
    %87 = arith.mulf %78, %51 : vector<32x128xf32>
    %88 = arith.mulf %72, %80 : vector<32x128xf32>
    %89 = arith.addf %87, %88 : vector<32x128xf32>
    %90 = math.tanh %89 : vector<32x128xf32>
    %91 = arith.mulf %86, %90 : vector<32x128xf32>
    %c1_34 = arith.constant 1 : index
    %c0_35 = arith.constant 0 : index
    %c0_36 = arith.constant 0 : index
    %92 = vector.load %arg1[%c1_34, %c0_35, %c0_36] : memref<4x32x1xf32, #tpu.memory_space<vmem>>, vector<1x32x1xf32>
    %93 = vector.shape_cast %92 : vector<1x32x1xf32> to vector<32x1xf32>
    %cst_37 = arith.constant 0.000000e+00 : f32
    %94 = vector.broadcast %cst_37 : f32 to vector<32x1xf32>
    %95 = arith.cmpf ogt, %93, %94 : vector<32x1xf32>
    %96 = vector.shape_cast %95 : vector<32x1xi1> to vector<32x1xi1>
    %97 = vector.broadcast %96 : vector<32x1xi1> to vector<32x128xi1>
    %98 = arith.select %97, %91, %59 : vector<32x128xi1>, vector<32x128xf32>
    %99 = vector.shape_cast %95 : vector<32x1xi1> to vector<32x1xi1>
    %100 = vector.broadcast %99 : vector<32x1xi1> to vector<32x128xi1>
    %101 = arith.select %100, %89, %51 : vector<32x128xi1>, vector<32x128xf32>
    %c1_38 = arith.constant 1 : index
    %c0_39 = arith.constant 0 : index
    %c0_40 = arith.constant 0 : index
    %102 = vector.load %arg7[%c1_38, %c0_39, %c0_40] : memref<4x6x32xf32, #tpu.memory_space<vmem>>, vector<1x6x32xf32>
    %103 = vector.shape_cast %102 : vector<1x6x32xf32> to vector<6x32xf32>
    %cst_41 = arith.constant dense<0.000000e+00> : vector<6x128xf32>
    %104 = tpu.matmul %103, %98, %cst_41 {dimension_numbers = #tpu.dot_dimension_numbers<[1], [0], [0], [1], [0, 0, 1, 1], [], []>} : vector<6x32xf32>, vector<32x128xf32>, vector<6x128xf32> -> vector<6x128xf32>
    %105 = arith.addf %55, %104 : vector<6x128xf32>
    %c2 = arith.constant 2 : index
    %c0_42 = arith.constant 0 : index
    %c0_43 = arith.constant 0 : index
    %106 = vector.load %arg0[%c2, %c0_42, %c0_43] : memref<4x32x32xbf16, #tpu.memory_space<vmem>>, vector<1x32x32xbf16>
    %107 = vector.shape_cast %106 : vector<1x32x32xbf16> to vector<32x32xbf16>
    %108 = arith.truncf %98 : vector<32x128xf32> to vector<32x128xbf16>
    %cst_44 = arith.constant dense<0.000000e+00> : vector<32x128xf32>
    %109 = tpu.matmul %107, %108, %cst_44 {dimension_numbers = #tpu.dot_dimension_numbers<[1], [0], [0], [1], [0, 0, 1, 1], [], []>} : vector<32x32xbf16>, vector<32x128xbf16>, vector<32x128xf32> -> vector<32x128xf32>
    %110 = arith.truncf %109 : vector<32x128xf32> to vector<32x128xbf16>
    %cst_45 = arith.constant dense<0.000000e+00> : vector<32x512xf32>
    %111 = tpu.matmul %110, %2, %cst_45 {dimension_numbers = #tpu.dot_dimension_numbers<[1], [0], [0], [1], [0, 0, 1, 1], [], []>} : vector<32x128xbf16>, vector<128x512xbf16>, vector<32x512xf32> -> vector<32x512xf32>
    %112 = arith.truncf %98 : vector<32x128xf32> to vector<32x128xbf16>
    %cst_46 = arith.constant dense<0.000000e+00> : vector<32x512xf32>
    %113 = tpu.matmul %112, %3, %cst_46 {dimension_numbers = #tpu.dot_dimension_numbers<[1], [0], [0], [1], [0, 0, 1, 1], [], []>} : vector<32x128xbf16>, vector<128x512xbf16>, vector<32x512xf32> -> vector<32x512xf32>
    %114 = arith.addf %111, %113 : vector<32x512xf32>
    %115 = vector.broadcast %4 : vector<1x512xf32> to vector<32x512xf32>
    %116 = arith.addf %114, %115 : vector<32x512xf32>
    %117 = vector.extract_strided_slice %116 {offsets = [0, 0], sizes = [32, 128], strides = [1, 1]} : vector<32x512xf32> to vector<32x128xf32>
    %118 = arith.negf %117 : vector<32x128xf32>
    %119 = math.exp %118 : vector<32x128xf32>
    %cst_47 = arith.constant 1.000000e+00 : f32
    %120 = vector.broadcast %cst_47 : f32 to vector<32x128xf32>
    %121 = arith.addf %120, %119 : vector<32x128xf32>
    %122 = arith.divf %120, %121 : vector<32x128xf32>
    %123 = vector.extract_strided_slice %116 {offsets = [0, 128], sizes = [32, 128], strides = [1, 1]} : vector<32x512xf32> to vector<32x128xf32>
    %124 = arith.negf %123 : vector<32x128xf32>
    %125 = math.exp %124 : vector<32x128xf32>
    %cst_48 = arith.constant 1.000000e+00 : f32
    %126 = vector.broadcast %cst_48 : f32 to vector<32x128xf32>
    %127 = arith.addf %126, %125 : vector<32x128xf32>
    %128 = arith.divf %126, %127 : vector<32x128xf32>
    %129 = vector.extract_strided_slice %116 {offsets = [0, 256], sizes = [32, 128], strides = [1, 1]} : vector<32x512xf32> to vector<32x128xf32>
    %130 = math.tanh %129 : vector<32x128xf32>
    %131 = vector.extract_strided_slice %116 {offsets = [0, 384], sizes = [32, 128], strides = [1, 1]} : vector<32x512xf32> to vector<32x128xf32>
    %132 = arith.negf %131 : vector<32x128xf32>
    %133 = math.exp %132 : vector<32x128xf32>
    %cst_49 = arith.constant 1.000000e+00 : f32
    %134 = vector.broadcast %cst_49 : f32 to vector<32x128xf32>
    %135 = arith.addf %134, %133 : vector<32x128xf32>
    %136 = arith.divf %134, %135 : vector<32x128xf32>
    %137 = arith.mulf %128, %101 : vector<32x128xf32>
    %138 = arith.mulf %122, %130 : vector<32x128xf32>
    %139 = arith.addf %137, %138 : vector<32x128xf32>
    %140 = math.tanh %139 : vector<32x128xf32>
    %141 = arith.mulf %136, %140 : vector<32x128xf32>
    %c2_50 = arith.constant 2 : index
    %c0_51 = arith.constant 0 : index
    %c0_52 = arith.constant 0 : index
    %142 = vector.load %arg1[%c2_50, %c0_51, %c0_52] : memref<4x32x1xf32, #tpu.memory_space<vmem>>, vector<1x32x1xf32>
    %143 = vector.shape_cast %142 : vector<1x32x1xf32> to vector<32x1xf32>
    %cst_53 = arith.constant 0.000000e+00 : f32
    %144 = vector.broadcast %cst_53 : f32 to vector<32x1xf32>
    %145 = arith.cmpf ogt, %143, %144 : vector<32x1xf32>
    %146 = vector.shape_cast %145 : vector<32x1xi1> to vector<32x1xi1>
    %147 = vector.broadcast %146 : vector<32x1xi1> to vector<32x128xi1>
    %148 = arith.select %147, %141, %109 : vector<32x128xi1>, vector<32x128xf32>
    %149 = vector.shape_cast %145 : vector<32x1xi1> to vector<32x1xi1>
    %150 = vector.broadcast %149 : vector<32x1xi1> to vector<32x128xi1>
    %151 = arith.select %150, %139, %101 : vector<32x128xi1>, vector<32x128xf32>
    %c2_54 = arith.constant 2 : index
    %c0_55 = arith.constant 0 : index
    %c0_56 = arith.constant 0 : index
    %152 = vector.load %arg7[%c2_54, %c0_55, %c0_56] : memref<4x6x32xf32, #tpu.memory_space<vmem>>, vector<1x6x32xf32>
    %153 = vector.shape_cast %152 : vector<1x6x32xf32> to vector<6x32xf32>
    %cst_57 = arith.constant dense<0.000000e+00> : vector<6x128xf32>
    %154 = tpu.matmul %153, %148, %cst_57 {dimension_numbers = #tpu.dot_dimension_numbers<[1], [0], [0], [1], [0, 0, 1, 1], [], []>} : vector<6x32xf32>, vector<32x128xf32>, vector<6x128xf32> -> vector<6x128xf32>
    %155 = arith.addf %105, %154 : vector<6x128xf32>
    %c3 = arith.constant 3 : index
    %c0_58 = arith.constant 0 : index
    %c0_59 = arith.constant 0 : index
    %156 = vector.load %arg0[%c3, %c0_58, %c0_59] : memref<4x32x32xbf16, #tpu.memory_space<vmem>>, vector<1x32x32xbf16>
    %157 = vector.shape_cast %156 : vector<1x32x32xbf16> to vector<32x32xbf16>
    %158 = arith.truncf %148 : vector<32x128xf32> to vector<32x128xbf16>
    %cst_60 = arith.constant dense<0.000000e+00> : vector<32x128xf32>
    %159 = tpu.matmul %157, %158, %cst_60 {dimension_numbers = #tpu.dot_dimension_numbers<[1], [0], [0], [1], [0, 0, 1, 1], [], []>} : vector<32x32xbf16>, vector<32x128xbf16>, vector<32x128xf32> -> vector<32x128xf32>
    %160 = arith.truncf %159 : vector<32x128xf32> to vector<32x128xbf16>
    %cst_61 = arith.constant dense<0.000000e+00> : vector<32x512xf32>
    %161 = tpu.matmul %160, %2, %cst_61 {dimension_numbers = #tpu.dot_dimension_numbers<[1], [0], [0], [1], [0, 0, 1, 1], [], []>} : vector<32x128xbf16>, vector<128x512xbf16>, vector<32x512xf32> -> vector<32x512xf32>
    %162 = arith.truncf %148 : vector<32x128xf32> to vector<32x128xbf16>
    %cst_62 = arith.constant dense<0.000000e+00> : vector<32x512xf32>
    %163 = tpu.matmul %162, %3, %cst_62 {dimension_numbers = #tpu.dot_dimension_numbers<[1], [0], [0], [1], [0, 0, 1, 1], [], []>} : vector<32x128xbf16>, vector<128x512xbf16>, vector<32x512xf32> -> vector<32x512xf32>
    %164 = arith.addf %161, %163 : vector<32x512xf32>
    %165 = vector.broadcast %4 : vector<1x512xf32> to vector<32x512xf32>
    %166 = arith.addf %164, %165 : vector<32x512xf32>
    %167 = vector.extract_strided_slice %166 {offsets = [0, 0], sizes = [32, 128], strides = [1, 1]} : vector<32x512xf32> to vector<32x128xf32>
    %168 = arith.negf %167 : vector<32x128xf32>
    %169 = math.exp %168 : vector<32x128xf32>
    %cst_63 = arith.constant 1.000000e+00 : f32
    %170 = vector.broadcast %cst_63 : f32 to vector<32x128xf32>
    %171 = arith.addf %170, %169 : vector<32x128xf32>
    %172 = arith.divf %170, %171 : vector<32x128xf32>
    %173 = vector.extract_strided_slice %166 {offsets = [0, 128], sizes = [32, 128], strides = [1, 1]} : vector<32x512xf32> to vector<32x128xf32>
    %174 = arith.negf %173 : vector<32x128xf32>
    %175 = math.exp %174 : vector<32x128xf32>
    %cst_64 = arith.constant 1.000000e+00 : f32
    %176 = vector.broadcast %cst_64 : f32 to vector<32x128xf32>
    %177 = arith.addf %176, %175 : vector<32x128xf32>
    %178 = arith.divf %176, %177 : vector<32x128xf32>
    %179 = vector.extract_strided_slice %166 {offsets = [0, 256], sizes = [32, 128], strides = [1, 1]} : vector<32x512xf32> to vector<32x128xf32>
    %180 = math.tanh %179 : vector<32x128xf32>
    %181 = vector.extract_strided_slice %166 {offsets = [0, 384], sizes = [32, 128], strides = [1, 1]} : vector<32x512xf32> to vector<32x128xf32>
    %182 = arith.negf %181 : vector<32x128xf32>
    %183 = math.exp %182 : vector<32x128xf32>
    %cst_65 = arith.constant 1.000000e+00 : f32
    %184 = vector.broadcast %cst_65 : f32 to vector<32x128xf32>
    %185 = arith.addf %184, %183 : vector<32x128xf32>
    %186 = arith.divf %184, %185 : vector<32x128xf32>
    %187 = arith.mulf %178, %151 : vector<32x128xf32>
    %188 = arith.mulf %172, %180 : vector<32x128xf32>
    %189 = arith.addf %187, %188 : vector<32x128xf32>
    %190 = math.tanh %189 : vector<32x128xf32>
    %191 = arith.mulf %186, %190 : vector<32x128xf32>
    %c3_66 = arith.constant 3 : index
    %c0_67 = arith.constant 0 : index
    %c0_68 = arith.constant 0 : index
    %192 = vector.load %arg1[%c3_66, %c0_67, %c0_68] : memref<4x32x1xf32, #tpu.memory_space<vmem>>, vector<1x32x1xf32>
    %193 = vector.shape_cast %192 : vector<1x32x1xf32> to vector<32x1xf32>
    %cst_69 = arith.constant 0.000000e+00 : f32
    %194 = vector.broadcast %cst_69 : f32 to vector<32x1xf32>
    %195 = arith.cmpf ogt, %193, %194 : vector<32x1xf32>
    %196 = vector.shape_cast %195 : vector<32x1xi1> to vector<32x1xi1>
    %197 = vector.broadcast %196 : vector<32x1xi1> to vector<32x128xi1>
    %198 = arith.select %197, %191, %159 : vector<32x128xi1>, vector<32x128xf32>
    %c3_70 = arith.constant 3 : index
    %c0_71 = arith.constant 0 : index
    %c0_72 = arith.constant 0 : index
    %199 = vector.load %arg7[%c3_70, %c0_71, %c0_72] : memref<4x6x32xf32, #tpu.memory_space<vmem>>, vector<1x6x32xf32>
    %200 = vector.shape_cast %199 : vector<1x6x32xf32> to vector<6x32xf32>
    %cst_73 = arith.constant dense<0.000000e+00> : vector<6x128xf32>
    %201 = tpu.matmul %200, %198, %cst_73 {dimension_numbers = #tpu.dot_dimension_numbers<[1], [0], [0], [1], [0, 0, 1, 1], [], []>} : vector<6x32xf32>, vector<32x128xf32>, vector<6x128xf32> -> vector<6x128xf32>
    %202 = arith.addf %155, %201 : vector<6x128xf32>
    %cst_74 = arith.constant dense<0.000000e+00> : vector<6x32xf32>
    %203 = tpu.matmul %202, %198, %cst_74 {dimension_numbers = #tpu.dot_dimension_numbers<[1], [1], [0], [0], [0, 0, 1, 0], [], []>} : vector<6x128xf32>, vector<32x128xf32>, vector<6x32xf32> -> vector<6x32xf32>
    %204 = tpu.iota {dimensions = array<i32: 1>} : vector<6x9xi32>
    %cst_75 = arith.constant 0.000000e+00 : f32
    %205 = vector.broadcast %cst_75 : f32 to vector<6x9xf32>
    %c0_76 = arith.constant 0 : index
    %c0_77 = arith.constant 0 : index
    %c0_78 = arith.constant 0 : index
    %206 = vector.load %arg8[%c0_76, %c0_77, %c0_78] : memref<9x6x32xf32, #tpu.memory_space<vmem>>, vector<1x6x32xf32>
    %207 = vector.shape_cast %206 : vector<1x6x32xf32> to vector<6x32xf32>
    %208 = arith.mulf %207, %203 : vector<6x32xf32>
    %cst_79 = arith.constant dense<0.000000e+00> : vector<6xf32>
    %209 = vector.multi_reduction <add>, %208, %cst_79 [1] : vector<6x32xf32> to vector<6xf32>
    %210 = vector.shape_cast %209 : vector<6xf32> to vector<6x1xf32>
    %c0_i32 = arith.constant 0 : i32
    %211 = vector.broadcast %c0_i32 : i32 to vector<6x9xi32>
    %212 = arith.cmpi eq, %204, %211 : vector<6x9xi32>
    %213 = vector.shape_cast %210 : vector<6x1xf32> to vector<6x1xf32>
    %214 = vector.broadcast %213 : vector<6x1xf32> to vector<6x9xf32>
    %215 = arith.select %212, %214, %205 : vector<6x9xi1>, vector<6x9xf32>
    %c1_80 = arith.constant 1 : index
    %c0_81 = arith.constant 0 : index
    %c0_82 = arith.constant 0 : index
    %216 = vector.load %arg8[%c1_80, %c0_81, %c0_82] : memref<9x6x32xf32, #tpu.memory_space<vmem>>, vector<1x6x32xf32>
    %217 = vector.shape_cast %216 : vector<1x6x32xf32> to vector<6x32xf32>
    %218 = arith.mulf %217, %203 : vector<6x32xf32>
    %cst_83 = arith.constant dense<0.000000e+00> : vector<6xf32>
    %219 = vector.multi_reduction <add>, %218, %cst_83 [1] : vector<6x32xf32> to vector<6xf32>
    %220 = vector.shape_cast %219 : vector<6xf32> to vector<6x1xf32>
    %c1_i32 = arith.constant 1 : i32
    %221 = vector.broadcast %c1_i32 : i32 to vector<6x9xi32>
    %222 = arith.cmpi eq, %204, %221 : vector<6x9xi32>
    %223 = vector.shape_cast %220 : vector<6x1xf32> to vector<6x1xf32>
    %224 = vector.broadcast %223 : vector<6x1xf32> to vector<6x9xf32>
    %225 = arith.select %222, %224, %215 : vector<6x9xi1>, vector<6x9xf32>
    %c2_84 = arith.constant 2 : index
    %c0_85 = arith.constant 0 : index
    %c0_86 = arith.constant 0 : index
    %226 = vector.load %arg8[%c2_84, %c0_85, %c0_86] : memref<9x6x32xf32, #tpu.memory_space<vmem>>, vector<1x6x32xf32>
    %227 = vector.shape_cast %226 : vector<1x6x32xf32> to vector<6x32xf32>
    %228 = arith.mulf %227, %203 : vector<6x32xf32>
    %cst_87 = arith.constant dense<0.000000e+00> : vector<6xf32>
    %229 = vector.multi_reduction <add>, %228, %cst_87 [1] : vector<6x32xf32> to vector<6xf32>
    %230 = vector.shape_cast %229 : vector<6xf32> to vector<6x1xf32>
    %c2_i32 = arith.constant 2 : i32
    %231 = vector.broadcast %c2_i32 : i32 to vector<6x9xi32>
    %232 = arith.cmpi eq, %204, %231 : vector<6x9xi32>
    %233 = vector.shape_cast %230 : vector<6x1xf32> to vector<6x1xf32>
    %234 = vector.broadcast %233 : vector<6x1xf32> to vector<6x9xf32>
    %235 = arith.select %232, %234, %225 : vector<6x9xi1>, vector<6x9xf32>
    %c3_88 = arith.constant 3 : index
    %c0_89 = arith.constant 0 : index
    %c0_90 = arith.constant 0 : index
    %236 = vector.load %arg8[%c3_88, %c0_89, %c0_90] : memref<9x6x32xf32, #tpu.memory_space<vmem>>, vector<1x6x32xf32>
    %237 = vector.shape_cast %236 : vector<1x6x32xf32> to vector<6x32xf32>
    %238 = arith.mulf %237, %203 : vector<6x32xf32>
    %cst_91 = arith.constant dense<0.000000e+00> : vector<6xf32>
    %239 = vector.multi_reduction <add>, %238, %cst_91 [1] : vector<6x32xf32> to vector<6xf32>
    %240 = vector.shape_cast %239 : vector<6xf32> to vector<6x1xf32>
    %c3_i32 = arith.constant 3 : i32
    %241 = vector.broadcast %c3_i32 : i32 to vector<6x9xi32>
    %242 = arith.cmpi eq, %204, %241 : vector<6x9xi32>
    %243 = vector.shape_cast %240 : vector<6x1xf32> to vector<6x1xf32>
    %244 = vector.broadcast %243 : vector<6x1xf32> to vector<6x9xf32>
    %245 = arith.select %242, %244, %235 : vector<6x9xi1>, vector<6x9xf32>
    %c4 = arith.constant 4 : index
    %c0_92 = arith.constant 0 : index
    %c0_93 = arith.constant 0 : index
    %246 = vector.load %arg8[%c4, %c0_92, %c0_93] : memref<9x6x32xf32, #tpu.memory_space<vmem>>, vector<1x6x32xf32>
    %247 = vector.shape_cast %246 : vector<1x6x32xf32> to vector<6x32xf32>
    %248 = arith.mulf %247, %203 : vector<6x32xf32>
    %cst_94 = arith.constant dense<0.000000e+00> : vector<6xf32>
    %249 = vector.multi_reduction <add>, %248, %cst_94 [1] : vector<6x32xf32> to vector<6xf32>
    %250 = vector.shape_cast %249 : vector<6xf32> to vector<6x1xf32>
    %c4_i32 = arith.constant 4 : i32
    %251 = vector.broadcast %c4_i32 : i32 to vector<6x9xi32>
    %252 = arith.cmpi eq, %204, %251 : vector<6x9xi32>
    %253 = vector.shape_cast %250 : vector<6x1xf32> to vector<6x1xf32>
    %254 = vector.broadcast %253 : vector<6x1xf32> to vector<6x9xf32>
    %255 = arith.select %252, %254, %245 : vector<6x9xi1>, vector<6x9xf32>
    %c5 = arith.constant 5 : index
    %c0_95 = arith.constant 0 : index
    %c0_96 = arith.constant 0 : index
    %256 = vector.load %arg8[%c5, %c0_95, %c0_96] : memref<9x6x32xf32, #tpu.memory_space<vmem>>, vector<1x6x32xf32>
    %257 = vector.shape_cast %256 : vector<1x6x32xf32> to vector<6x32xf32>
    %258 = arith.mulf %257, %203 : vector<6x32xf32>
    %cst_97 = arith.constant dense<0.000000e+00> : vector<6xf32>
    %259 = vector.multi_reduction <add>, %258, %cst_97 [1] : vector<6x32xf32> to vector<6xf32>
    %260 = vector.shape_cast %259 : vector<6xf32> to vector<6x1xf32>
    %c5_i32 = arith.constant 5 : i32
    %261 = vector.broadcast %c5_i32 : i32 to vector<6x9xi32>
    %262 = arith.cmpi eq, %204, %261 : vector<6x9xi32>
    %263 = vector.shape_cast %260 : vector<6x1xf32> to vector<6x1xf32>
    %264 = vector.broadcast %263 : vector<6x1xf32> to vector<6x9xf32>
    %265 = arith.select %262, %264, %255 : vector<6x9xi1>, vector<6x9xf32>
    %c6 = arith.constant 6 : index
    %c0_98 = arith.constant 0 : index
    %c0_99 = arith.constant 0 : index
    %266 = vector.load %arg8[%c6, %c0_98, %c0_99] : memref<9x6x32xf32, #tpu.memory_space<vmem>>, vector<1x6x32xf32>
    %267 = vector.shape_cast %266 : vector<1x6x32xf32> to vector<6x32xf32>
    %268 = arith.mulf %267, %203 : vector<6x32xf32>
    %cst_100 = arith.constant dense<0.000000e+00> : vector<6xf32>
    %269 = vector.multi_reduction <add>, %268, %cst_100 [1] : vector<6x32xf32> to vector<6xf32>
    %270 = vector.shape_cast %269 : vector<6xf32> to vector<6x1xf32>
    %c6_i32 = arith.constant 6 : i32
    %271 = vector.broadcast %c6_i32 : i32 to vector<6x9xi32>
    %272 = arith.cmpi eq, %204, %271 : vector<6x9xi32>
    %273 = vector.shape_cast %270 : vector<6x1xf32> to vector<6x1xf32>
    %274 = vector.broadcast %273 : vector<6x1xf32> to vector<6x9xf32>
    %275 = arith.select %272, %274, %265 : vector<6x9xi1>, vector<6x9xf32>
    %c7 = arith.constant 7 : index
    %c0_101 = arith.constant 0 : index
    %c0_102 = arith.constant 0 : index
    %276 = vector.load %arg8[%c7, %c0_101, %c0_102] : memref<9x6x32xf32, #tpu.memory_space<vmem>>, vector<1x6x32xf32>
    %277 = vector.shape_cast %276 : vector<1x6x32xf32> to vector<6x32xf32>
    %278 = arith.mulf %277, %203 : vector<6x32xf32>
    %cst_103 = arith.constant dense<0.000000e+00> : vector<6xf32>
    %279 = vector.multi_reduction <add>, %278, %cst_103 [1] : vector<6x32xf32> to vector<6xf32>
    %280 = vector.shape_cast %279 : vector<6xf32> to vector<6x1xf32>
    %c7_i32 = arith.constant 7 : i32
    %281 = vector.broadcast %c7_i32 : i32 to vector<6x9xi32>
    %282 = arith.cmpi eq, %204, %281 : vector<6x9xi32>
    %283 = vector.shape_cast %280 : vector<6x1xf32> to vector<6x1xf32>
    %284 = vector.broadcast %283 : vector<6x1xf32> to vector<6x9xf32>
    %285 = arith.select %282, %284, %275 : vector<6x9xi1>, vector<6x9xf32>
    %c8 = arith.constant 8 : index
    %c0_104 = arith.constant 0 : index
    %c0_105 = arith.constant 0 : index
    %286 = vector.load %arg8[%c8, %c0_104, %c0_105] : memref<9x6x32xf32, #tpu.memory_space<vmem>>, vector<1x6x32xf32>
    %287 = vector.shape_cast %286 : vector<1x6x32xf32> to vector<6x32xf32>
    %288 = arith.mulf %287, %203 : vector<6x32xf32>
    %cst_106 = arith.constant dense<0.000000e+00> : vector<6xf32>
    %289 = vector.multi_reduction <add>, %288, %cst_106 [1] : vector<6x32xf32> to vector<6xf32>
    %290 = vector.shape_cast %289 : vector<6xf32> to vector<6x1xf32>
    %c8_i32 = arith.constant 8 : i32
    %291 = vector.broadcast %c8_i32 : i32 to vector<6x9xi32>
    %292 = arith.cmpi eq, %204, %291 : vector<6x9xi32>
    %293 = vector.shape_cast %290 : vector<6x1xf32> to vector<6x1xf32>
    %294 = vector.broadcast %293 : vector<6x1xf32> to vector<6x9xf32>
    %295 = arith.select %292, %294, %285 : vector<6x9xi1>, vector<6x9xf32>
    %c0_107 = arith.constant 0 : index
    %c0_108 = arith.constant 0 : index
    %296 = vector.load %arg9[%c0_107, %c0_108] : memref<6x9xf32, #tpu.memory_space<vmem>>, vector<6x9xf32>
    tpu.vector_store %arg9[%c0_107, %c0_108], %295 {strides = array<i32>} : memref<6x9xf32, #tpu.memory_space<vmem>>, vector<6x9xf32>,
    %cst_109 = arith.constant dense<0xFF800000> : vector<6xf32>
    %297 = vector.multi_reduction <maximumf>, %295, %cst_109 [1] : vector<6x9xf32> to vector<6xf32>
    %298 = vector.shape_cast %297 : vector<6xf32> to vector<6x1xf32>
    %299 = vector.broadcast %298 : vector<6x1xf32> to vector<6x9xf32>
    %300 = arith.subf %295, %299 : vector<6x9xf32>
    %301 = math.exp %300 : vector<6x9xf32>
    %cst_110 = arith.constant dense<0.000000e+00> : vector<6xf32>
    %302 = vector.multi_reduction <add>, %301, %cst_110 [1] : vector<6x9xf32> to vector<6xf32>
    %303 = vector.shape_cast %302 : vector<6xf32> to vector<6x1xf32>
    %304 = math.log %303 : vector<6x1xf32>
    %305 = arith.addf %298, %304 : vector<6x1xf32>
    %306 = vector.extract_strided_slice %295 {offsets = [0, 0], sizes = [6, 1], strides = [1, 1]} : vector<6x9xf32> to vector<6x1xf32>
    %307 = arith.subf %305, %306 : vector<6x1xf32>
    %308 = vector.shape_cast %307 : vector<6x1xf32> to vector<1x6x1xf32>
    %cst_111 = arith.constant dense<0.000000e+00> : vector<1xf32>
    %309 = vector.multi_reduction <add>, %308, %cst_111 [1, 2] : vector<1x6x1xf32> to vector<1xf32>
    %310 = vector.shape_cast %309 : vector<1xf32> to vector<1x1x1xf32>
    %311 = vector.extract %310[0, 0, 0] : f32 from vector<1x1x1xf32>
    %cst_112 = arith.constant 6.000000e+00 : f32
    %312 = arith.divf %311, %cst_112 : f32
    %313 = vector.broadcast %312 : f32 to vector<1x1xf32>
    %c0_113 = arith.constant 0 : index
    %c0_114 = arith.constant 0 : index
    %314 = vector.load %arg10[%c0_113, %c0_114] : memref<1x1xf32, #tpu.memory_space<vmem>>, vector<1x1xf32>
    tpu.vector_store %arg10[%c0_113, %c0_114], %313 {strides = array<i32>} : memref<1x1xf32, #tpu.memory_space<vmem>>, vector<1x1xf32>,
    return
  }
}

</mosaic_0001>

<bundles_post_ra>
// kernel: device_forward.1
= control target key start
LH: loop header
LB: loop body
LE: loop exit
PB: predicated region body
PF: predicated region fallthrough
CT: control target
= control target key end

     0   :  { %16 = vsyncpa [#allocation3], 0  ;;  %s4721_s0 = inlined_call_operand.vmem [shape: bf16[4,32,32], index: 0, kind: input, shape index: {}]   ;;  %s4722_s1 = inlined_call_operand.vmem [shape: f32[4,32,1], index: 1, kind: input, shape index: {}]   ;;  %s4723_s2 = inlined_call_operand.vmem [shape: f32[32,128], index: 2, kind: input, shape index: {}]   ;;  %s4724_s3 = inlined_call_operand.hbm [shape: f32[32,128], index: 3, kind: input, shape index: {}]   ;;  %s4725_s4 = inlined_call_operand.hbm [shape: bf16[128,512], index: 4, kind: input, shape index: {}]   ;;  %s4726_s5 = inlined_call_operand.hbm [shape: bf16[128,512], index: 5, kind: input, shape index: {}]   ;;  %s4727_s6 = inlined_call_operand.vmem [shape: f32[1,512], index: 6, kind: input, shape index: {}]   ;;  %s4728_s7 = inlined_call_operand.vmem [shape: f32[4,6,32], index: 7, kind: input, shape index: {}]   ;;  %s4729_s8 = inlined_call_operand.vmem [shape: f32[9,6,32], index: 8, kind: input, shape index: {}]   ;;  %s4730_s9 = inlined_call_operand.hbm [shape: f32[6,9], index: 9, kind: output, shape index: {0}]   ;;  %s4731_s10 = inlined_call_operand.hbm [shape: f32[1,1], index: 10, kind: output, shape index: {1}]  }
   0x1   :  { %17 = vsyncpa [#allocation6], 0 }
   0x2   :  { %18 = vsyncpa [#allocation4], 0 }
   0x3   :  { %19 = vsyncpa [#allocation10], 0  ;;  %s3583_s13 = smov [#allocation5]  }
   0x4   :  { %s43_s14 = sshll.u32 %s3583_s13, 4  ;;  %s44_s14 = int_to_ptr.vmem [resolvable:$true] %s43_s14 }
   0x5   :  { %s3483_s15 = scalar_lea.vmem %s44_s14, 4096  ;;  %p3488_p1 = scmp.lt.s32.totalorder %s44_s14, %s44_s14 }
   0x6   :  { %p3484_p0 = scmp.ne.s32.totalorder %s44_s14, %s3483_s15  ;;  %p3489_p2 = scmp.lt.s32.totalorder %s3483_s15, %s3483_s15 }
   0x8   :  { %p3490_p3 = por %p3489_p2, %p3488_p1 }
   0xa   :  { %p3491_p4 = pnand %p3490_p3, %p3484_p0 }
   0xc   :  { %3494 = shalt.err (!%p3491_p4)
}
   0xd   :  { %s3584_s16 = smov 256   ;;  %s3585_s17 = smov 16  }
   0xe   :  { %49 = dma.hbm_to_vmem [thread:$0]  %s4725_s4, 4096, %s44_s14, [#allocation6], %s3584_s16, %s3584_s16, %s3585_s17  }
   0xf   :  { %s3586_s20 = smov [#allocation2]  }
  0x10   :  { %s31_s21 = sshll.u32 %s3586_s20, 4  ;;  %s32_s21 = int_to_ptr.vmem [resolvable:$true] %s31_s21 }
  0x11   :  { %s3503_s22 = scalar_lea.vmem %s32_s21, 512  ;;  %p3508_p6 = scmp.lt.s32.totalorder %s32_s21, %s32_s21 }
  0x12   :  { %p3504_p5 = scmp.ne.s32.totalorder %s32_s21, %s3503_s22  ;;  %p3509_p7 = scmp.lt.s32.totalorder %s3503_s22, %s3503_s22 }
  0x14   :  { %p3510_p8 = por %p3509_p7, %p3508_p6 }
  0x16   :  { %p3511_p9 = pnand %p3510_p8, %p3504_p5 }
  0x18   :  { %3514 = shalt.err (!%p3511_p9)
}
  0x19   :  { %s3587_s23 = smov 128   ;;  %s3588_s24 = smov 8  }
  0x1a   :  { %37 = dma.hbm_to_vmem [thread:$0]  %s4724_s3, 512, %s32_s21, [#allocation3], %s3587_s23, %s3587_s23, %s3588_s24  }
  0x1b   :  { %s3589_s27 = smov [#allocation7]  }
  0x1c   :  { %s55_s28 = sshll.u32 %s3589_s27, 4  ;;  %s56_s28 = int_to_ptr.vmem [resolvable:$true] %s55_s28 }
  0x1d   :  { %s3523_s4 = scalar_lea.vmem %s56_s28, 4096  ;;  %p3528_p11 = scmp.lt.s32.totalorder %s56_s28, %s56_s28 }
  0x1e   :  { %p3524_p10 = scmp.ne.s32.totalorder %s56_s28, %s3523_s4  ;;  %p3529_p12 = scmp.lt.s32.totalorder %s3523_s4, %s3523_s4 }
  0x20   :  { %p3530_p13 = por %p3529_p12, %p3528_p11 }
  0x22   :  { %p3531_p0 = pnand %p3530_p13, %p3524_p10 }
  0x24   :  { %3534 = shalt.err (!%p3531_p0)
}
  0x25   :  { %61 = dma.hbm_to_vmem [thread:$0]  %s4726_s5, 4096, %s56_s28, [#allocation6], %s3584_s16, %s3584_s16, %s3585_s17  }
  0x26   :  { %3575 = dma.done.wait [#allocation3], 512  }
  0x27   :  { %3576 = vsyncadd [#allocation3], 4294966784 }
  0x28   :  { %3577 = dma.done.wait [#allocation6], 8192  }
  0x29   :  { %3578 = vsyncadd [#allocation6], 4294959104  ;;  %v4732_v0 = vmov 0   ;;  %v80_v1 = vld [vmem:[%s4723_s2 + $0x10] sm:$0xff]  ;;  %v81_v2 = vld [vmem:[%s4723_s2 + $0x18] sm:$0xff]  ;;  %vm167_vm0 = vcmask 261120  }
  0x2a   :  { %417 = vmatprep.mubr.bf16.mxu1 %v4732_v0  ;;  %3043 = vset.pattern.permute.xlu0 %v4732_v0  ;;  %v78_v3 = vld [vmem:[%s4723_s2] sm:$0xff]  ;;  %v3671_v4 = vpack.c.bf16 %v81_v2, %v80_v1  ;;  %v79_v5 = vld [vmem:[%s4723_s2 + $0x8] sm:$0xff] }
  0x2b   :  { %3044 = vset.pattern.permute.xlu1 %v4732_v0  ;;  %v3676_v6 = vpack.c.bf16 %v79_v5, %v78_v3  ;;  %v3045_v7 = vld [vmem:[%s4721_s0] sm:$0xff]   ;;  %v3046_v10 = vld [vmem:[%s4721_s0 + $0x8] sm:$0xff]  }
  0x2c   :  { %2942 = vmatprep.subr.bf16.mxu0 %v3671_v4  ;;  %2946 = vmatprep.mubr.msk.bf16.mxu0 %vm167_vm0, %v3045_v7  ;;  %v3684_v8 = vld [vmem:[#allocation7 + $0xe4] ss:$16 sps:$4 sm:$0xff]   ;;  %v3686_v9 = vld [vmem:[#allocation7 + $0xe0] ss:$16 sps:$4 sm:$0xff]   ;;  %v3053_v12 = vld [vmem:[#allocation7 + $0xec] ss:$16 sps:$4 sm:$0xff]  }
  0x2d   :  { %2943 = vmatpush3.bf16.msra.mxu0 %v3671_v4  ;;  %v3692_v11 = vld [vmem:[#allocation7 + $0xc4] ss:$16 sps:$4 sm:$0xff]   ;;  %385 = vmatprep.subr.bf16.mxu1 %v3684_v8  ;;  %v3696_v13 = vld [vmem:[#allocation7 + $0xc0] ss:$16 sps:$4 sm:$0xff]   ;;  %v3055_v14 = vld [vmem:[#allocation7 + $0xe8] ss:$16 sps:$4 sm:$0xff]  }
  0x2e   :  { %2944 = vmatprep.subr.bf16.mxu0 %v3676_v6  ;;  %386 = vmatpush1.bf16.msra.mxu1 %v3686_v9  ;;  %v3700_v15 = vld [vmem:[#allocation7 + $0xa4] ss:$16 sps:$4 sm:$0xff]   ;;  %v3702_v16 = vld [vmem:[#allocation7 + $0xcc] ss:$16 sps:$4 sm:$0xff]   ;;  %v3706_v17 = vld [vmem:[#allocation7 + $0xa0] ss:$16 sps:$4 sm:$0xff]  }
  0x2f   :  { %387 = vmatprep.subr.bf16.mxu1 %v3692_v11  ;;  %v3709_v18 = vld [vmem:[#allocation7 + $0xc8] ss:$16 sps:$4 sm:$0xff]   ;;  %v3711_v19 = vld [vmem:[#allocation7 + $0x84] ss:$16 sps:$4 sm:$0xff]   ;;  %v3714_v20 = vld [vmem:[#allocation7 + $0xac] ss:$16 sps:$4 sm:$0xff]  }
  0x30   :  { %v3718_v21 = vld [vmem:[#allocation7 + $0x80] ss:$16 sps:$4 sm:$0xff]   ;;  %v3722_v22 = vld [vmem:[#allocation7 + $0xa8] ss:$16 sps:$4 sm:$0xff]   ;;  %v3724_v23 = vld [vmem:[#allocation7 + $0x64] ss:$16 sps:$4 sm:$0xff]  }
  0x31   :  { %2945 = vmatpush3.bf16.msra.mxu0 %v3676_v6  ;;  %v3727_v24 = vld [vmem:[#allocation7 + $0x8c] ss:$16 sps:$4 sm:$0xff]   ;;  %v3730_v25 = vld [vmem:[#allocation7 + $0x60] ss:$16 sps:$4 sm:$0xff]   ;;  %v3734_v26 = vld [vmem:[#allocation7 + $0x88] ss:$16 sps:$4 sm:$0xff]  }
  0x32   :  { %438 = vmatprep.subr.bf16.mxu0 %v3053_v12  ;;  %388 = vmatpush1.bf16.msra.mxu1 %v3696_v13  ;;  %4812 = vst [vmem:[#allocation15_spill] sm:$0xff] %v3734_v26  ;;  %v3736_v27 = vld [vmem:[#allocation7 + $0x44] ss:$16 sps:$4 sm:$0xff]   ;;  %v3739_v28 = vld [vmem:[#allocation7 + $0x6c] ss:$16 sps:$4 sm:$0xff]  }
  0x33   :  { %389 = vmatprep.subr.bf16.mxu1 %v3700_v15  ;;  %4813 = vst [vmem:[#allocation16_spill] sm:$0xff] %v3739_v28  ;;  %v3742_v29 = vld [vmem:[#allocation7 + $0x40] ss:$16 sps:$4 sm:$0xff]   ;;  %v3746_v30 = vld [vmem:[#allocation7 + $0x68] ss:$16 sps:$4 sm:$0xff]  }
  0x34   :  { %2947 = vmatmul.mubr.msk.bf16.vlgmr.msra.gmra.mxu0 %vm167_vm0, %v3046_v10  ;;  %4814 = vst [vmem:[#allocation17_spill] sm:$0xff] %v3746_v30  ;;  %v3748_v31 = vld [vmem:[#allocation7 + $0x24] ss:$16 sps:$4 sm:$0xff]   ;;  %v3751_v32 = vld [vmem:[#allocation7 + $0x4c] ss:$16 sps:$4 sm:$0xff]  }
  0x35   :  { %439 = vmatpush1.bf16.msra.mxu0 %v3055_v14  ;;  %470 = vmatprep.mubr.bf16.mxu0 %v4732_v0  ;;  %4815 = vst [vmem:[#allocation18_spill] sm:$0xff] %v3751_v32  ;;  %v3753_v33 = vld [vmem:[#allocation7 + $0x20] ss:$16 sps:$4 sm:$0xff]   ;;  %v3756_v34 = vld [vmem:[#allocation7 + $0x48] ss:$16 sps:$4 sm:$0xff]  }
  0x36   :  { %440 = vmatprep.subr.bf16.mxu0 %v3702_v16  ;;  %390 = vmatpush1.bf16.msra.mxu1 %v3706_v17  ;;  %4816 = vst [vmem:[#allocation19_spill] sm:$0xff] %v3756_v34  ;;  %v3760_v35 = vld [vmem:[#allocation7 + $0x4] ss:$16 sps:$4 sm:$0xff]   ;;  %v3763_v36 = vld [vmem:[#allocation7 + $0x2c] ss:$16 sps:$4 sm:$0xff]  }
  0x37   :  { %391 = vmatprep.subr.bf16.mxu1 %v3711_v19  ;;  %4817 = vst [vmem:[#allocation20_spill] sm:$0xff] %v3763_v36  ;;  %v3766_v37 = vld [vmem:[#allocation7] ss:$16 sps:$4 sm:$0xff]   ;;  %v3770_v38 = vld [vmem:[#allocation7 + $0x28] ss:$16 sps:$4 sm:$0xff]  }
  0x38   :  { %4818 = vst [vmem:[#allocation21_spill] sm:$0xff] %v3770_v38  ;;  %v3772_v39 = vld [vmem:[#allocation5 + $0xe4] ss:$16 sps:$4 sm:$0xff]   ;;  %v3775_v40 = vld [vmem:[#allocation7 + $0xc] ss:$16 sps:$4 sm:$0xff]  }
  0x39   :  { %441 = vmatpush1.bf16.msra.mxu0 %v3709_v18  ;;  %4819 = vst [vmem:[#allocation22_spill] sm:$0xff] %v3775_v40  ;;  %v3777_v41 = vld [vmem:[#allocation7 + $0x8] ss:$16 sps:$4 sm:$0xff]   ;;  %v3780_v42 = vld [vmem:[#allocation5 + $0xe0] ss:$16 sps:$4 sm:$0xff]  }
  0x3a   :  { %442 = vmatprep.subr.bf16.mxu0 %v3714_v20  ;;  %392 = vmatpush1.bf16.msra.mxu1 %v3718_v21  ;;  %4820 = vst [vmem:[#allocation23_spill] sm:$0xff] %v3777_v41  ;;  %v3784_v43 = vld [vmem:[#allocation5 + $0xc4] ss:$16 sps:$4 sm:$0xff]   ;;  %v3787_v44 = vld [vmem:[#allocation5 + $0xec] ss:$16 sps:$4 sm:$0xff]  }
  0x3b   :  { %393 = vmatprep.subr.bf16.mxu1 %v3724_v23  ;;  %4821 = vst [vmem:[#allocation24_spill] sm:$0xff] %v3787_v44  ;;  %v3790_v45 = vld [vmem:[#allocation5 + $0xe8] ss:$16 sps:$4 sm:$0xff]   ;;  %v3793_v46 = vld [vmem:[#allocation5 + $0xc0] ss:$16 sps:$4 sm:$0xff]  }
  0x3c   :  { %4822 = vst [vmem:[#allocation25_spill] sm:$0xff] %v3790_v45  ;;  %v3798_v47 = vld [vmem:[#allocation5 + $0xcc] ss:$16 sps:$4 sm:$0xff]   ;;  %v3800_v48 = vld [vmem:[#allocation5 + $0xa4] ss:$16 sps:$4 sm:$0xff]  }
  0x3d   :  { %443 = vmatpush1.bf16.msra.mxu0 %v3722_v22  ;;  %4823 = vst [vmem:[#allocation26_spill] sm:$0xff] %v3798_v47  ;;  %v3803_v49 = vld [vmem:[#allocation5 + $0xa0] ss:$16 sps:$4 sm:$0xff]   ;;  %v3805_v50 = vld [vmem:[#allocation5 + $0xc8] ss:$16 sps:$4 sm:$0xff]  }
  0x3e   :  { %444 = vmatprep.subr.bf16.mxu0 %v3727_v24  ;;  %394 = vmatpush1.bf16.msra.mxu1 %v3730_v25  ;;  %4824 = vst [vmem:[#allocation27_spill] sm:$0xff] %v3805_v50  ;;  %v3807_v51 = vld [vmem:[#allocation5 + $0x84] ss:$16 sps:$4 sm:$0xff]   ;;  %v3811_v52 = vld [vmem:[#allocation5 + $0xac] ss:$16 sps:$4 sm:$0xff]  }
  0x3f   :  { %395 = vmatprep.subr.bf16.mxu1 %v3736_v27  ;;  %4825 = vst [vmem:[#allocation28_spill] sm:$0xff] %v3811_v52  ;;  %v3819_v53 = vld [vmem:[#allocation5 + $0x80] ss:$16 sps:$4 sm:$0xff]   ;;  %v3823_v54 = vld [vmem:[#allocation5 + $0xa8] ss:$16 sps:$4 sm:$0xff]  }
  0x40   :  { %4826 = vst [vmem:[#allocation29_spill] sm:$0xff] %v3823_v54  ;;  %v3826_v55 = vld [vmem:[#allocation5 + $0x64] ss:$16 sps:$4 sm:$0xff]   ;;  %v3829_v56 = vld [vmem:[#allocation5 + $0x8c] ss:$16 sps:$4 sm:$0xff]  }
  0x41   :  { %445 = vmatpush1.bf16.msra.mxu0 %v3734_v26  ;;  %4827 = vst [vmem:[#allocation30_spill] sm:$0xff] %v3829_v56  ;;  %v3832_v57 = vld [vmem:[#allocation5 + $0x60] ss:$16 sps:$4 sm:$0xff]   ;;  %v3836_v58 = vld [vmem:[#allocation5 + $0x88] ss:$16 sps:$4 sm:$0xff]  }
  0x42   :  { %446 = vmatprep.subr.bf16.mxu0 %v3739_v28  ;;  %396 = vmatpush1.bf16.msra.mxu1 %v3742_v29  ;;  %4828 = vst [vmem:[#allocation31_spill] sm:$0xff] %v3836_v58  ;;  %v3839_v59 = vld [vmem:[#allocation5 + $0x44] ss:$16 sps:$4 sm:$0xff]   ;;  %v3842_v60 = vld [vmem:[#allocation5 + $0x6c] ss:$16 sps:$4 sm:$0xff]  }
  0x43   :  { %397 = vmatprep.subr.bf16.mxu1 %v3748_v31  ;;  %4829 = vst [vmem:[#allocation32_spill] sm:$0xff] %v3842_v60  ;;  %v3846_v61 = vld [vmem:[#allocation5 + $0x40] ss:$16 sps:$4 sm:$0xff]   ;;  %v3849_v62 = vld [vmem:[#allocation5 + $0x68] ss:$16 sps:$4 sm:$0xff]  }
  0x44   :  { %4830 = vst [vmem:[#allocation33_spill] sm:$0xff] %v3849_v62  ;;  %v3853_v63 = vld [vmem:[#allocation5 + $0x4c] ss:$16 sps:$4 sm:$0xff]   ;;  %v3857_v1 = vld [vmem:[#allocation5 + $0x48] ss:$16 sps:$4 sm:$0xff]   ;;  %v892_v14 = vld [vmem:[%s4722_s1 + $0x10] sm:$0xff] }
  0x45   :  { %447 = vmatpush1.bf16.msra.mxu0 %v3746_v30  ;;  %4831 = vst [vmem:[#allocation34_spill] sm:$0xff] %v3853_v63  ;;  %4832 = vst [vmem:[#allocation35_spill] sm:$0xff] %v3857_v1  ;;  %v3861_v2 = vld [vmem:[#allocation5 + $0x24] ss:$16 sps:$4 sm:$0xff]   ;;  %v3863_v3 = vld [vmem:[#allocation5 + $0x2c] ss:$16 sps:$4 sm:$0xff]  }
  0x46   :  { %448 = vmatprep.subr.bf16.mxu0 %v3751_v32  ;;  %398 = vmatpush1.bf16.msra.mxu1 %v3753_v33  ;;  %4833 = vst [vmem:[#allocation36_spill] sm:$0xff] %v3863_v3  ;;  %v3867_v5 = vld [vmem:[#allocation5 + $0x28] ss:$16 sps:$4 sm:$0xff]   ;;  %v3875_v7 = vld [vmem:[#allocation5 + $0xc] ss:$16 sps:$4 sm:$0xff]   ;;  %vm896_vm1 = vcmp.gt.f32.partialorder %v892_v14, 0.0 }
  0x47   :  { %399 = vmatprep.subr.bf16.mxu1 %v3760_v35  ;;  %4834 = vst [vmem:[#allocation37_spill] sm:$0xff] %v3867_v5  ;;  %4836 = vst [vmem:[#allocation39_spill] sm:$0xff] %v3875_v7  ;;  %v3877_v10 = vld [vmem:[#allocation5] ss:$16 sps:$4 sm:$0xff]   ;;  %v3879_v12 = vld [vmem:[#allocation5 + $0x8] ss:$16 sps:$4 sm:$0xff]  }
  0x48   :  { %4837 = vst [vmem:[#allocation40_spill] sm:$0xff] %v3877_v10  ;;  %4838 = vst [vmem:[#allocation41_spill] sm:$0xff] %v3879_v12  ;;  %v2834_v14 = vld [vmem:[%s4722_s1 + $0x20] sm:$0xff] }
  0x49   :  { %449 = vmatpush1.bf16.msra.mxu0 %v3756_v34  ;;  %vm1330_vm7 = vcmp.gt.f32.partialorder %v2834_v14, 0.0 }
  0x4a   :  { %450 = vmatprep.subr.bf16.mxu0 %v3763_v36  ;;  %400 = vmatpush1.bf16.msra.mxu1 %v3766_v37 }
  0x4b   :  { %651 = vmatprep.subr.bf16.mxu1 %v3772_v39 }
  0x4d   :  { %451 = vmatpush1.bf16.msra.mxu0 %v3770_v38  ;;  %418 = vmatmul.mubr.bf16.vlgmr.msra.gmra.mxu1 %v3676_v6 }
  0x4e   :  { %452 = vmatprep.subr.bf16.mxu0 %v3775_v40  ;;  %652 = vmatpush1.bf16.msra.mxu1 %v3780_v42 }
  0x4f   :  { %427 = vmatprep.mubr.bf16.mxu1 %v4732_v0  ;;  %653 = vmatprep.subr.bf16.mxu1 %v3784_v43 }
  0x51   :  { %453 = vmatpush1.bf16.msra.mxu0 %v3777_v41 }
  0x52   :  { %704 = vmatprep.subr.bf16.mxu0 %v3787_v44  ;;  %654 = vmatpush1.bf16.msra.mxu1 %v3793_v46 }
  0x53   :  { %655 = vmatprep.subr.bf16.mxu1 %v3800_v48 }
  0x54   :  { %471 = vmatmul.mubr.bf16.vlgmr.msra.gmra.mxu0 %v3676_v6  ;;  %v3873_v6 = vld [vmem:[#allocation5 + $0x4] ss:$16 sps:$4 sm:$0xff]  }
  0x55   :  { %705 = vmatpush1.bf16.msra.mxu0 %v3790_v45  ;;  %480 = vmatprep.mubr.bf16.mxu0 %v4732_v0  ;;  %4835 = vst [vmem:[#allocation38_spill] sm:$0xff] %v3873_v6 }
  0x56   :  { %706 = vmatprep.subr.bf16.mxu0 %v3798_v47  ;;  %428 = vmatmul.mubr.bf16.gmra.mxu1 %v3671_v4 }
  0x57   :  { %656 = vmatpush1.bf16.msra.mxu1 %v3803_v49  ;;  %683 = vmatprep.mubr.bf16.mxu1 %v4732_v0 }
  0x58   :  { %657 = vmatprep.subr.bf16.mxu1 %v3807_v51 }
  0x59   :  { %707 = vmatpush1.bf16.msra.mxu0 %v3805_v50 }
  0x5a   :  { %708 = vmatprep.subr.bf16.mxu0 %v3811_v52 }
  0x5b   :  { %658 = vmatpush1.bf16.msra.mxu1 %v3819_v53 }
  0x5c   :  { %481 = vmatmul.mubr.bf16.gmra.mxu0 %v3671_v4  ;;  %659 = vmatprep.subr.bf16.mxu1 %v3826_v55  ;;  %v3865_v4 = vld [vmem:[#allocation5 + $0x20] ss:$16 sps:$4 sm:$0xff]  }
  0x5d   :  { %709 = vmatpush1.bf16.msra.mxu0 %v3823_v54  ;;  %736 = vmatprep.mubr.bf16.mxu0 %v4732_v0  ;;  %v893_v0 = vld [vmem:[%s4722_s1 + $0x18] sm:$0xff] }
  0x5e   :  { %710 = vmatprep.subr.bf16.mxu0 %v3829_v56  ;;  %vm897_vm2 = vcmp.gt.f32.partialorder %v893_v0, 0.0 }
  0x5f   :  { %660 = vmatpush1.bf16.msra.mxu1 %v3832_v57 }
  0x60   :  { %661 = vmatprep.subr.bf16.mxu1 %v3839_v59 }
  0x61   :  { %711 = vmatpush1.bf16.msra.mxu0 %v3836_v58 }
  0x62   :  { %712 = vmatprep.subr.bf16.mxu0 %v3842_v60 }
  0x63   :  { %662 = vmatpush1.bf16.msra.mxu1 %v3846_v61 }
  0x64   :  { %663 = vmatprep.subr.bf16.mxu1 %v3861_v2 }
  0x65   :  { %713 = vmatpush1.bf16.msra.mxu0 %v3849_v62  ;;  %v2835_v62 = vld [vmem:[%s4722_s1 + $0x28] sm:$0xff] }
  0x66   :  { %714 = vmatprep.subr.bf16.mxu0 %v3853_v63  ;;  %v2837_v63 = vld [vmem:[%s4722_s1 + $0x38] sm:$0xff]  ;;  %vm1331_vm8 = vcmp.gt.f32.partialorder %v2835_v62, 0.0  ;;  %v2861_v62 = vld [vmem:[%s4722_s1 + $0x40] sm:$0xff] }
  0x67   :  { %664 = vmatpush1.bf16.msra.mxu1 %v3865_v4  ;;  %vm1333_vm6 = vcmp.gt.f32.partialorder %v2837_v63, 0.0  ;;  %v2863_v63 = vld [vmem:[%s4722_s1 + $0x50] sm:$0xff]  ;;  %vm1913_vm11 = vcmp.gt.f32.partialorder %v2861_v62, 0.0  ;;  %v2887_v62 = vld [vmem:[%s4722_s1 + $0x60] sm:$0xff] }
  0x68   :  { %665 = vmatprep.subr.bf16.mxu1 %v3873_v6  ;;  %vm1915_vm9 = vcmp.gt.f32.partialorder %v2863_v63, 0.0  ;;  %v2889_v63 = vld [vmem:[%s4722_s1 + $0x70] sm:$0xff] }
  0x69   :  { %715 = vmatpush1.bf16.msra.mxu0 %v3857_v1  ;;  %v2836_v1 = vld [vmem:[%s4722_s1 + $0x30] sm:$0xff]  ;;  %vm2426_vm14 = vcmp.gt.f32.partialorder %v2889_v63, 0.0 }
  0x6a   :  { %716 = vmatprep.subr.bf16.mxu0 %v3863_v3  ;;  %vm1332_vm5 = vcmp.gt.f32.partialorder %v2836_v1, 0.0  ;;  %v2864_v1 = vld [vmem:[%s4722_s1 + $0x58] sm:$0xff] }
  0x6b   :  { %666 = vmatpush1.bf16.msra.mxu1 %v3877_v10  ;;  %vm1916_vm10 = vcmp.gt.f32.partialorder %v2864_v1, 0.0 }
  0x6d   :  { %717 = vmatpush1.bf16.msra.mxu0 %v3867_v5  ;;  %v890_v5 = vld [vmem:[%s4722_s1] sm:$0xff] }
  0x6e   :  { %718 = vmatprep.subr.bf16.mxu0 %v3875_v7  ;;  %vm894_vm3 = vcmp.gt.f32.partialorder %v890_v5, 0.0 }
  0x71   :  { %719 = vmatpush1.bf16.msra.mxu0 %v3879_v12  ;;  %v891_v12 = vld [vmem:[%s4722_s1 + $0x8] sm:$0xff] }
  0x72   :  { %1001 = vmatprep.subr.bf16.mxu0 %v3684_v8  ;;  %v4839_v8 = vmov 0   ;;  %vm895_vm4 = vcmp.gt.f32.partialorder %v891_v12, 0.0 }
  0x73   :  { %v900_v7 = vsel %vm896_vm1, 1, %v4839_v8  ;;  %v898_v3 = vsel %vm894_vm3, 1, %v4839_v8  ;;  %v901_v0 = vsel %vm897_vm2, 1, %v4839_v8  ;;  %v899_v5 = vsel %vm895_vm4, 1, %v4839_v8 }
  0x74   :  { %909 = vperm.xlu0 %3043, %v900_v7   ;;  %903 = vperm.xlu1 %3044, %v898_v3   ;;  %v1336_v7 = vsel %vm1332_vm5, 1, %v4839_v8  ;;  %v1337_v3 = vsel %vm1333_vm6, 1, %v4839_v8  ;;  %v1334_v12 = vsel %vm1330_vm7, 1, %v4839_v8  ;;  %v1919_v14 = vsel %vm1915_vm9, 1, %v4839_v8 }
  0x75   :  { %v1917_v1 = vsel %vm1913_vm11, 1, %v4839_v8  ;;  %vm2424_vm1 = vcmp.gt.f32.partialorder %v2887_v62, 0.0  ;;  %vm3592_vm6 = vmmov 0  }
  0x78   :  { %912 = vperm.xlu0 %3043, %v901_v0   ;;  %906 = vperm.xlu1 %3044, %v899_v5   ;;  %v1335_v0 = vsel %vm1331_vm8, 1, %v4839_v8  ;;  %v2862_v5 = vld [vmem:[%s4722_s1 + $0x48] sm:$0xff] }
  0x79   :  { %vm1914_vm12 = vcmp.gt.f32.partialorder %v2862_v5, 0.0 }
  0x7c   :  { %1345 = vperm.xlu0 %3043, %v1336_v7   ;;  %1348 = vperm.xlu1 %3044, %v1337_v3   ;;  %v1920_v7 = vsel %vm1916_vm10, 1, %v4839_v8  ;;  %v2890_v3 = vld [vmem:[%s4722_s1 + $0x78] sm:$0xff] }
  0x7d   :  { %vm2427_vm13 = vcmp.gt.f32.partialorder %v2890_v3, 0.0  ;;  %v2428_v3 = vsel %vm2424_vm1, 1, %v4839_v8 }
  0x7e   :  { %v2431_v5 = vsel %vm2427_vm13, 1, %v4839_v8 }
  0x80   :  { %1339 = vperm.xlu0 %3043, %v1334_v12   ;;  %1342 = vperm.xlu1 %3044, %v1335_v0   ;;  %v1918_v12 = vsel %vm1914_vm12, 1, %v4839_v8  ;;  %v2888_v0 = vld [vmem:[%s4722_s1 + $0x68] sm:$0xff] }
  0x81   :  { %vm2425_vm15 = vcmp.gt.f32.partialorder %v2888_v0, 0.0 }
  0x84   :  { %1928 = vperm.xlu0 %3043, %v1919_v14   ;;  %1931 = vperm.xlu1 %3044, %v1920_v7   ;;  %v2430_v14 = vsel %vm2426_vm14, 1, %v4839_v8  ;;  %v2429_v7 = vsel %vm2425_vm15, 1, %v4839_v8 }
  0x88   :  { %1922 = vperm.xlu0 %3043, %v1917_v1   ;;  %1925 = vperm.xlu1 %3044, %v1918_v12  }
  0x8c   :  { %2442 = vperm.xlu0 %3043, %v2431_v5   ;;  %2439 = vperm.xlu1 %3044, %v2430_v14  }
  0x90   :  { %2436 = vperm.xlu0 %3043, %v2429_v7   ;;  %2433 = vperm.xlu1 %3044, %v2428_v3   ;;  %v150_v3 = vld [vmem:[%s4727_s6] sm:$0xf] }
  0xf4   :  { %v3950_v63 = vpop.f32.mrf.mxu0 }
  0xf6   :  { %v3952_v60 = vpop.f32.mrf.mxu0 }
  0xf8   :  { %v3954_v1 = vpop.f32.mrf.mxu0 }
  0xf9   :  { %v224_v62 = vpack.c.bf16 %v3954_v1, %v3950_v63 }
  0xfa   :  { %v3956_v12 = vpop.f32.mrf.mxu0 }
  0xfb   :  { %v223_v0 = vpack.c.bf16 %v3956_v12, %v3952_v60 }
  0xfd   :  { %684 = vmatmul.mubr.bf16.vlgmr.msra.gmra.mxu1 %v223_v0  ;;  %737 = vmatmul.mubr.bf16.vlgmr.msra.gmra.mxu0 %v223_v0 }
  0xfe   :  { %693 = vmatprep.mubr.bf16.mxu1 %v4839_v8  ;;  %746 = vmatprep.mubr.bf16.mxu0 %v4839_v8 }
  0xff   :  { %1002 = vmatpush1.bf16.msra.mxu0 %v3686_v9  ;;  %v3143_v9 = vld [vmem:[%s4721_s0 + $0x10] sm:$0xff]  }
 0x100   :  { %1003 = vmatprep.subr.bf16.mxu0 %v3692_v11 }
 0x103   :  { %1004 = vmatpush1.bf16.msra.mxu0 %v3696_v13 }
 0x104   :  { %1005 = vmatprep.subr.bf16.mxu0 %v3700_v15 }
 0x105   :  { %694 = vmatmul.mubr.bf16.gmra.mxu1 %v224_v62  ;;  %747 = vmatmul.mubr.bf16.gmra.mxu0 %v224_v62 }
 0x106   :  { %1033 = vmatprep.mubr.bf16.mxu0 %v4839_v8  ;;  %2954 = vmatprep.mubr.msk.bf16.mxu1 %vm167_vm0, %v3143_v9 }
 0x107   :  { %1006 = vmatpush1.bf16.msra.mxu0 %v3706_v17 }
 0x108   :  { %1007 = vmatprep.subr.bf16.mxu0 %v3711_v19 }
 0x10b   :  { %1008 = vmatpush1.bf16.msra.mxu0 %v3718_v21 }
 0x10c   :  { %1009 = vmatprep.subr.bf16.mxu0 %v3724_v23 }
 0x10d   :  { %v419_v13 = vpop.f32.mrf.mxu1 }
 0x10f   :  { %1010 = vmatpush1.bf16.msra.mxu0 %v3730_v25  ;;  %v421_v17 = vpop.f32.mrf.mxu1 }
 0x110   :  { %1011 = vmatprep.subr.bf16.mxu0 %v3736_v27 }
 0x111   :  { %v423_v21 = vpop.f32.mrf.mxu1 }
 0x113   :  { %1012 = vmatpush1.bf16.msra.mxu0 %v3742_v29  ;;  %v425_v25 = vpop.f32.mrf.mxu1 }
 0x114   :  { %1013 = vmatprep.subr.bf16.mxu0 %v3748_v31  ;;  %v472_v11 = vpop.f32.mrf.mxu0  ;;  %v4746_v31 = vlaneseq }
 0x116   :  { %v474_v15 = vpop.f32.mrf.mxu0  ;;  %v429_v29 = vpop.f32.mrf.mxu1 }
 0x117   :  { %1014 = vmatpush1.bf16.msra.mxu0 %v3753_v33 }
 0x118   :  { %1015 = vmatprep.subr.bf16.mxu0 %v3760_v35  ;;  %v3985_v19 = vpop.f32.mrf.mxu0  ;;  %v431_v35 = vpop.f32.mrf.mxu1 }
 0x11a   :  { %v478_v23 = vpop.f32.mrf.mxu0  ;;  %v433_v5 = vpop.f32.mrf.mxu1 }
 0x11b   :  { %1016 = vmatpush1.bf16.msra.mxu0 %v3766_v37  ;;  %v759_v37 = vshrl.u32 %v4746_v31, 7 }
 0x11c   :  { %1107 = vmatprep.subr.bf16.mxu0 %v3772_v39  ;;  %v3987_v27 = vpop.f32.mrf.mxu0  ;;  %v435_v62 = vpop.f32.mrf.mxu1 }
 0x11d   :  { %v760_v14 = vsub.s32 0, %v759_v37  ;;  %v764_v0 = vsub.s32 1, %v759_v37  ;;  %v772_v10 = vsub.s32 3, %v759_v37 }
 0x11e   :  { %v3989_v33 = vpop.f32.mrf.mxu0 }
 0x11f   :  { %v3999_v9 = vrot.slane %v150_v3, %v760_v14  ;;  %v4001_v52 = vrot.slane %v150_v3, %v764_v0 }
 0x120   :  { %v3992_v39 = vpop.f32.mrf.mxu0 }
 0x122   :  { %v3994_v7 = vpop.f32.mrf.mxu0 }
 0x1bd   :  { %v685_v58 = vpop.f32.mrf.mxu1  ;;  %v738_v56 = vpop.f32.mrf.mxu0 }
 0x1be   :  { %v686_v54 = vadd.f32 %v685_v58, %v419_v13 }
 0x1bf   :  { %v687_v31 = vpop.f32.mrf.mxu1  ;;  %v740_v50 = vpop.f32.mrf.mxu0 }
 0x1c0   :  { %v778_v47 = vadd.f32 %v3999_v9, %v686_v54  ;;  %v688_v45 = vadd.f32 %v687_v31, %v421_v17  ;;  %v768_v31 = vsub.s32 2, %v759_v37 }
 0x1c1   :  { %v689_v44 = vpop.f32.mrf.mxu1  ;;  %v742_v41 = vpop.f32.mrf.mxu0 }
 0x1c2   :  { %v2802_v40 = vmul.f32 -1.442695, %v778_v47  ;;  %v779_v38 = vadd.f32 %v4001_v52, %v688_v45  ;;  %v690_v36 = vadd.f32 %v689_v44, %v423_v21  ;;  %v741_v21 = vadd.f32 %v740_v50, %v474_v15 }
 0x1c3   :  { %v691_v34 = vpop.f32.mrf.mxu1  ;;  %v744_v32 = vpop.f32.mrf.mxu0  ;;  %v4010_v6 = vrot.slane %v150_v3, %v768_v31 }
 0x1c4   :  { %3149 = vpow2.f32 %v2802_v40  ;;  %v2806_v14 = vmul.f32 -1.442695, %v779_v38  ;;  %v692_v30 = vadd.f32 %v691_v34, %v425_v25  ;;  %v782_v58 = vadd.f32 %v3999_v9, %v690_v36 }
 0x1c5   :  { %v695_v13 = vpop.f32.mrf.mxu1  ;;  %v748_v0 = vpop.f32.mrf.mxu0  ;;  %v4008_v40 = vrot.slane %v150_v3, %v772_v10 }
 0x1c6   :  { %3151 = vpow2.f32 %v2806_v14  ;;  %v783_v54 = vadd.f32 %v4001_v52, %v692_v30  ;;  %v696_v17 = vadd.f32 %v695_v13, %v429_v29  ;;  %v2803_v28 = vmul.f32 -1.442695, %v782_v58 }
 0x1c7   :  { %v697_v47 = vpop.f32.mrf.mxu1  ;;  %v750_v26 = vpop.f32.mrf.mxu0  ;;  %v739_v14 = vadd.f32 %v738_v56, %v472_v11  ;;  %v745_v30 = vadd.f32 %v744_v32, %v478_v23  ;;  %v781_v10 = vadd.f32 %v4008_v40, %v741_v21  ;;  %v743_v11 = vadd.f32 %v742_v41, %v3985_v19 }
 0x1c8   :  { %v2807_v45 = vmul.f32 -1.442695, %v783_v54  ;;  %v786_v44 = vadd.f32 %v3999_v9, %v696_v17  ;;  %3153 = vpow2.f32 %v2803_v28  ;;  %v698_v34 = vadd.f32 %v697_v47, %v431_v35 }
 0x1c9   :  { %v699_v38 = vpop.f32.mrf.mxu1  ;;  %v752_v37 = vpop.f32.mrf.mxu0  ;;  %v785_v56 = vadd.f32 %v4008_v40, %v745_v30  ;;  %v751_v23 = vadd.f32 %v750_v26, %v3989_v33  ;;  %v2810_v17 = vmul.f32 -1.442695, %v781_v10 }
 0x1ca   :  { %3155 = vpow2.f32 %v2807_v45  ;;  %v2804_v36 = vmul.f32 -1.442695, %v786_v44  ;;  %v700_v25 = vadd.f32 %v699_v38, %v433_v5  ;;  %v787_v29 = vadd.f32 %v4001_v52, %v698_v34 }
 0x1cb   :  { %v701_v58 = vpop.f32.mrf.mxu1  ;;  %v780_v5 = vadd.f32 %v4010_v6, %v739_v14  ;;  %v754_v32 = vpop.f32.mrf.mxu0  ;;  %v2811_v45 = vmul.f32 -1.442695, %v785_v56  ;;  %v749_v44 = vadd.f32 %v748_v0, %v3987_v27  ;;  %v784_v34 = vadd.f32 %v4010_v6, %v743_v11 }
 0x1cc   :  { %3157 = vpow2.f32 %v2804_v36  ;;  %v790_v13 = vadd.f32 %v3999_v9, %v700_v25  ;;  %v702_v50 = vadd.f32 %v701_v58, %v435_v62  ;;  %v2808_v28 = vmul.f32 -1.442695, %v787_v29 }
 0x1cd   :  { %v755_v31 = vadd.f32 %v754_v32, %v3994_v7  ;;  %v789_v41 = vadd.f32 %v4008_v40, %v751_v23  ;;  %v788_v7 = vadd.f32 %v4010_v6, %v749_v44  ;;  %v753_v27 = vadd.f32 %v752_v37, %v3992_v39  ;;  %v4028_v37 = vpop.permute.xlu1 %903 }
 0x1ce   :  { %v2805_v15 = vmul.f32 -1.442695, %v790_v13  ;;  %v791_v35 = vadd.f32 %v4001_v52, %v702_v50  ;;  %3159 = vpow2.f32 %v2808_v28  ;;  %vm914_vm2 = vcmp.eq.s32.totalorder %v4028_v37, 1 }
 0x1cf   :  { %v793_v19 = vadd.f32 %v4008_v40, %v755_v31  ;;  %v2812_v25 = vmul.f32 -1.442695, %v789_v41  ;;  %v792_v58 = vadd.f32 %v4010_v6, %v753_v27 }
 0x1d0   :  { %v2809_v3 = vmul.f32 -1.442695, %v791_v35  ;;  %3161 = vpow2.f32 %v2805_v15 }
 0x1d1   :  { %v3150_v54 = vpop.eup %3149  ;;  %v2813_v30 = vmul.f32 -1.442695, %v793_v19 }
 0x1d2   :  { %v806_v62 = vadd.f32 1.0, %v3150_v54  ;;  %3163 = vpow2.f32 %v2809_v3 }
 0x1d3   :  { %v3152_v47 = vpop.eup %3151  ;;  %3165 = vtanh.f32 %v780_v5  ;;  %v82_v5 = vld [vmem:[#allocation2] sm:$0xff] }
 0x1d4   :  { %3167 = vrcp.f32 %v806_v62  ;;  %v830_v21 = vadd.f32 1.0, %v3152_v47 }
 0x1d5   :  { %3169 = vpow2.f32 %v2810_v17  ;;  %v3154_v26 = vpop.eup %3153  ;;  %v83_v17 = vld [vmem:[#allocation2 + $0x8] sm:$0xff] }
 0x1d6   :  { %3171 = vrcp.f32 %v830_v21  ;;  %v807_v38 = vadd.f32 1.0, %v3154_v26 }
 0x1d7   :  { %v3156_v33 = vpop.eup %3155  ;;  %3173 = vpow2.f32 %v2811_v45  ;;  %v907_v45 = vpop.permute.xlu1 %906 }
 0x1d8   :  { %3175 = vtanh.f32 %v784_v34  ;;  %v831_v36 = vadd.f32 1.0, %v3156_v33  ;;  %vm915_vm3 = vcmp.eq.s32.totalorder %v907_v45, 1 }
 0x1d9   :  { %v3158_v0 = vpop.eup %3157  ;;  %3177 = vrcp.f32 %v807_v38 }
 0x1da   :  { %3179 = vrcp.f32 %v831_v36  ;;  %v808_v14 = vadd.f32 1.0, %v3158_v0  ;;  %v84_v36 = vld [vmem:[#allocation2 + $0x10] sm:$0xff] }
 0x1db   :  { %3181 = vtanh.f32 %v788_v7  ;;  %v3160_v29 = vpop.eup %3159  ;;  %v910_v7 = vpop.permute.xlu0 %909 }
 0x1dc   :  { %3183 = vpow2.f32 %v2812_v25  ;;  %v832_v13 = vadd.f32 1.0, %v3160_v29  ;;  %vm916_vm4 = vcmp.eq.s32.totalorder %v910_v7, 1  ;;  %v4857_v7 = vld [vmem:[#allocation30_spill] sm:$0xff] }
 0x1dd   :  { %3185 = vrcp.f32 %v808_v14  ;;  %v3162_v50 = vpop.eup %3161 }
 0x1de   :  { %3187 = vpow2.f32 %v2813_v30  ;;  %v809_v28 = vadd.f32 1.0, %v3162_v50 }
 0x1df   :  { %v3164_v10 = vpop.eup %3163  ;;  %3189 = vrcp.f32 %v832_v13  ;;  %v85_v13 = vld [vmem:[#allocation2 + $0x18] sm:$0xff] }
 0x1e0   :  { %v3166_v15 = vpop.eup %3165  ;;  %3191 = vtanh.f32 %v792_v58  ;;  %v833_v39 = vadd.f32 1.0, %v3164_v10 }
 0x1e1   :  { %v3168_v35 = vpop.eup %3167  ;;  %3193 = vrcp.f32 %v809_v28 }
 0x1e2   :  { %v3170_v56 = vpop.eup %3169  ;;  %3195 = vrcp.f32 %v833_v39  ;;  %v874_v3 = vmul.f32 %v3168_v35, %v3166_v15  ;;  %v913_v35 = vpop.permute.xlu0 %912 }
 0x1e3   :  { %v3172_v32 = vpop.eup %3171  ;;  %v858_v31 = vadd.f32 1.0, %v3170_v56  ;;  %vm917_vm5 = vcmp.eq.s32.totalorder %v913_v35, 1 }
 0x1e4   :  { %v3174_v11 = vpop.eup %3173  ;;  %v870_v23 = vmul.f32 %v3172_v32, %v82_v5 }
 0x1e5   :  { %v3176_v54 = vpop.eup %3175  ;;  %v859_v21 = vadd.f32 1.0, %v3174_v11 }
 0x1e6   :  { %v3178_v62 = vpop.eup %3177  ;;  %v878_v47 = vadd.f32 %v874_v3, %v870_v23 }
 0x1e7   :  { %v3180_v44 = vpop.eup %3179  ;;  %v875_v19 = vmul.f32 %v3178_v62, %v3176_v54 }
 0x1e8   :  { %v3182_v34 = vpop.eup %3181  ;;  %3197 = vtanh.f32 %v878_v47  ;;  %v4033_v41 = vsel %vm914_vm2, %v878_v47, %v82_v5  ;;  %v871_v26 = vmul.f32 %v3180_v44, %v83_v17 }
 0x1e9   :  { %v3184_v33 = vpop.eup %3183  ;;  %3199 = vrcp.f32 %v858_v31 }
 0x1ea   :  { %v3186_v38 = vpop.eup %3185  ;;  %v879_v25 = vadd.f32 %v875_v19, %v871_v26  ;;  %3201 = vrcp.f32 %v859_v21  ;;  %v860_v10 = vadd.f32 1.0, %v3184_v33 }
 0x1eb   :  { %v3188_v27 = vpop.eup %3187  ;;  %v876_v58 = vmul.f32 %v3186_v38, %v3182_v34 }
 0x1ec   :  { %v3190_v0 = vpop.eup %3189  ;;  %3203 = vtanh.f32 %v879_v25  ;;  %v4036_v14 = vsel %vm915_vm3, %v879_v25, %v83_v17  ;;  %v861_v15 = vadd.f32 1.0, %v3188_v27  ;;  %v4858_v25 = vld [vmem:[#allocation31_spill] sm:$0xff]  ;;  %v4859_v27 = vld [vmem:[#allocation32_spill] sm:$0xff] }
 0x1ed   :  { %v3192_v30 = vpop.eup %3191  ;;  %v872_v29 = vmul.f32 %v3190_v0, %v84_v36  ;;  %v4860_v0 = vld [vmem:[#allocation33_spill] sm:$0xff] }
 0x1ee   :  { %v3194_v50 = vpop.eup %3193 }
 0x1ef   :  { %v3196_v28 = vpop.eup %3195  ;;  %v880_v39 = vadd.f32 %v876_v58, %v872_v29  ;;  %v877_v56 = vmul.f32 %v3194_v50, %v3192_v30  ;;  %v4861_v30 = vld [vmem:[#allocation34_spill] sm:$0xff]  ;;  %v4862_v29 = vld [vmem:[#allocation35_spill] sm:$0xff]  ;;  %v4863_v58 = vld [vmem:[#allocation36_spill] sm:$0xff] }
 0x1f0   :  { %v873_v5 = vmul.f32 %v3196_v28, %v85_v13  ;;  %v4865_v50 = vld [vmem:[#allocation39_spill] sm:$0xff] }
 0x1f1   :  { %3205 = vtanh.f32 %v880_v39  ;;  %v4039_v32 = vsel %vm916_vm4, %v880_v39, %v84_v36 }
 0x1f2   :  { %3207 = vrcp.f32 %v860_v10  ;;  %v881_v11 = vadd.f32 %v877_v56, %v873_v5  ;;  %v4866_v10 = vld [vmem:[#allocation41_spill] sm:$0xff] }
 0x1f3   :  { %3209 = vrcp.f32 %v861_v15 }
 0x1f4   :  { %3211 = vtanh.f32 %v881_v11  ;;  %v4042_v23 = vsel %vm917_vm5, %v881_v11, %v85_v13  ;;  %v4864_v13 = vld [vmem:[#allocation37_spill] sm:$0xff]  ;;  %v4762_v11 = vmov 0.0  }
 0x1f5   :  { %v3198_v3 = vpop.eup %3197 }
 0x1f6   :  { %v3200_v54 = vpop.eup %3199 }
 0x1f7   :  { %v3202_v17 = vpop.eup %3201  ;;  %v886_v62 = vmul.f32 %v3200_v54, %v3198_v3  ;;  %v3145_v3 = vld [vmem:[%s4721_s0 + $0x20] sm:$0xff]  }
 0x1f9   :  { %v3204_v31 = vpop.eup %3203  ;;  %v4047_v44 = vsel %vm914_vm2, %v886_v62, %v3952_v60 }
 0x1fa   :  { %v887_v47 = vmul.f32 %v3204_v31, %v3202_v17 }
 0x1fc   :  { %v4051_v21 = vsel %vm915_vm3, %v887_v47, %v3956_v12 }
 0x1fd   :  { %v932_v34 = vpack.c.bf16 %v4051_v21, %v4047_v44 }
 0x1fe   :  { %v3206_v26 = vpop.eup %3205 }
 0x1ff   :  { %v3208_v19 = vpop.eup %3207  ;;  %1034 = vmatmul.mubr.bf16.vlgmr.msra.gmra.mxu0 %v932_v34 }
 0x200   :  { %v3210_v33 = vpop.eup %3209  ;;  %v888_v38 = vmul.f32 %v3208_v19, %v3206_v26  ;;  %1043 = vmatprep.mubr.bf16.mxu0 %v4839_v8  ;;  %1108 = vmatpush1.bf16.msra.mxu0 %v3780_v42  ;;  %v3144_v42 = vld [vmem:[%s4721_s0 + $0x18] sm:$0xff]  }
 0x201   :  { %v3212_v36 = vpop.eup %3211  ;;  %1109 = vmatprep.subr.bf16.mxu0 %v3784_v43  ;;  %v4077_v43 = vld [vmem:[#allocation7 + $0xec] ss:$16 sps:$4 sm:$0xff]  }
 0x202   :  { %v889_v60 = vmul.f32 %v3212_v36, %v3210_v33  ;;  %v4060_v12 = vsel %vm916_vm4, %v888_v38, %v3950_v63  ;;  %v4855_v63 = vld [vmem:[#allocation28_spill] sm:$0xff]  ;;  %vm2602_vm4 = vcmask 259072  }
 0x204   :  { %v4064_v37 = vsel %vm917_vm5, %v889_v60, %v3954_v1  ;;  %1110 = vmatpush1.bf16.msra.mxu0 %v3793_v46  ;;  %v4082_v46 = vld [vmem:[#allocation7 + $0xe8] ss:$16 sps:$4 sm:$0xff]  }
 0x205   :  { %v933_v45 = vpack.c.bf16 %v4064_v37, %v4060_v12  ;;  %1111 = vmatprep.subr.bf16.mxu0 %v3800_v48  ;;  %v4840_v48 = vld [vmem:[#allocation38_spill] sm:$0xff]  ;;  %v4856_v1 = vld [vmem:[#allocation29_spill] sm:$0xff] }
 0x207   :  { %2950 = vmatprep.subr.bf16.mxu1 %v933_v45  ;;  %1044 = vmatmul.mubr.bf16.gmra.mxu0 %v933_v45 }
 0x208   :  { %2951 = vmatpush3.bf16.msra.mxu1 %v933_v45  ;;  %1112 = vmatpush1.bf16.msra.mxu0 %v3803_v49  ;;  %v4842_v49 = vld [vmem:[#allocation16_spill] sm:$0xff] }
 0x209   :  { %2952 = vmatprep.subr.bf16.mxu1 %v932_v34  ;;  %1113 = vmatprep.subr.bf16.mxu0 %v3807_v51  ;;  %v4843_v51 = vld [vmem:[#allocation40_spill] sm:$0xff] }
 0x20a   :  { %1139 = vmatprep.mubr.bf16.mxu0 %v4839_v8 }
 0x20c   :  { %2953 = vmatpush3.bf16.msra.mxu1 %v932_v34  ;;  %1114 = vmatpush1.bf16.msra.mxu0 %v3819_v53  ;;  %v4846_v53 = vld [vmem:[#allocation19_spill] sm:$0xff] }
 0x20d   :  { %1054 = vmatprep.subr.bf16.mxu1 %v4077_v43  ;;  %1115 = vmatprep.subr.bf16.mxu0 %v3826_v55  ;;  %v4847_v55 = vld [vmem:[#allocation20_spill] sm:$0xff] }
 0x20f   :  { %2955 = vmatmul.mubr.msk.bf16.vlgmr.msra.gmra.mxu1 %vm167_vm0, %v3144_v42 }
 0x210   :  { %1055 = vmatpush1.bf16.msra.mxu1 %v4082_v46  ;;  %1086 = vmatprep.mubr.bf16.mxu1 %v4839_v8 }
 0x211   :  { %1056 = vmatprep.subr.bf16.mxu1 %v3702_v16  ;;  %1116 = vmatpush1.bf16.msra.mxu0 %v3832_v57  ;;  %v4841_v16 = vld [vmem:[#allocation15_spill] sm:$0xff] }
 0x212   :  { %1117 = vmatprep.subr.bf16.mxu0 %v3839_v59  ;;  %v4850_v57 = vld [vmem:[#allocation23_spill] sm:$0xff]  ;;  %v4851_v59 = vld [vmem:[#allocation24_spill] sm:$0xff] }
 0x214   :  { %1057 = vmatpush1.bf16.msra.mxu1 %v3709_v18  ;;  %v4844_v18 = vld [vmem:[#allocation17_spill] sm:$0xff] }
 0x215   :  { %1058 = vmatprep.subr.bf16.mxu1 %v3714_v20  ;;  %1118 = vmatpush1.bf16.msra.mxu0 %v3846_v61  ;;  %v4845_v20 = vld [vmem:[#allocation18_spill] sm:$0xff]  ;;  %v4852_v61 = vld [vmem:[#allocation25_spill] sm:$0xff] }
 0x216   :  { %1119 = vmatprep.subr.bf16.mxu0 %v3861_v2  ;;  %v4853_v2 = vld [vmem:[#allocation26_spill] sm:$0xff] }
 0x218   :  { %1059 = vmatpush1.bf16.msra.mxu1 %v3722_v22  ;;  %v4848_v22 = vld [vmem:[#allocation21_spill] sm:$0xff] }
 0x219   :  { %1060 = vmatprep.subr.bf16.mxu1 %v3727_v24  ;;  %1120 = vmatpush1.bf16.msra.mxu0 %v3865_v4  ;;  %v4849_v24 = vld [vmem:[#allocation22_spill] sm:$0xff]  ;;  %v4854_v4 = vld [vmem:[#allocation27_spill] sm:$0xff] }
 0x21a   :  { %1121 = vmatprep.subr.bf16.mxu0 %v4840_v48 }
 0x21c   :  { %1061 = vmatpush1.bf16.msra.mxu1 %v4841_v16 }
 0x21d   :  { %1062 = vmatprep.subr.bf16.mxu1 %v4842_v49  ;;  %1122 = vmatpush1.bf16.msra.mxu0 %v4843_v51 }
 0x21e   :  { %2958 = vmatprep.subr.mxu0 %v4762_v11 }
 0x220   :  { %1063 = vmatpush1.bf16.msra.mxu1 %v4844_v18 }
 0x221   :  { %1064 = vmatprep.subr.bf16.mxu1 %v4845_v20 }
 0x224   :  { %1065 = vmatpush1.bf16.msra.mxu1 %v4846_v53 }
 0x225   :  { %1066 = vmatprep.subr.bf16.mxu1 %v4847_v55 }
 0x228   :  { %1067 = vmatpush1.bf16.msra.mxu1 %v4848_v22 }
 0x229   :  { %1068 = vmatprep.subr.bf16.mxu1 %v4849_v24 }
 0x22c   :  { %1069 = vmatpush1.bf16.msra.mxu1 %v4850_v57 }
 0x22d   :  { %1160 = vmatprep.subr.bf16.mxu1 %v4851_v59 }
 0x22f   :  { %1087 = vmatmul.mubr.bf16.vlgmr.msra.gmra.mxu1 %v932_v34 }
 0x230   :  { %1096 = vmatprep.mubr.bf16.mxu1 %v4839_v8  ;;  %1161 = vmatpush1.bf16.msra.mxu1 %v4852_v61 }
 0x231   :  { %1162 = vmatprep.subr.bf16.mxu1 %v4853_v2 }
 0x234   :  { %1163 = vmatpush1.bf16.msra.mxu1 %v4854_v4 }
 0x235   :  { %1164 = vmatprep.subr.bf16.mxu1 %v4855_v63 }
 0x237   :  { %1097 = vmatmul.mubr.bf16.gmra.mxu1 %v933_v45 }
 0x238   :  { %1165 = vmatpush1.bf16.msra.mxu1 %v4856_v1  ;;  %1192 = vmatprep.mubr.bf16.mxu1 %v4839_v8 }
 0x239   :  { %1166 = vmatprep.subr.bf16.mxu1 %v4857_v7 }
 0x23c   :  { %1167 = vmatpush1.bf16.msra.mxu1 %v4858_v25 }
 0x23d   :  { %1168 = vmatprep.subr.bf16.mxu1 %v4859_v27 }
 0x240   :  { %1169 = vmatpush1.bf16.msra.mxu1 %v4860_v0 }
 0x241   :  { %1170 = vmatprep.subr.bf16.mxu1 %v4861_v30 }
 0x244   :  { %1171 = vmatpush1.bf16.msra.mxu1 %v4862_v29 }
 0x245   :  { %1172 = vmatprep.subr.bf16.mxu1 %v4863_v58 }
 0x248   :  { %1173 = vmatpush1.bf16.msra.mxu1 %v4864_v13 }
 0x249   :  { %1174 = vmatprep.subr.bf16.mxu1 %v4865_v50 }
 0x24c   :  { %1175 = vmatpush1.bf16.msra.mxu1 %v4866_v10 }
 0x2bf   :  { %v1035_v54 = vpop.f32.mrf.mxu0 }
 0x2c1   :  { %v1037_v62 = vpop.f32.mrf.mxu0 }
 0x2c3   :  { %v1039_v47 = vpop.f32.mrf.mxu0 }
 0x2c5   :  { %v1041_v26 = vpop.f32.mrf.mxu0 }
 0x2c7   :  { %v1045_v33 = vpop.f32.mrf.mxu0 }
 0x2c9   :  { %v1047_v36 = vpop.f32.mrf.mxu0 }
 0x2cb   :  { %v1049_v45 = vpop.f32.mrf.mxu0 }
 0x2cd   :  { %v1051_v48 = vpop.f32.mrf.mxu0 }
 0x2cf   :  { %v4125_v28 = vpop.f32.mrf.mxu1 }
 0x2d1   :  { %v4127_v15 = vpop.f32.mrf.mxu1 }
 0x2d3   :  { %v4129_v39 = vpop.f32.mrf.mxu1 }
 0x2d4   :  { %v1000_v56 = vpack.c.bf16 %v4129_v39, %v4125_v28 }
 0x2d5   :  { %v4131_v35 = vpop.f32.mrf.mxu1 }
 0x2d6   :  { %v999_v5 = vpack.c.bf16 %v4131_v35, %v4127_v15 }
 0x2d8   :  { %1140 = vmatmul.mubr.bf16.vlgmr.msra.gmra.mxu0 %v999_v5  ;;  %1193 = vmatmul.mubr.bf16.vlgmr.msra.gmra.mxu1 %v999_v5 }
 0x2d9   :  { %1149 = vmatprep.mubr.bf16.mxu0 %v4839_v8  ;;  %1202 = vmatprep.mubr.bf16.mxu1 %v4839_v8 }
 0x2e0   :  { %1150 = vmatmul.mubr.bf16.gmra.mxu0 %v1000_v56  ;;  %1203 = vmatmul.mubr.bf16.gmra.mxu1 %v1000_v56 }
 0x2e1   :  { %2966 = vmatprep.mubr.msk.f32.mxu0 %vm3592_vm6, %v4762_v11  ;;  %2984 = vmatprep.mubr.msk.bf16.mxu1 %vm167_vm0, %v3145_v3 }
 0x2ef   :  { %v1088_v17 = vpop.f32.mrf.mxu1 }
 0x2f1   :  { %v1090_v31 = vpop.f32.mrf.mxu1 }
 0x2f3   :  { %v1092_v34 = vpop.f32.mrf.mxu1 }
 0x2f5   :  { %v1094_v19 = vpop.f32.mrf.mxu1 }
 0x2f7   :  { %v4146_v38 = vpop.f32.mrf.mxu1 }
 0x2f9   :  { %v1100_v60 = vpop.f32.mrf.mxu1 }
 0x2fb   :  { %v4148_v42 = vpop.f32.mrf.mxu1 }
 0x2fd   :  { %v1104_v16 = vpop.f32.mrf.mxu1 }
 0x398   :  { %v1141_v49 = vpop.f32.mrf.mxu0  ;;  %v1194_v51 = vpop.f32.mrf.mxu1 }
 0x399   :  { %v1142_v18 = vadd.f32 %v1141_v49, %v1035_v54 }
 0x39a   :  { %v1143_v20 = vpop.f32.mrf.mxu0  ;;  %v1196_v53 = vpop.f32.mrf.mxu1 }
 0x39b   :  { %v1213_v55 = vadd.f32 %v1142_v18, %v3999_v9  ;;  %v1144_v22 = vadd.f32 %v1143_v20, %v1037_v62  ;;  %v1197_v56 = vadd.f32 %v1196_v53, %v1090_v31 }
 0x39c   :  { %v1145_v24 = vpop.f32.mrf.mxu0  ;;  %v1198_v57 = vpop.f32.mrf.mxu1 }
 0x39d   :  { %v2822_v59 = vmul.f32 -1.442695, %v1213_v55  ;;  %v1214_v61 = vadd.f32 %v1144_v22, %v4001_v52  ;;  %v1146_v2 = vadd.f32 %v1145_v24, %v1039_v47  ;;  %v1216_v24 = vadd.f32 %v1197_v56, %v4008_v40 }
 0x39e   :  { %v1147_v4 = vpop.f32.mrf.mxu0  ;;  %v1200_v63 = vpop.f32.mrf.mxu1 }
 0x39f   :  { %3213 = vpow2.f32 %v2822_v59  ;;  %v2826_v1 = vmul.f32 -1.442695, %v1214_v61  ;;  %v1148_v7 = vadd.f32 %v1147_v4, %v1041_v26  ;;  %v1217_v25 = vadd.f32 %v1146_v2, %v3999_v9 }
 0x3a0   :  { %v1151_v27 = vpop.f32.mrf.mxu0  ;;  %v1204_v0 = vpop.f32.mrf.mxu1  ;;  %v1195_v26 = vadd.f32 %v1194_v51, %v1088_v17  ;;  %v1201_v49 = vadd.f32 %v1200_v63, %v1094_v19  ;;  %v1199_v19 = vadd.f32 %v1198_v57, %v1092_v34  ;;  %v2830_v4 = vmul.f32 -1.442695, %v1216_v24 }
 0x3a1   :  { %3215 = vpow2.f32 %v2826_v1  ;;  %v1218_v30 = vadd.f32 %v1148_v7, %v4001_v52  ;;  %v1152_v29 = vadd.f32 %v1151_v27, %v1045_v33  ;;  %v2823_v58 = vmul.f32 -1.442695, %v1217_v25  ;;  %v4170_v24 = vpop.permute.xlu1 %1348 }
 0x3a2   :  { %v1153_v13 = vpop.f32.mrf.mxu0  ;;  %v1206_v50 = vpop.f32.mrf.mxu1  ;;  %v1215_v53 = vadd.f32 %v1195_v26, %v4010_v6  ;;  %v1205_v25 = vadd.f32 %v1204_v0, %v4146_v38  ;;  %vm1353_vm10 = vcmp.eq.s32.totalorder %v4170_v24, 1  ;;  %v4264_v24 = vld [vmem:[#allocation7 + $0x8c] ss:$16 sps:$4 sm:$0xff]  }
 0x3a3   :  { %v2827_v10 = vmul.f32 -1.442695, %v1218_v30  ;;  %v1221_v5 = vadd.f32 %v1152_v29, %v3999_v9  ;;  %3217 = vpow2.f32 %v2823_v58  ;;  %v1154_v3 = vadd.f32 %v1153_v13, %v1047_v36 }
 0x3a4   :  { %v1155_v54 = vpop.f32.mrf.mxu0  ;;  %v1208_v20 = vpop.f32.mrf.mxu1  ;;  %v1207_v51 = vadd.f32 %v1206_v50, %v1100_v60  ;;  %v1219_v30 = vadd.f32 %v1199_v19, %v4010_v6 }
 0x3a5   :  { %3219 = vpow2.f32 %v2827_v10  ;;  %v2824_v62 = vmul.f32 -1.442695, %v1221_v5  ;;  %v1156_v47 = vadd.f32 %v1155_v54, %v1049_v45  ;;  %v1222_v18 = vadd.f32 %v1154_v3, %v4001_v52 }
 0x3a6   :  { %v1157_v55 = vpop.f32.mrf.mxu0  ;;  %v1220_v45 = vadd.f32 %v1201_v49, %v4008_v40  ;;  %v1210_v17 = vpop.f32.mrf.mxu1  ;;  %v1224_v29 = vadd.f32 %v1207_v51, %v4008_v40  ;;  %v1209_v38 = vadd.f32 %v1208_v20, %v4148_v42 }
 0x3a7   :  { %3221 = vpow2.f32 %v2824_v62  ;;  %v1225_v33 = vadd.f32 %v1156_v47, %v3999_v9  ;;  %v1158_v22 = vadd.f32 %v1157_v55, %v1051_v48  ;;  %v2828_v59 = vmul.f32 -1.442695, %v1222_v18  ;;  %v4168_v18 = vpop.permute.xlu0 %1345 }
 0x3a8   :  { %v1211_v48 = vadd.f32 %v1210_v17, %v1104_v16  ;;  %v2831_v7 = vmul.f32 -1.442695, %v1220_v45  ;;  %v1223_v16 = vadd.f32 %v1205_v25, %v4010_v6  ;;  %v2832_v50 = vmul.f32 -1.442695, %v1224_v29  ;;  %v1343_v25 = vpop.permute.xlu1 %1342 }
 0x3a9   :  { %v2825_v31 = vmul.f32 -1.442695, %v1225_v33  ;;  %v1226_v36 = vadd.f32 %v1158_v22, %v4001_v52  ;;  %3223 = vpow2.f32 %v2828_v59  ;;  %v1227_v3 = vadd.f32 %v1209_v38, %v4010_v6 }
 0x3aa   :  { %v1228_v60 = vadd.f32 %v1211_v48, %v4008_v40  ;;  %vm1351_vm8 = vcmp.eq.s32.totalorder %v1343_v25, 1  ;;  %vm1352_vm9 = vcmp.eq.s32.totalorder %v4168_v18, 1  ;;  %v4257_v18 = vld [vmem:[#allocation7 + $0xc4] ss:$16 sps:$4 sm:$0xff]   ;;  %v4297_v25 = vld [vmem:[#allocation7 + $0x48] ss:$16 sps:$4 sm:$0xff]  }
 0x3ab   :  { %v2829_v61 = vmul.f32 -1.442695, %v1226_v36  ;;  %3225 = vpow2.f32 %v2825_v31  ;;  %v1340_v45 = vpop.permute.xlu0 %1339  ;;  %4871 = vst [vmem:[#allocation17_spill] sm:$0xff] %v4297_v25 }
 0x3ac   :  { %v3214_v2 = vpop.eup %3213  ;;  %v2833_v5 = vmul.f32 -1.442695, %v1228_v60  ;;  %vm1350_vm7 = vcmp.eq.s32.totalorder %v1340_v45, 1  ;;  %v4267_v45 = vld [vmem:[#allocation7 + $0xc0] ss:$16 sps:$4 sm:$0xff]  }
 0x3ad   :  { %v1241_v63 = vadd.f32 1.0, %v3214_v2  ;;  %3227 = vpow2.f32 %v2829_v61 }
 0x3ae   :  { %v3216_v1 = vpop.eup %3215  ;;  %3229 = vtanh.f32 %v1215_v53 }
 0x3af   :  { %3231 = vrcp.f32 %v1241_v63  ;;  %v1265_v27 = vadd.f32 1.0, %v3216_v1 }
 0x3b0   :  { %3233 = vpow2.f32 %v2830_v4  ;;  %v3218_v34 = vpop.eup %3217 }
 0x3b1   :  { %3235 = vrcp.f32 %v1265_v27  ;;  %v1242_v58 = vadd.f32 1.0, %v3218_v34 }
 0x3b2   :  { %v3220_v57 = vpop.eup %3219  ;;  %3237 = vpow2.f32 %v2831_v7 }
 0x3b3   :  { %3239 = vtanh.f32 %v1219_v30  ;;  %v1266_v13 = vadd.f32 1.0, %v3220_v57 }
 0x3b4   :  { %v3222_v0 = vpop.eup %3221  ;;  %3241 = vrcp.f32 %v1242_v58 }
 0x3b5   :  { %3243 = vrcp.f32 %v1266_v13  ;;  %v1243_v10 = vadd.f32 1.0, %v3222_v0 }
 0x3b6   :  { %3245 = vtanh.f32 %v1223_v16  ;;  %v3224_v56 = vpop.eup %3223 }
 0x3b7   :  { %3247 = vpow2.f32 %v2832_v50  ;;  %v1267_v54 = vadd.f32 1.0, %v3224_v56 }
 0x3b8   :  { %3249 = vrcp.f32 %v1243_v10  ;;  %v3226_v62 = vpop.eup %3225 }
 0x3b9   :  { %3251 = vpow2.f32 %v2833_v5  ;;  %v1244_v26 = vadd.f32 1.0, %v3226_v62 }
 0x3ba   :  { %v3228_v47 = vpop.eup %3227  ;;  %3253 = vrcp.f32 %v1267_v54 }
 0x3bb   :  { %v3230_v49 = vpop.eup %3229  ;;  %3255 = vtanh.f32 %v1227_v3  ;;  %v1268_v42 = vadd.f32 1.0, %v3228_v47 }
 0x3bc   :  { %v3232_v20 = vpop.eup %3231  ;;  %3257 = vrcp.f32 %v1244_v26 }
 0x3bd   :  { %v3234_v55 = vpop.eup %3233  ;;  %3259 = vrcp.f32 %v1268_v42  ;;  %v1309_v59 = vmul.f32 %v3232_v20, %v3230_v49 }
 0x3be   :  { %v3236_v33 = vpop.eup %3235  ;;  %v1293_v19 = vadd.f32 1.0, %v3234_v55 }
 0x3bf   :  { %v3238_v22 = vpop.eup %3237  ;;  %v1305_v31 = vmul.f32 %v3236_v33, %v4033_v41 }
 0x3c0   :  { %v3240_v36 = vpop.eup %3239  ;;  %v1294_v61 = vadd.f32 1.0, %v3238_v22 }
 0x3c1   :  { %v3242_v53 = vpop.eup %3241  ;;  %v1313_v17 = vadd.f32 %v1309_v59, %v1305_v31 }
 0x3c2   :  { %v3244_v51 = vpop.eup %3243  ;;  %v1310_v4 = vmul.f32 %v3242_v53, %v3240_v36 }
 0x3c3   :  { %v3246_v2 = vpop.eup %3245  ;;  %v1306_v63 = vmul.f32 %v3244_v51, %v4036_v14  ;;  %3261 = vtanh.f32 %v1313_v17  ;;  %v4176_v48 = vsel %vm1350_vm7, %v1313_v17, %v4033_v41  ;;  %v4270_v17 = vld [vmem:[#allocation7 + $0xa4] ss:$16 sps:$4 sm:$0xff]   ;;  %v4276_v51 = vld [vmem:[#allocation7 + $0x6c] ss:$16 sps:$4 sm:$0xff]  }
 0x3c4   :  { %v3248_v1 = vpop.eup %3247  ;;  %3263 = vrcp.f32 %v1293_v19  ;;  %v4273_v19 = vld [vmem:[#allocation7 + $0x88] ss:$16 sps:$4 sm:$0xff]   ;;  %4868 = vst [vmem:[#allocation15_spill] sm:$0xff] %v4276_v51 }
 0x3c5   :  { %v3250_v7 = vpop.eup %3249  ;;  %v1314_v27 = vadd.f32 %v1310_v4, %v1306_v63  ;;  %3265 = vrcp.f32 %v1294_v61  ;;  %v1295_v16 = vadd.f32 1.0, %v3248_v1  ;;  %4867 = vst [vmem:[#allocation38_spill] sm:$0xff] %v4273_v19  ;;  %v4279_v61 = vld [vmem:[#allocation7 + $0xa0] ss:$16 sps:$4 sm:$0xff]   ;;  %v4285_v4 = vld [vmem:[#allocation7 + $0x68] ss:$16 sps:$4 sm:$0xff]  }
 0x3c6   :  { %v3252_v30 = vpop.eup %3251  ;;  %v1311_v57 = vmul.f32 %v3250_v7, %v3246_v2  ;;  %v4282_v2 = vld [vmem:[#allocation7 + $0x84] ss:$16 sps:$4 sm:$0xff]   ;;  %4869 = vst [vmem:[#allocation16_spill] sm:$0xff] %v4285_v4  ;;  %v4288_v63 = vld [vmem:[#allocation7 + $0x4c] ss:$16 sps:$4 sm:$0xff]  }
 0x3c7   :  { %v3254_v29 = vpop.eup %3253  ;;  %3267 = vtanh.f32 %v1314_v27  ;;  %v4180_v34 = vsel %vm1351_vm8, %v1314_v27, %v4036_v14  ;;  %v1296_v38 = vadd.f32 1.0, %v3252_v30  ;;  %4870 = vst [vmem:[#allocation40_spill] sm:$0xff] %v4288_v63  ;;  %v4291_v1 = vld [vmem:[#allocation7 + $0x80] ss:$16 sps:$4 sm:$0xff]   ;;  %v4294_v7 = vld [vmem:[#allocation7 + $0x64] ss:$16 sps:$4 sm:$0xff]  }
 0x3c8   :  { %v3256_v60 = vpop.eup %3255  ;;  %v1307_v58 = vmul.f32 %v3254_v29, %v4039_v32  ;;  %v4300_v27 = vld [vmem:[#allocation7 + $0x2c] ss:$16 sps:$4 sm:$0xff]   ;;  %v4303_v30 = vld [vmem:[#allocation7 + $0x60] ss:$16 sps:$4 sm:$0xff]   ;;  %v4306_v29 = vld [vmem:[#allocation7 + $0x44] ss:$16 sps:$4 sm:$0xff]  }
 0x3c9   :  { %v3258_v41 = vpop.eup %3257  ;;  %4872 = vst [vmem:[#allocation18_spill] sm:$0xff] %v4300_v27  ;;  %4873 = vst [vmem:[#allocation19_spill] sm:$0xff] %v4303_v30 }
 0x3ca   :  { %v3260_v13 = vpop.eup %3259  ;;  %v1315_v50 = vadd.f32 %v1311_v57, %v1307_v58  ;;  %v1312_v0 = vmul.f32 %v3258_v41, %v3256_v60  ;;  %4874 = vst [vmem:[#allocation20_spill] sm:$0xff] %v4306_v29  ;;  %v4309_v60 = vld [vmem:[#allocation7 + $0x28] ss:$16 sps:$4 sm:$0xff]   ;;  %v4312_v57 = vld [vmem:[#allocation7 + $0xc] ss:$16 sps:$4 sm:$0xff]  }
 0x3cb   :  { %v1308_v10 = vmul.f32 %v3260_v13, %v4042_v23  ;;  %4875 = vst [vmem:[#allocation21_spill] sm:$0xff] %v4309_v60  ;;  %4876 = vst [vmem:[#allocation22_spill] sm:$0xff] %v4312_v57  ;;  %v4315_v58 = vld [vmem:[#allocation7 + $0x40] ss:$16 sps:$4 sm:$0xff]   ;;  %v4318_v41 = vld [vmem:[#allocation7 + $0x24] ss:$16 sps:$4 sm:$0xff]  }
 0x3cc   :  { %3269 = vtanh.f32 %v1315_v50  ;;  %v4188_v14 = vsel %vm1352_vm9, %v1315_v50, %v4039_v32  ;;  %4877 = vst [vmem:[#allocation23_spill] sm:$0xff] %v4315_v58  ;;  %4878 = vst [vmem:[#allocation24_spill] sm:$0xff] %v4318_v41  ;;  %v4324_v13 = vld [vmem:[#allocation5 + $0xec] ss:$16 sps:$4 sm:$0xff]   ;;  %v4327_v50 = vld [vmem:[#allocation7 + $0x20] ss:$16 sps:$4 sm:$0xff]  }
 0x3cd   :  { %3271 = vrcp.f32 %v1295_v16  ;;  %v1316_v5 = vadd.f32 %v1312_v0, %v1308_v10  ;;  %v4321_v16 = vld [vmem:[#allocation7 + $0x8] ss:$16 sps:$4 sm:$0xff]   ;;  %4880 = vst [vmem:[#allocation26_spill] sm:$0xff] %v4324_v13  ;;  %4881 = vst [vmem:[#allocation27_spill] sm:$0xff] %v4327_v50  ;;  %v4338_v10 = vld [vmem:[#allocation5 + $0xcc] ss:$16 sps:$4 sm:$0xff]  }
 0x3ce   :  { %3273 = vrcp.f32 %v1296_v38  ;;  %4879 = vst [vmem:[#allocation25_spill] sm:$0xff] %v4321_v16  ;;  %v4331_v38 = vld [vmem:[#allocation7 + $0x4] ss:$16 sps:$4 sm:$0xff]   ;;  %v4335_v0 = vld [vmem:[#allocation5 + $0xe8] ss:$16 sps:$4 sm:$0xff]   ;;  %4884 = vst [vmem:[#allocation30_spill] sm:$0xff] %v4338_v10 }
 0x3cf   :  { %3275 = vtanh.f32 %v1316_v5  ;;  %v4194_v56 = vsel %vm1353_vm10, %v1316_v5, %v4042_v23  ;;  %4882 = vst [vmem:[#allocation28_spill] sm:$0xff] %v4331_v38  ;;  %4883 = vst [vmem:[#allocation29_spill] sm:$0xff] %v4335_v0  ;;  %v4341_v5 = vld [vmem:[#allocation7] ss:$16 sps:$4 sm:$0xff]  }
 0x3d0   :  { %v3262_v3 = vpop.eup %3261  ;;  %4885 = vst [vmem:[#allocation31_spill] sm:$0xff] %v4341_v5 }
 0x3d1   :  { %v3264_v54 = vpop.eup %3263 }
 0x3d2   :  { %v3266_v62 = vpop.eup %3265  ;;  %v1321_v47 = vmul.f32 %v3264_v54, %v3262_v3  ;;  %v4344_v3 = vld [vmem:[#allocation5 + $0xe4] ss:$16 sps:$4 sm:$0xff]   ;;  %v4347_v54 = vld [vmem:[#allocation5 + $0xc8] ss:$16 sps:$4 sm:$0xff]  }
 0x3d3   :  { %4886 = vst [vmem:[#allocation32_spill] sm:$0xff] %v4344_v3  ;;  %4887 = vst [vmem:[#allocation33_spill] sm:$0xff] %v4347_v54 }
 0x3d4   :  { %v3268_v26 = vpop.eup %3267  ;;  %v1354_v32 = vsel %vm1350_vm7, %v1321_v47, %v4127_v15  ;;  %v4355_v47 = vld [vmem:[#allocation5 + $0xe0] ss:$16 sps:$4 sm:$0xff]  }
 0x3d5   :  { %v1322_v49 = vmul.f32 %v3268_v26, %v3266_v62  ;;  %v4351_v62 = vld [vmem:[#allocation5 + $0xac] ss:$16 sps:$4 sm:$0xff]   ;;  %4889 = vst [vmem:[#allocation35_spill] sm:$0xff] %v4355_v47  ;;  %v4359_v26 = vld [vmem:[#allocation5 + $0xc4] ss:$16 sps:$4 sm:$0xff]  }
 0x3d6   :  { %4888 = vst [vmem:[#allocation34_spill] sm:$0xff] %v4351_v62  ;;  %4890 = vst [vmem:[#allocation36_spill] sm:$0xff] %v4359_v26 }
 0x3d7   :  { %v1355_v42 = vsel %vm1351_vm8, %v1322_v49, %v4131_v35  ;;  %v4234_v35 = vld [vmem:[#allocation7 + $0xcc] ss:$16 sps:$4 sm:$0xff]   ;;  %v4362_v49 = vld [vmem:[#allocation5 + $0xa8] ss:$16 sps:$4 sm:$0xff]  }
 0x3d8   :  { %v4200_v20 = vpack.c.bf16 %v1355_v42, %v1354_v32  ;;  %4891 = vst [vmem:[#allocation37_spill] sm:$0xff] %v4362_v49 }
 0x3d9   :  { %v3270_v55 = vpop.eup %3269 }
 0x3da   :  { %v3272_v33 = vpop.eup %3271 }
 0x3db   :  { %v3274_v22 = vpop.eup %3273  ;;  %v1323_v59 = vmul.f32 %v3272_v33, %v3270_v55  ;;  %v4375_v55 = vld [vmem:[#allocation5 + $0x88] ss:$16 sps:$4 sm:$0xff]   ;;  %v4379_v33 = vld [vmem:[#allocation5 + $0x6c] ss:$16 sps:$4 sm:$0xff]  }
 0x3dc   :  { %v3276_v23 = vpop.eup %3275  ;;  %4895 = vst [vmem:[#allocation43_spill] sm:$0xff] %v4375_v55  ;;  %4896 = vst [vmem:[#allocation44_spill] sm:$0xff] %v4379_v33 }
 0x3dd   :  { %v1324_v31 = vmul.f32 %v3276_v23, %v3274_v22  ;;  %v1356_v53 = vsel %vm1352_vm9, %v1323_v59, %v4125_v28  ;;  %v2838_v28 = vld [vmem:[%s4728_s7 + $0x8] sm:$0x3f]  ;;  %v4382_v22 = vld [vmem:[#allocation5 + $0xa0] ss:$16 sps:$4 sm:$0xff]   ;;  %v4386_v59 = vld [vmem:[#allocation5 + $0x84] ss:$16 sps:$4 sm:$0xff]  }
 0x3de   :  { %4897 = vst [vmem:[#allocation45_spill] sm:$0xff] %v4382_v22  ;;  %4898 = vst [vmem:[#allocation46_spill] sm:$0xff] %v4386_v59  ;;  %v4389_v23 = vld [vmem:[#allocation5 + $0x68] ss:$16 sps:$4 sm:$0xff]  }
 0x3df   :  { %v1357_v36 = vsel %vm1353_vm10, %v1324_v31, %v4129_v39  ;;  %v3146_v39 = vld [vmem:[%s4721_s0 + $0x28] sm:$0xff]   ;;  %4899 = vst [vmem:[#allocation47_spill] sm:$0xff] %v4389_v23 }
 0x3e0   :  { %2959 = vmatpush3.msra.mxu0 %v1357_v36  ;;  %v4208_v15 = vpack.c.bf16 %v1357_v36, %v1356_v53  ;;  %v4392_v31 = vld [vmem:[#allocation5 + $0x4c] ss:$16 sps:$4 sm:$0xff]   ;;  %v4395_v36 = vld [vmem:[#allocation5 + $0x80] ss:$16 sps:$4 sm:$0xff]  }
 0x3e1   :  { %2960 = vmatprep.subr.mxu0 %v4762_v11  ;;  %4900 = vst [vmem:[#allocation48_spill] sm:$0xff] %v4392_v31  ;;  %4901 = vst [vmem:[#allocation49_spill] sm:$0xff] %v4395_v36 }
 0x3e2   :  { %2961 = vmatpush3.msra.mxu0 %v1356_v53  ;;  %2980 = vmatprep.subr.bf16.mxu1 %v4208_v15  ;;  %v4398_v53 = vld [vmem:[#allocation5 + $0x64] ss:$16 sps:$4 sm:$0xff]  }
 0x3e3   :  { %2962 = vmatprep.subr.mxu0 %v4762_v11  ;;  %2981 = vmatpush3.bf16.msra.mxu1 %v4208_v15  ;;  %4902 = vst [vmem:[#allocation50_spill] sm:$0xff] %v4398_v53 }
 0x3e4   :  { %2963 = vmatpush3.msra.mxu0 %v1355_v42  ;;  %2982 = vmatprep.subr.bf16.mxu1 %v4200_v20  ;;  %v4369_v42 = vld [vmem:[#allocation5 + $0xc0] ss:$16 sps:$4 sm:$0xff]  }
 0x3e5   :  { %2964 = vmatprep.subr.mxu0 %v4762_v11  ;;  %4893 = vst [vmem:[#allocation41_spill] sm:$0xff] %v4369_v42 }
 0x3e6   :  { %2965 = vmatpush3.msra.mxu0 %v1354_v32  ;;  %v4366_v32 = vld [vmem:[#allocation5 + $0x8c] ss:$16 sps:$4 sm:$0xff]  }
 0x3e7   :  { %2969 = vmatprep.subr.mxu0 %v4762_v11  ;;  %2983 = vmatpush3.bf16.msra.mxu1 %v4200_v20  ;;  %4892 = vst [vmem:[#allocation39_spill] sm:$0xff] %v4366_v32 }
 0x3e8   :  { %2967 = vmatmul.mubr.msk.f32.vlgmr.msra.gmra.mxu0 %vm167_vm0, %v2838_v28  ;;  %1637 = vmatprep.subr.bf16.mxu1 %v4077_v43  ;;  %v4247_v43 = vld [vmem:[#allocation7 + $0xe4] ss:$16 sps:$4 sm:$0xff]   ;;  %v4404_v28 = vld [vmem:[#allocation5 + $0x2c] ss:$16 sps:$4 sm:$0xff]  }
 0x3e9   :  { %2970 = vmatpush3.msra.mxu0 %v4064_v37  ;;  %2977 = vmatprep.mubr.msk.f32.mxu0 %vm3592_vm6, %v4762_v11  ;;  %v926_v37 = vld [vmem:[%s4728_s7] sm:$0x3f]  ;;  %4904 = vst [vmem:[#allocation52_spill] sm:$0xff] %v4404_v28 }
 0x3ea   :  { %2971 = vmatprep.subr.mxu0 %v4762_v11  ;;  %2985 = vmatmul.mubr.msk.bf16.vlgmr.msra.gmra.mxu1 %vm167_vm0, %v3146_v39  ;;  %v4407_v39 = vld [vmem:[#allocation5 + $0x60] ss:$16 sps:$4 sm:$0xff]  }
 0x3eb   :  { %2972 = vmatpush3.msra.mxu0 %v4060_v12  ;;  %1638 = vmatpush1.bf16.msra.mxu1 %v4082_v46  ;;  %v4244_v12 = vld [vmem:[#allocation7 + $0xc8] ss:$16 sps:$4 sm:$0xff]   ;;  %v4254_v46 = vld [vmem:[#allocation7 + $0xac] ss:$16 sps:$4 sm:$0xff]   ;;  %4905 = vst [vmem:[#allocation53_spill] sm:$0xff] %v4407_v39 }
 0x3ec   :  { %2973 = vmatprep.subr.mxu0 %v4762_v11  ;;  %1639 = vmatprep.subr.bf16.mxu1 %v4234_v35 }
 0x3ed   :  { %2974 = vmatpush3.msra.mxu0 %v4051_v21  ;;  %1669 = vmatprep.mubr.bf16.mxu1 %v4839_v8  ;;  %v4251_v21 = vld [vmem:[#allocation7 + $0xe0] ss:$16 sps:$4 sm:$0xff]  }
 0x3ee   :  { %2975 = vmatprep.subr.mxu0 %v4762_v11  ;;  %v4413_v11 = vld [vmem:[#allocation5 + $0x28] ss:$16 sps:$4 sm:$0xff]  }
 0x3ef   :  { %2976 = vmatpush3.msra.mxu0 %v4047_v44  ;;  %1640 = vmatpush1.bf16.msra.mxu1 %v4244_v12  ;;  %v4261_v44 = vld [vmem:[#allocation7 + $0xa8] ss:$16 sps:$4 sm:$0xff]   ;;  %4907 = vst [vmem:[#allocation55_spill] sm:$0xff] %v4413_v11 }
 0x3f0   :  { %1584 = vmatprep.subr.bf16.mxu0 %v4247_v43  ;;  %2978 = vmatmul.mubr.msk.f32.vlgmr.msra.gmra.mxu0 %vm167_vm0, %v926_v37  ;;  %v4410_v37 = vld [vmem:[#allocation5 + $0x44] ss:$16 sps:$4 sm:$0xff]  }
 0x3f1   :  { %1585 = vmatpush1.bf16.msra.mxu0 %v4251_v21  ;;  %1641 = vmatprep.subr.bf16.mxu1 %v4254_v46  ;;  %4906 = vst [vmem:[#allocation54_spill] sm:$0xff] %v4410_v37 }
 0x3f2   :  { %1586 = vmatprep.subr.bf16.mxu0 %v4257_v18  ;;  %1616 = vmatprep.mubr.bf16.mxu0 %v4839_v8 }
 0x3f3   :  { %1642 = vmatpush1.bf16.msra.mxu1 %v4261_v44 }
 0x3f4   :  { %1643 = vmatprep.subr.bf16.mxu1 %v4264_v24 }
 0x3f5   :  { %1587 = vmatpush1.bf16.msra.mxu0 %v4267_v45 }
 0x3f6   :  { %1588 = vmatprep.subr.bf16.mxu0 %v4270_v17 }
 0x3f7   :  { %1644 = vmatpush1.bf16.msra.mxu1 %v4273_v19 }
 0x3f8   :  { %1645 = vmatprep.subr.bf16.mxu1 %v4276_v51 }
 0x3f9   :  { %1589 = vmatpush1.bf16.msra.mxu0 %v4279_v61 }
 0x3fa   :  { %1590 = vmatprep.subr.bf16.mxu0 %v4282_v2 }
 0x3fb   :  { %1646 = vmatpush1.bf16.msra.mxu1 %v4285_v4 }
 0x3fc   :  { %1647 = vmatprep.subr.bf16.mxu1 %v4288_v63 }
 0x3fd   :  { %1591 = vmatpush1.bf16.msra.mxu0 %v4291_v1 }
 0x3fe   :  { %1592 = vmatprep.subr.bf16.mxu0 %v4294_v7 }
 0x3ff   :  { %1648 = vmatpush1.bf16.msra.mxu1 %v4297_v25 }
 0x400   :  { %1649 = vmatprep.subr.bf16.mxu1 %v4300_v27 }
 0x401   :  { %1593 = vmatpush1.bf16.msra.mxu0 %v4303_v30 }
 0x402   :  { %1594 = vmatprep.subr.bf16.mxu0 %v4306_v29 }
 0x403   :  { %1650 = vmatpush1.bf16.msra.mxu1 %v4309_v60 }
 0x404   :  { %1651 = vmatprep.subr.bf16.mxu1 %v4312_v57 }
 0x405   :  { %1595 = vmatpush1.bf16.msra.mxu0 %v4315_v58 }
 0x406   :  { %1596 = vmatprep.subr.bf16.mxu0 %v4318_v41 }
 0x407   :  { %1652 = vmatpush1.bf16.msra.mxu1 %v4321_v16 }
 0x408   :  { %1743 = vmatprep.subr.bf16.mxu1 %v4324_v13 }
 0x409   :  { %1597 = vmatpush1.bf16.msra.mxu0 %v4327_v50 }
 0x40a   :  { %1670 = vmatmul.mubr.bf16.vlgmr.msra.gmra.mxu1 %v4200_v20  ;;  %1598 = vmatprep.subr.bf16.mxu0 %v4331_v38 }
 0x40b   :  { %1679 = vmatprep.mubr.bf16.mxu1 %v4839_v8  ;;  %1744 = vmatpush1.bf16.msra.mxu1 %v4335_v0 }
 0x40c   :  { %1745 = vmatprep.subr.bf16.mxu1 %v4338_v10 }
 0x40d   :  { %1599 = vmatpush1.bf16.msra.mxu0 %v4341_v5 }
 0x40e   :  { %1690 = vmatprep.subr.bf16.mxu0 %v4344_v3 }
 0x40f   :  { %1746 = vmatpush1.bf16.msra.mxu1 %v4347_v54 }
 0x410   :  { %1617 = vmatmul.mubr.bf16.vlgmr.msra.gmra.mxu0 %v4200_v20  ;;  %1747 = vmatprep.subr.bf16.mxu1 %v4351_v62  ;;  %v4372_v20 = vld [vmem:[#allocation5 + $0xa4] ss:$16 sps:$4 sm:$0xff]  }
 0x411   :  { %1626 = vmatprep.mubr.bf16.mxu0 %v4839_v8  ;;  %1691 = vmatpush1.bf16.msra.mxu0 %v4355_v47  ;;  %4894 = vst [vmem:[#allocation42_spill] sm:$0xff] %v4372_v20 }
 0x412   :  { %1680 = vmatmul.mubr.bf16.gmra.mxu1 %v4208_v15  ;;  %1692 = vmatprep.subr.bf16.mxu0 %v4359_v26 }
 0x413   :  { %1748 = vmatpush1.bf16.msra.mxu1 %v4362_v49  ;;  %1775 = vmatprep.mubr.bf16.mxu1 %v4839_v8 }
 0x414   :  { %1749 = vmatprep.subr.bf16.mxu1 %v4366_v32 }
 0x415   :  { %1693 = vmatpush1.bf16.msra.mxu0 %v4369_v42 }
 0x416   :  { %1694 = vmatprep.subr.bf16.mxu0 %v4372_v20 }
 0x417   :  { %1750 = vmatpush1.bf16.msra.mxu1 %v4375_v55 }
 0x418   :  { %1627 = vmatmul.mubr.bf16.gmra.mxu0 %v4208_v15  ;;  %1751 = vmatprep.subr.bf16.mxu1 %v4379_v33  ;;  %v4401_v15 = vld [vmem:[#allocation5 + $0x48] ss:$16 sps:$4 sm:$0xff]  }
 0x419   :  { %1695 = vmatpush1.bf16.msra.mxu0 %v4382_v22  ;;  %1722 = vmatprep.mubr.bf16.mxu0 %v4839_v8  ;;  %4903 = vst [vmem:[#allocation51_spill] sm:$0xff] %v4401_v15 }
 0x41a   :  { %1696 = vmatprep.subr.bf16.mxu0 %v4386_v59 }
 0x41b   :  { %1752 = vmatpush1.bf16.msra.mxu1 %v4389_v23  ;;  %v4425_v23 = vld [vmem:[#allocation5 + $0x8] ss:$16 sps:$4 sm:$0xff]  }
 0x41c   :  { %1753 = vmatprep.subr.bf16.mxu1 %v4392_v31  ;;  %v4416_v31 = vld [vmem:[#allocation5 + $0xc] ss:$16 sps:$4 sm:$0xff]   ;;  %4911 = vst [vmem:[#allocation59_spill] sm:$0xff] %v4425_v23 }
 0x41d   :  { %1697 = vmatpush1.bf16.msra.mxu0 %v4395_v36  ;;  %4908 = vst [vmem:[#allocation56_spill] sm:$0xff] %v4416_v31 }
 0x41e   :  { %1698 = vmatprep.subr.bf16.mxu0 %v4398_v53 }
 0x41f   :  { %1754 = vmatpush1.bf16.msra.mxu1 %v4401_v15  ;;  %v4419_v15 = vld [vmem:[#allocation5 + $0x40] ss:$16 sps:$4 sm:$0xff]  }
 0x420   :  { %1755 = vmatprep.subr.bf16.mxu1 %v4404_v28  ;;  %4909 = vst [vmem:[#allocation57_spill] sm:$0xff] %v4419_v15  ;;  %v4422_v28 = vld [vmem:[#allocation5 + $0x24] ss:$16 sps:$4 sm:$0xff]  }
 0x421   :  { %1699 = vmatpush1.bf16.msra.mxu0 %v4407_v39  ;;  %4910 = vst [vmem:[#allocation58_spill] sm:$0xff] %v4422_v28 }
 0x422   :  { %1700 = vmatprep.subr.bf16.mxu0 %v4410_v37  ;;  %v4428_v37 = vld [vmem:[#allocation5 + $0x20] ss:$16 sps:$4 sm:$0xff]  }
 0x423   :  { %1756 = vmatpush1.bf16.msra.mxu1 %v4413_v11  ;;  %4912 = vst [vmem:[#allocation60_spill] sm:$0xff] %v4428_v37  ;;  %v4431_v11 = vld [vmem:[#allocation5 + $0x4] ss:$16 sps:$4 sm:$0xff]  }
 0x424   :  { %1757 = vmatprep.subr.bf16.mxu1 %v4416_v31  ;;  %4913 = vst [vmem:[#allocation61_spill] sm:$0xff] %v4431_v11  ;;  %v4434_v31 = vld [vmem:[#allocation5] ss:$16 sps:$4 sm:$0xff]  }
 0x425   :  { %1701 = vmatpush1.bf16.msra.mxu0 %v4419_v15  ;;  %4914 = vst [vmem:[#allocation62_spill] sm:$0xff] %v4434_v31  ;;  %v4915_v15 = vmov 0.0  }
 0x426   :  { %1702 = vmatprep.subr.bf16.mxu0 %v4422_v28 }
 0x427   :  { %1758 = vmatpush1.bf16.msra.mxu1 %v4425_v23 }
 0x429   :  { %1703 = vmatpush1.bf16.msra.mxu0 %v4428_v37 }
 0x42a   :  { %1704 = vmatprep.subr.bf16.mxu0 %v4431_v11 }
 0x42d   :  { %1705 = vmatpush1.bf16.msra.mxu0 %v4434_v31 }
 0x42e   :  { %2988 = vmatprep.subr.mxu0 %v4915_v15 }
 0x4a8   :  { %v1433_v39 = vpop.f32.mrf.mxu0 }
 0x4aa   :  { %v4438_v28 = vpop.f32.mrf.mxu1  ;;  %v2968_v33 = vpop.f32.mrf.mxu0 }
 0x4ac   :  { %v4440_v55 = vpop.f32.mrf.mxu1 }
 0x4ae   :  { %v4442_v23 = vpop.f32.mrf.mxu1 }
 0x4af   :  { %v1583_v33 = vpack.c.bf16 %v4442_v23, %v4438_v28 }
 0x4b0   :  { %v4444_v53 = vpop.f32.mrf.mxu1  ;;  %v1506_v37 = vpop.f32.mrf.mxu0 }
 0x4b1   :  { %v1582_v11 = vpack.c.bf16 %v4444_v53, %v4440_v55  ;;  %v4448_v36 = vadd.f32 %v1506_v37, %v1433_v39  ;;  %v3147_v39 = vld [vmem:[%s4721_s0 + $0x30] sm:$0xff]  }
 0x4b2   :  { %v2979_v32 = vpop.f32.mrf.mxu0 }
 0x4b3   :  { %4916 = vst [vmem:[#allocation63_spill] sm:$0xff] %v4448_v36  ;;  %1723 = vmatmul.mubr.bf16.vlgmr.msra.gmra.mxu0 %v1582_v11  ;;  %1776 = vmatmul.mubr.bf16.vlgmr.msra.gmra.mxu1 %v1582_v11 }
 0x4b4   :  { %1732 = vmatprep.mubr.bf16.mxu0 %v4839_v8  ;;  %1785 = vmatprep.mubr.bf16.mxu1 %v4839_v8 }
 0x4bb   :  { %1733 = vmatmul.mubr.bf16.gmra.mxu0 %v1583_v33  ;;  %1786 = vmatmul.mubr.bf16.gmra.mxu1 %v1583_v33 }
 0x4bc   :  { %2996 = vmatprep.mubr.msk.f32.mxu0 %vm3592_vm6, %v4915_v15  ;;  %3003 = vmatprep.mubr.msk.bf16.mxu1 %vm167_vm0, %v3147_v39 }
 0x4ca   :  { %v1671_v32 = vpop.f32.mrf.mxu1 }
 0x4cc   :  { %v1673_v37 = vpop.f32.mrf.mxu1 }
 0x4ce   :  { %v4460_v31 = vpop.f32.mrf.mxu1 }
 0x4d0   :  { %v1618_v11 = vpop.f32.mrf.mxu0  ;;  %v1677_v59 = vpop.f32.mrf.mxu1 }
 0x4d2   :  { %v1620_v36 = vpop.f32.mrf.mxu0  ;;  %v4462_v62 = vpop.f32.mrf.mxu1 }
 0x4d4   :  { %v1622_v49 = vpop.f32.mrf.mxu0  ;;  %v1683_v54 = vpop.f32.mrf.mxu1 }
 0x4d6   :  { %v1624_v22 = vpop.f32.mrf.mxu0  ;;  %v4464_v42 = vpop.f32.mrf.mxu1 }
 0x4d8   :  { %v1628_v33 = vpop.f32.mrf.mxu0  ;;  %v1687_v0 = vpop.f32.mrf.mxu1 }
 0x4da   :  { %v1630_v20 = vpop.f32.mrf.mxu0 }
 0x4dc   :  { %v1632_v10 = vpop.f32.mrf.mxu0 }
 0x4de   :  { %v1634_v26 = vpop.f32.mrf.mxu0 }
 0x573   :  { %v1724_v39 = vpop.f32.mrf.mxu0  ;;  %v1777_v47 = vpop.f32.mrf.mxu1 }
 0x574   :  { %v1725_v13 = vadd.f32 %v1724_v39, %v1618_v11 }
 0x575   :  { %v1726_v16 = vpop.f32.mrf.mxu0  ;;  %v1779_v3 = vpop.f32.mrf.mxu1 }
 0x576   :  { %v1796_v5 = vadd.f32 %v1725_v13, %v3999_v9  ;;  %v1727_v57 = vadd.f32 %v1726_v16, %v1620_v36 }
 0x577   :  { %v1728_v60 = vpop.f32.mrf.mxu0  ;;  %v1781_v38 = vpop.f32.mrf.mxu1 }
 0x578   :  { %v2849_v50 = vmul.f32 -1.442695, %v1796_v5  ;;  %v1797_v27 = vadd.f32 %v1727_v57, %v4001_v52  ;;  %v1729_v25 = vadd.f32 %v1728_v60, %v1622_v49  ;;  %v1780_v60 = vadd.f32 %v1779_v3, %v1673_v37 }
 0x579   :  { %v1730_v41 = vpop.f32.mrf.mxu0  ;;  %v1783_v58 = vpop.f32.mrf.mxu1 }
 0x57a   :  { %3277 = vpow2.f32 %v2849_v50  ;;  %v2853_v63 = vmul.f32 -1.442695, %v1797_v27  ;;  %v1731_v4 = vadd.f32 %v1730_v41, %v1624_v22  ;;  %v1800_v29 = vadd.f32 %v1729_v25, %v3999_v9 }
 0x57b   :  { %v1734_v30 = vpop.f32.mrf.mxu0  ;;  %v1787_v11 = vpop.f32.mrf.mxu1  ;;  %v1778_v25 = vadd.f32 %v1777_v47, %v1671_v32  ;;  %v1784_v22 = vadd.f32 %v1783_v58, %v1677_v59  ;;  %v1782_v47 = vadd.f32 %v1781_v38, %v4460_v31 }
 0x57c   :  { %3279 = vpow2.f32 %v2853_v63  ;;  %v1801_v39 = vadd.f32 %v1731_v4, %v4001_v52  ;;  %v1735_v13 = vadd.f32 %v1734_v30, %v1628_v33  ;;  %v2850_v16 = vmul.f32 -1.442695, %v1800_v29 }
 0x57d   :  { %v1736_v36 = vpop.f32.mrf.mxu0  ;;  %v1789_v51 = vpop.f32.mrf.mxu1  ;;  %v1799_v33 = vadd.f32 %v1780_v60, %v4008_v40  ;;  %v1798_v37 = vadd.f32 %v1778_v25, %v4010_v6  ;;  %v1788_v60 = vadd.f32 %v1787_v11, %v4462_v62 }
 0x57e   :  { %v2854_v5 = vmul.f32 -1.442695, %v1801_v39  ;;  %v1804_v57 = vadd.f32 %v1735_v13, %v3999_v9  ;;  %3281 = vpow2.f32 %v2850_v16  ;;  %v1737_v49 = vadd.f32 %v1736_v36, %v1630_v20 }
 0x57f   :  { %v1738_v50 = vpop.f32.mrf.mxu0  ;;  %v1791_v19 = vpop.f32.mrf.mxu1  ;;  %v1790_v59 = vadd.f32 %v1789_v51, %v1683_v54  ;;  %v2857_v16 = vmul.f32 -1.442695, %v1799_v33 }
 0x580   :  { %3283 = vpow2.f32 %v2854_v5  ;;  %v2851_v27 = vmul.f32 -1.442695, %v1804_v57  ;;  %v1739_v41 = vadd.f32 %v1738_v50, %v1632_v10  ;;  %v1805_v63 = vadd.f32 %v1737_v49, %v4001_v52 }
 0x581   :  { %v1740_v4 = vpop.f32.mrf.mxu0  ;;  %v1803_v10 = vadd.f32 %v1784_v22, %v4008_v40  ;;  %v1793_v58 = vpop.f32.mrf.mxu1  ;;  %v1802_v50 = vadd.f32 %v1782_v47, %v4010_v6  ;;  %v1792_v62 = vadd.f32 %v1791_v19, %v4464_v42 }
 0x582   :  { %3285 = vpow2.f32 %v2851_v27  ;;  %v1808_v30 = vadd.f32 %v1739_v41, %v3999_v9  ;;  %v1741_v29 = vadd.f32 %v1740_v4, %v1634_v26  ;;  %v2855_v39 = vmul.f32 -1.442695, %v1805_v63 }
 0x583   :  { %v1794_v36 = vadd.f32 %v1793_v58, %v1687_v0  ;;  %v2858_v57 = vmul.f32 -1.442695, %v1803_v10  ;;  %v1807_v27 = vadd.f32 %v1790_v59, %v4008_v40  ;;  %v1806_v0 = vadd.f32 %v1788_v60, %v4010_v6  ;;  %v4487_v59 = vpop.permute.xlu1 %1931 }
 0x584   :  { %v2852_v3 = vmul.f32 -1.442695, %v1808_v30  ;;  %v1809_v20 = vadd.f32 %v1741_v29, %v4001_v52  ;;  %3287 = vpow2.f32 %v2855_v39  ;;  %v1810_v30 = vadd.f32 %v1792_v62, %v4010_v6 }
 0x585   :  { %v1811_v38 = vadd.f32 %v1794_v36, %v4008_v40  ;;  %v2859_v25 = vmul.f32 -1.442695, %v1807_v27  ;;  %vm1936_vm14 = vcmp.eq.s32.totalorder %v4487_v59, 1  ;;  %v4931_v59 = vld [vmem:[#allocation31_spill] sm:$0xff] }
 0x586   :  { %v2856_v32 = vmul.f32 -1.442695, %v1809_v20  ;;  %3289 = vpow2.f32 %v2852_v3 }
 0x587   :  { %v3278_v13 = vpop.eup %3277  ;;  %v2860_v63 = vmul.f32 -1.442695, %v1811_v38 }
 0x588   :  { %v1824_v26 = vadd.f32 1.0, %v3278_v13  ;;  %3291 = vpow2.f32 %v2856_v32 }
 0x589   :  { %v3280_v5 = vpop.eup %3279  ;;  %3293 = vtanh.f32 %v1798_v37  ;;  %v4485_v37 = vpop.permute.xlu0 %1928 }
 0x58a   :  { %3295 = vrcp.f32 %v1824_v26  ;;  %v1848_v49 = vadd.f32 1.0, %v3280_v5  ;;  %vm1935_vm13 = vcmp.eq.s32.totalorder %v4485_v37, 1  ;;  %v3474_v37 = vld [vmem:[#allocation7 + $0xe8] ss:$16 sps:$4 sm:$0xff]  }
 0x58b   :  { %3297 = vpow2.f32 %v2857_v16  ;;  %v3282_v51 = vpop.eup %3281 }
 0x58c   :  { %3299 = vrcp.f32 %v1848_v49  ;;  %v1825_v31 = vadd.f32 1.0, %v3282_v51 }
 0x58d   :  { %v3284_v54 = vpop.eup %3283  ;;  %3301 = vpow2.f32 %v2858_v57  ;;  %v1923_v36 = vpop.permute.xlu0 %1922 }
 0x58e   :  { %3303 = vtanh.f32 %v1802_v50  ;;  %v1849_v41 = vadd.f32 1.0, %v3284_v54  ;;  %vm1933_vm11 = vcmp.eq.s32.totalorder %v1923_v36, 1 }
 0x58f   :  { %v3286_v11 = vpop.eup %3285  ;;  %3305 = vrcp.f32 %v1825_v31 }
 0x590   :  { %3307 = vrcp.f32 %v1849_v41  ;;  %v1826_v22 = vadd.f32 1.0, %v3286_v11 }
 0x591   :  { %3309 = vtanh.f32 %v1806_v0  ;;  %v3288_v4 = vpop.eup %3287  ;;  %v1926_v0 = vpop.permute.xlu1 %1925 }
 0x592   :  { %3311 = vpow2.f32 %v2859_v25  ;;  %v1850_v29 = vadd.f32 1.0, %v3288_v4  ;;  %vm1934_vm12 = vcmp.eq.s32.totalorder %v1926_v0, 1  ;;  %v4934_v0 = vld [vmem:[#allocation26_spill] sm:$0xff] }
 0x593   :  { %3313 = vrcp.f32 %v1826_v22  ;;  %v3290_v33 = vpop.eup %3289 }
 0x594   :  { %3315 = vpow2.f32 %v2860_v63  ;;  %v1827_v3 = vadd.f32 1.0, %v3290_v33 }
 0x595   :  { %v3292_v39 = vpop.eup %3291  ;;  %3317 = vrcp.f32 %v1850_v29 }
 0x596   :  { %v3294_v20 = vpop.eup %3293  ;;  %3319 = vtanh.f32 %v1810_v30  ;;  %v1851_v19 = vadd.f32 1.0, %v3292_v39 }
 0x597   :  { %v3296_v42 = vpop.eup %3295  ;;  %3321 = vrcp.f32 %v1827_v3 }
 0x598   :  { %v3298_v10 = vpop.eup %3297  ;;  %3323 = vrcp.f32 %v1851_v19  ;;  %v1892_v32 = vmul.f32 %v3296_v42, %v3294_v20 }
 0x599   :  { %v3300_v58 = vpop.eup %3299  ;;  %v1876_v57 = vadd.f32 1.0, %v3298_v10 }
 0x59a   :  { %v3302_v47 = vpop.eup %3301  ;;  %v1888_v13 = vmul.f32 %v3300_v58, %v4176_v48 }
 0x59b   :  { %v3304_v16 = vpop.eup %3303  ;;  %v1877_v49 = vadd.f32 1.0, %v3302_v47 }
 0x59c   :  { %v3306_v26 = vpop.eup %3305  ;;  %v1896_v5 = vadd.f32 %v1892_v32, %v1888_v13 }
 0x59d   :  { %v3308_v60 = vpop.eup %3307  ;;  %v1893_v27 = vmul.f32 %v3306_v26, %v3304_v16 }
 0x59e   :  { %v3310_v50 = vpop.eup %3309  ;;  %v1889_v51 = vmul.f32 %v3308_v60, %v4180_v34  ;;  %3325 = vtanh.f32 %v1896_v5  ;;  %v4493_v38 = vsel %vm1933_vm11, %v1896_v5, %v4176_v48 }
 0x59f   :  { %v3312_v54 = vpop.eup %3311  ;;  %3327 = vrcp.f32 %v1876_v57 }
 0x5a0   :  { %v3314_v31 = vpop.eup %3313  ;;  %v1897_v41 = vadd.f32 %v1893_v27, %v1889_v51  ;;  %3329 = vrcp.f32 %v1877_v49  ;;  %v1878_v30 = vadd.f32 1.0, %v3312_v54  ;;  %v4932_v54 = vld [vmem:[#allocation32_spill] sm:$0xff] }
 0x5a1   :  { %v3316_v25 = vpop.eup %3315  ;;  %v1894_v63 = vmul.f32 %v3314_v31, %v3310_v50  ;;  %v4933_v31 = vld [vmem:[#allocation25_spill] sm:$0xff] }
 0x5a2   :  { %v3318_v62 = vpop.eup %3317  ;;  %3331 = vtanh.f32 %v1897_v41  ;;  %v4497_v11 = vsel %vm1934_vm12, %v1897_v41, %v4180_v34  ;;  %v1879_v39 = vadd.f32 1.0, %v3316_v25  ;;  %v4935_v41 = vld [vmem:[#allocation35_spill] sm:$0xff]  ;;  %v4936_v25 = vld [vmem:[#allocation36_spill] sm:$0xff] }
 0x5a3   :  { %v3320_v22 = vpop.eup %3319  ;;  %v1890_v4 = vmul.f32 %v3318_v62, %v4188_v14  ;;  %v4937_v62 = vld [vmem:[#allocation29_spill] sm:$0xff] }
 0x5a4   :  { %v3322_v48 = vpop.eup %3321 }
 0x5a5   :  { %v3324_v29 = vpop.eup %3323  ;;  %v1898_v33 = vadd.f32 %v1894_v63, %v1890_v4  ;;  %v1895_v3 = vmul.f32 %v3322_v48, %v3320_v22  ;;  %v4938_v22 = vld [vmem:[#allocation30_spill] sm:$0xff]  ;;  %v4939_v63 = vld [vmem:[#allocation41_spill] sm:$0xff] }
 0x5a6   :  { %v1891_v20 = vmul.f32 %v3324_v29, %v4194_v56  ;;  %v4940_v4 = vld [vmem:[#allocation42_spill] sm:$0xff]  ;;  %v4941_v48 = vld [vmem:[#allocation33_spill] sm:$0xff] }
 0x5a7   :  { %3333 = vtanh.f32 %v1898_v33  ;;  %v4505_v34 = vsel %vm1935_vm13, %v1898_v33, %v4188_v14  ;;  %v4943_v29 = vld [vmem:[#allocation45_spill] sm:$0xff]  ;;  %v4944_v33 = vld [vmem:[#allocation46_spill] sm:$0xff] }
 0x5a8   :  { %3335 = vrcp.f32 %v1878_v30  ;;  %v1899_v19 = vadd.f32 %v1895_v3, %v1891_v20  ;;  %v4942_v30 = vld [vmem:[#allocation34_spill] sm:$0xff]  ;;  %v4946_v3 = vld [vmem:[#allocation39_spill] sm:$0xff]  ;;  %v4947_v20 = vld [vmem:[#allocation49_spill] sm:$0xff] }
 0x5a9   :  { %3337 = vrcp.f32 %v1879_v39  ;;  %v4945_v39 = vld [vmem:[#allocation37_spill] sm:$0xff] }
 0x5aa   :  { %3339 = vtanh.f32 %v1899_v19  ;;  %v4511_v42 = vsel %vm1936_vm14, %v1899_v19, %v4194_v56  ;;  %v4948_v19 = vld [vmem:[#allocation50_spill] sm:$0xff] }
 0x5ab   :  { %v3326_v10 = vpop.eup %3325 }
 0x5ac   :  { %v3328_v58 = vpop.eup %3327 }
 0x5ad   :  { %v3330_v47 = vpop.eup %3329  ;;  %v1904_v32 = vmul.f32 %v3328_v58, %v3326_v10  ;;  %v4949_v10 = vld [vmem:[#allocation43_spill] sm:$0xff]  ;;  %v4950_v58 = vld [vmem:[#allocation44_spill] sm:$0xff] }
 0x5af   :  { %v3332_v13 = vpop.eup %3331  ;;  %v1937_v14 = vsel %vm1933_vm11, %v1904_v32, %v4440_v55  ;;  %v4952_v32 = vld [vmem:[#allocation54_spill] sm:$0xff] }
 0x5b0   :  { %v1905_v16 = vmul.f32 %v3332_v13, %v3330_v47  ;;  %v4951_v47 = vld [vmem:[#allocation53_spill] sm:$0xff]  ;;  %v4953_v13 = vld [vmem:[#allocation47_spill] sm:$0xff] }
 0x5b2   :  { %v1938_v26 = vsel %vm1934_vm12, %v1905_v16, %v4444_v53  ;;  %v3148_v53 = vld [vmem:[%s4721_s0 + $0x38] sm:$0xff]  }
 0x5b3   :  { %v4517_v5 = vpack.c.bf16 %v1938_v26, %v1937_v14  ;;  %v4954_v16 = vld [vmem:[#allocation48_spill] sm:$0xff] }
 0x5b4   :  { %v3334_v57 = vpop.eup %3333 }
 0x5b5   :  { %v3336_v60 = vpop.eup %3335 }
 0x5b6   :  { %v3338_v49 = vpop.eup %3337  ;;  %v1906_v50 = vmul.f32 %v3336_v60, %v3334_v57  ;;  %v4958_v57 = vld [vmem:[#allocation52_spill] sm:$0xff] }
 0x5b7   :  { %v3340_v56 = vpop.eup %3339  ;;  %v4959_v60 = vld [vmem:[#allocation60_spill] sm:$0xff] }
 0x5b8   :  { %v1907_v27 = vmul.f32 %v3340_v56, %v3338_v49  ;;  %v1939_v36 = vsel %vm1935_vm13, %v1906_v50, %v4438_v28  ;;  %v3473_v28 = vld [vmem:[#allocation7 + $0xec] ss:$16 sps:$4 sm:$0xff]   ;;  %v4962_v56 = vld [vmem:[#allocation56_spill] sm:$0xff]  ;;  %vm2672_vm13 = vcmask 70656  }
 0x5b9   :  { %v4960_v49 = vld [vmem:[#allocation61_spill] sm:$0xff]  ;;  %v4961_v50 = vld [vmem:[#allocation55_spill] sm:$0xff] }
 0x5ba   :  { %v1940_v51 = vsel %vm1936_vm14, %v1907_v27, %v4442_v23  ;;  %v2865_v23 = vld [vmem:[%s4728_s7 + $0x10] sm:$0x3f]  ;;  %v4963_v27 = vld [vmem:[#allocation62_spill] sm:$0xff]  ;;  %vm2687_vm14 = vcmask 5120  }
 0x5bb   :  { %2989 = vmatpush3.msra.mxu0 %v1940_v51  ;;  %v4525_v55 = vpack.c.bf16 %v1940_v51, %v1939_v36  ;;  %v4964_v51 = vld [vmem:[#allocation59_spill] sm:$0xff] }
 0x5bc   :  { %2990 = vmatprep.subr.mxu0 %v4915_v15 }
 0x5bd   :  { %2991 = vmatpush3.msra.mxu0 %v1939_v36  ;;  %2999 = vmatprep.subr.bf16.mxu1 %v4525_v55 }
 0x5be   :  { %2992 = vmatprep.subr.mxu0 %v4915_v15  ;;  %3000 = vmatpush3.bf16.msra.mxu1 %v4525_v55 }
 0x5bf   :  { %2993 = vmatpush3.msra.mxu0 %v1938_v26  ;;  %3001 = vmatprep.subr.bf16.mxu1 %v4517_v5  ;;  %v4956_v26 = vld [vmem:[#allocation58_spill] sm:$0xff] }
 0x5c0   :  { %2994 = vmatprep.subr.mxu0 %v4915_v15 }
 0x5c1   :  { %2995 = vmatpush3.msra.mxu0 %v1937_v14  ;;  %v4955_v14 = vld [vmem:[#allocation57_spill] sm:$0xff] }
 0x5c2   :  { %2997 = vmatmul.mubr.msk.f32.vlgmr.msra.gmra.mxu0 %vm167_vm0, %v2865_v23  ;;  %3002 = vmatpush3.bf16.msra.mxu1 %v4517_v5 }
 0x5c3   :  { %2095 = vmatprep.subr.bf16.mxu0 %v4247_v43  ;;  %2148 = vmatprep.subr.bf16.mxu1 %v3473_v28  ;;  %v4918_v43 = vld [vmem:[#allocation15_spill] sm:$0xff] }
 0x5c4   :  { %2096 = vmatpush1.bf16.msra.mxu0 %v4251_v21  ;;  %2127 = vmatprep.mubr.bf16.mxu0 %v4839_v8  ;;  %v4919_v21 = vld [vmem:[#allocation19_spill] sm:$0xff] }
 0x5c5   :  { %3004 = vmatmul.mubr.msk.bf16.vlgmr.msra.gmra.mxu1 %vm167_vm0, %v3148_v53  ;;  %2097 = vmatprep.subr.bf16.mxu0 %v4257_v18  ;;  %v4922_v18 = vld [vmem:[#allocation40_spill] sm:$0xff] }
 0x5c6   :  { %2149 = vmatpush1.bf16.msra.mxu1 %v3474_v37  ;;  %2180 = vmatprep.mubr.bf16.mxu1 %v4839_v8 }
 0x5c7   :  { %2150 = vmatprep.subr.bf16.mxu1 %v4234_v35  ;;  %v4917_v35 = vld [vmem:[#allocation38_spill] sm:$0xff] }
 0x5c8   :  { %2098 = vmatpush1.bf16.msra.mxu0 %v4267_v45  ;;  %v4923_v45 = vld [vmem:[#allocation23_spill] sm:$0xff] }
 0x5c9   :  { %2099 = vmatprep.subr.bf16.mxu0 %v4270_v17  ;;  %v4926_v17 = vld [vmem:[#allocation18_spill] sm:$0xff] }
 0x5ca   :  { %2151 = vmatpush1.bf16.msra.mxu1 %v4244_v12  ;;  %v4920_v12 = vld [vmem:[#allocation20_spill] sm:$0xff] }
 0x5cb   :  { %2152 = vmatprep.subr.bf16.mxu1 %v4254_v46  ;;  %v4921_v46 = vld [vmem:[#allocation16_spill] sm:$0xff] }
 0x5cc   :  { %2100 = vmatpush1.bf16.msra.mxu0 %v4279_v61  ;;  %v4927_v61 = vld [vmem:[#allocation27_spill] sm:$0xff] }
 0x5cd   :  { %2101 = vmatprep.subr.bf16.mxu0 %v4282_v2  ;;  %v4928_v2 = vld [vmem:[#allocation28_spill] sm:$0xff] }
 0x5ce   :  { %2153 = vmatpush1.bf16.msra.mxu1 %v4261_v44  ;;  %v4924_v44 = vld [vmem:[#allocation24_spill] sm:$0xff] }
 0x5cf   :  { %2154 = vmatprep.subr.bf16.mxu1 %v4264_v24  ;;  %v4925_v24 = vld [vmem:[#allocation17_spill] sm:$0xff] }
 0x5d0   :  { %2102 = vmatpush1.bf16.msra.mxu0 %v4291_v1  ;;  %v4929_v1 = vld [vmem:[#allocation21_spill] sm:$0xff] }
 0x5d1   :  { %2103 = vmatprep.subr.bf16.mxu0 %v4294_v7  ;;  %v4930_v7 = vld [vmem:[#allocation22_spill] sm:$0xff] }
 0x5d2   :  { %2155 = vmatpush1.bf16.msra.mxu1 %v4917_v35 }
 0x5d3   :  { %2156 = vmatprep.subr.bf16.mxu1 %v4918_v43 }
 0x5d4   :  { %2104 = vmatpush1.bf16.msra.mxu0 %v4919_v21 }
 0x5d5   :  { %2105 = vmatprep.subr.bf16.mxu0 %v4920_v12 }
 0x5d6   :  { %2157 = vmatpush1.bf16.msra.mxu1 %v4921_v46 }
 0x5d7   :  { %2158 = vmatprep.subr.bf16.mxu1 %v4922_v18 }
 0x5d8   :  { %2106 = vmatpush1.bf16.msra.mxu0 %v4923_v45 }
 0x5d9   :  { %2107 = vmatprep.subr.bf16.mxu0 %v4924_v44 }
 0x5da   :  { %2159 = vmatpush1.bf16.msra.mxu1 %v4925_v24 }
 0x5db   :  { %2160 = vmatprep.subr.bf16.mxu1 %v4926_v17 }
 0x5dc   :  { %2108 = vmatpush1.bf16.msra.mxu0 %v4927_v61 }
 0x5dd   :  { %2109 = vmatprep.subr.bf16.mxu0 %v4928_v2 }
 0x5de   :  { %2161 = vmatpush1.bf16.msra.mxu1 %v4929_v1 }
 0x5df   :  { %2162 = vmatprep.subr.bf16.mxu1 %v4930_v7 }
 0x5e0   :  { %2110 = vmatpush1.bf16.msra.mxu0 %v4931_v59 }
 0x5e1   :  { %2201 = vmatprep.subr.bf16.mxu0 %v4932_v54 }
 0x5e2   :  { %2163 = vmatpush1.bf16.msra.mxu1 %v4933_v31 }
 0x5e3   :  { %2128 = vmatmul.mubr.bf16.vlgmr.msra.gmra.mxu0 %v4517_v5  ;;  %2254 = vmatprep.subr.bf16.mxu1 %v4934_v0 }
 0x5e4   :  { %2137 = vmatprep.mubr.bf16.mxu0 %v4839_v8  ;;  %2202 = vmatpush1.bf16.msra.mxu0 %v4935_v41 }
 0x5e5   :  { %2181 = vmatmul.mubr.bf16.vlgmr.msra.gmra.mxu1 %v4517_v5  ;;  %2203 = vmatprep.subr.bf16.mxu0 %v4936_v25  ;;  %v4957_v5 = vld [vmem:[#allocation51_spill] sm:$0xff] }
 0x5e6   :  { %2190 = vmatprep.mubr.bf16.mxu1 %v4839_v8  ;;  %2255 = vmatpush1.bf16.msra.mxu1 %v4937_v62 }
 0x5e7   :  { %2256 = vmatprep.subr.bf16.mxu1 %v4938_v22 }
 0x5e8   :  { %2204 = vmatpush1.bf16.msra.mxu0 %v4939_v63 }
 0x5e9   :  { %2205 = vmatprep.subr.bf16.mxu0 %v4940_v4 }
 0x5ea   :  { %2257 = vmatpush1.bf16.msra.mxu1 %v4941_v48 }
 0x5eb   :  { %2138 = vmatmul.mubr.bf16.gmra.mxu0 %v4525_v55  ;;  %2258 = vmatprep.subr.bf16.mxu1 %v4942_v30 }
 0x5ec   :  { %2206 = vmatpush1.bf16.msra.mxu0 %v4943_v29  ;;  %2233 = vmatprep.mubr.bf16.mxu0 %v4839_v8 }
 0x5ed   :  { %2191 = vmatmul.mubr.bf16.gmra.mxu1 %v4525_v55  ;;  %2207 = vmatprep.subr.bf16.mxu0 %v4944_v33  ;;  %v4965_v55 = vld [vmem:[#allocation63_spill] sm:$0xff] }
 0x5ee   :  { %2259 = vmatpush1.bf16.msra.mxu1 %v4945_v39  ;;  %2286 = vmatprep.mubr.bf16.mxu1 %v4839_v8 }
 0x5ef   :  { %2260 = vmatprep.subr.bf16.mxu1 %v4946_v3 }
 0x5f0   :  { %2208 = vmatpush1.bf16.msra.mxu0 %v4947_v20 }
 0x5f1   :  { %2209 = vmatprep.subr.bf16.mxu0 %v4948_v19 }
 0x5f2   :  { %2261 = vmatpush1.bf16.msra.mxu1 %v4949_v10 }
 0x5f3   :  { %2262 = vmatprep.subr.bf16.mxu1 %v4950_v58 }
 0x5f4   :  { %2210 = vmatpush1.bf16.msra.mxu0 %v4951_v47 }
 0x5f5   :  { %2211 = vmatprep.subr.bf16.mxu0 %v4952_v32 }
 0x5f6   :  { %2263 = vmatpush1.bf16.msra.mxu1 %v4953_v13 }
 0x5f7   :  { %2264 = vmatprep.subr.bf16.mxu1 %v4954_v16 }
 0x5f8   :  { %2212 = vmatpush1.bf16.msra.mxu0 %v4955_v14 }
 0x5f9   :  { %2213 = vmatprep.subr.bf16.mxu0 %v4956_v26 }
 0x5fa   :  { %2265 = vmatpush1.bf16.msra.mxu1 %v4957_v5 }
 0x5fb   :  { %2266 = vmatprep.subr.bf16.mxu1 %v4958_v57 }
 0x5fc   :  { %2214 = vmatpush1.bf16.msra.mxu0 %v4959_v60 }
 0x5fd   :  { %2215 = vmatprep.subr.bf16.mxu0 %v4960_v49 }
 0x5fe   :  { %2267 = vmatpush1.bf16.msra.mxu1 %v4961_v50 }
 0x5ff   :  { %2268 = vmatprep.subr.bf16.mxu1 %v4962_v56 }
 0x600   :  { %2216 = vmatpush1.bf16.msra.mxu0 %v4963_v27 }
 0x601   :  { %3007 = vmatprep.subr.mxu0 %v4915_v15 }
 0x602   :  { %2269 = vmatpush1.bf16.msra.mxu1 %v4964_v51 }
 0x603   :  { %3018 = vmatprep.subr.mxu1 %v4915_v15 }
 0x682   :  { %v2016_v36 = vpop.f32.mrf.mxu0 }
 0x683   :  { %v4617_v23 = vadd.f32 %v2016_v36, %v4965_v55 }
 0x684   :  { %v2998_v53 = vpop.f32.mrf.mxu0 }
 0x685   :  { %v4619_v28 = vpop.f32.mrf.mxu1 }
 0x687   :  { %v4621_v37 = vpop.f32.mrf.mxu1 }
 0x689   :  { %v4623_v35 = vpop.f32.mrf.mxu1 }
 0x68a   :  { %v2094_v12 = vpack.c.bf16 %v4623_v35, %v4619_v28 }
 0x68b   :  { %v4625_v43 = vpop.f32.mrf.mxu1 }
 0x68c   :  { %v2093_v21 = vpack.c.bf16 %v4625_v43, %v4621_v37 }
 0x68e   :  { %2234 = vmatmul.mubr.bf16.vlgmr.msra.gmra.mxu0 %v2093_v21  ;;  %2287 = vmatmul.mubr.bf16.vlgmr.msra.gmra.mxu1 %v2093_v21 }
 0x68f   :  { %2243 = vmatprep.mubr.bf16.mxu0 %v4839_v8  ;;  %2296 = vmatprep.mubr.bf16.mxu1 %v4839_v8 }
 0x696   :  { %2244 = vmatmul.mubr.bf16.gmra.mxu0 %v2094_v12  ;;  %2297 = vmatmul.mubr.bf16.gmra.mxu1 %v2094_v12 }
 0x697   :  { %3015 = vmatprep.mubr.msk.f32.mxu0 %vm3592_vm6, %v4915_v15  ;;  %3026 = vmatprep.mubr.msk.f32.mxu1 %vm3592_vm6, %v4915_v15 }
 0x6a3   :  { %v2129_v46 = vpop.f32.mrf.mxu0 }
 0x6a5   :  { %v2182_v18 = vpop.f32.mrf.mxu1  ;;  %v2131_v45 = vpop.f32.mrf.mxu0 }
 0x6a7   :  { %v4637_v44 = vpop.f32.mrf.mxu1  ;;  %v2133_v24 = vpop.f32.mrf.mxu0 }
 0x6a9   :  { %v2186_v17 = vpop.f32.mrf.mxu1  ;;  %v2135_v61 = vpop.f32.mrf.mxu0 }
 0x6ab   :  { %v2188_v8 = vpop.f32.mrf.mxu1  ;;  %v2139_v2 = vpop.f32.mrf.mxu0 }
 0x6ad   :  { %v2192_v1 = vpop.f32.mrf.mxu1  ;;  %v2141_v7 = vpop.f32.mrf.mxu0 }
 0x6af   :  { %v2194_v59 = vpop.f32.mrf.mxu1  ;;  %v2143_v54 = vpop.f32.mrf.mxu0 }
 0x6b1   :  { %v2196_v31 = vpop.f32.mrf.mxu1  ;;  %v2145_v0 = vpop.f32.mrf.mxu0 }
 0x6b3   :  { %v2198_v41 = vpop.f32.mrf.mxu1 }
 0x74e   :  { %v2235_v25 = vpop.f32.mrf.mxu0  ;;  %v2288_v62 = vpop.f32.mrf.mxu1 }
 0x74f   :  { %v2236_v22 = vadd.f32 %v2235_v25, %v2129_v46 }
 0x750   :  { %v2237_v63 = vpop.f32.mrf.mxu0  ;;  %v4639_v4 = vpop.f32.mrf.mxu1 }
 0x751   :  { %v2238_v48 = vadd.f32 %v2237_v63, %v2131_v45  ;;  %v2307_v39 = vadd.f32 %v2236_v22, %v3999_v9  ;;  %v2289_v45 = vadd.f32 %v2288_v62, %v2182_v18 }
 0x752   :  { %v2239_v30 = vpop.f32.mrf.mxu0  ;;  %v2292_v29 = vpop.f32.mrf.mxu1 }
 0x753   :  { %v2308_v33 = vadd.f32 %v2238_v48, %v4001_v52  ;;  %v2240_v3 = vadd.f32 %v2239_v30, %v2133_v24  ;;  %v2875_v26 = vmul.f32 -1.442695, %v2307_v39  ;;  %v2309_v30 = vadd.f32 %v2289_v45, %v4010_v6 }
 0x754   :  { %v2241_v20 = vpop.f32.mrf.mxu0  ;;  %v2294_v19 = vpop.f32.mrf.mxu1 }
 0x755   :  { %v2879_v10 = vmul.f32 -1.442695, %v2308_v33  ;;  %v2242_v58 = vadd.f32 %v2241_v20, %v2135_v61  ;;  %v2311_v47 = vadd.f32 %v2240_v3, %v3999_v9  ;;  %v2295_v36 = vadd.f32 %v2294_v19, %v2188_v8 }
 0x756   :  { %v2245_v32 = vpop.f32.mrf.mxu0  ;;  %v2298_v13 = vpop.f32.mrf.mxu1  ;;  %v2291_v20 = vadd.f32 %v4639_v4, %v4637_v44 }
 0x757   :  { %v2312_v16 = vadd.f32 %v2242_v58, %v4001_v52  ;;  %v2246_v14 = vadd.f32 %v2245_v32, %v2139_v2  ;;  %v2876_v5 = vmul.f32 -1.442695, %v2311_v47  ;;  %3341 = vpow2.f32 %v2879_v10 }
 0x758   :  { %v2247_v57 = vpop.f32.mrf.mxu0  ;;  %v2300_v60 = vpop.f32.mrf.mxu1  ;;  %v2293_v2 = vadd.f32 %v2292_v29, %v2186_v17 }
 0x759   :  { %v2880_v49 = vmul.f32 -1.442695, %v2312_v16  ;;  %v2315_v50 = vadd.f32 %v2246_v14, %v3999_v9  ;;  %3343 = vpow2.f32 %v2876_v5  ;;  %v2248_v56 = vadd.f32 %v2247_v57, %v2141_v7 }
 0x75a   :  { %v2249_v27 = vpop.f32.mrf.mxu0  ;;  %v2302_v51 = vpop.f32.mrf.mxu1  ;;  %v2301_v22 = vadd.f32 %v2300_v60, %v2194_v59  ;;  %v2314_v7 = vadd.f32 %v2295_v36, %v4008_v40  ;;  %v2313_v18 = vadd.f32 %v2293_v2, %v4010_v6  ;;  %v2310_v16 = vadd.f32 %v2291_v20, %v4008_v40 }
 0x75b   :  { %3345 = vpow2.f32 %v2880_v49  ;;  %v2877_v55 = vmul.f32 -1.442695, %v2315_v50  ;;  %v2250_v53 = vadd.f32 %v2249_v27, %v2143_v54  ;;  %v2316_v21 = vadd.f32 %v2248_v56, %v4001_v52 }
 0x75c   :  { %3347 = vpow2.f32 %v2875_v26  ;;  %v2251_v12 = vpop.f32.mrf.mxu0  ;;  %v2304_v46 = vpop.f32.mrf.mxu1  ;;  %v2299_v54 = vadd.f32 %v2298_v13, %v2192_v1  ;;  %v2303_v33 = vadd.f32 %v2302_v51, %v2196_v31  ;;  %v2884_v17 = vmul.f32 -1.442695, %v2314_v7 }
 0x75d   :  { %3349 = vpow2.f32 %v2877_v55  ;;  %v2319_v24 = vadd.f32 %v2250_v53, %v3999_v9  ;;  %v2252_v61 = vadd.f32 %v2251_v12, %v2145_v0  ;;  %v2881_v25 = vmul.f32 -1.442695, %v2316_v21 }
 0x75e   :  { %v2305_v48 = vadd.f32 %v2304_v46, %v2198_v41  ;;  %v2318_v9 = vadd.f32 %v2301_v22, %v4008_v40  ;;  %v2317_v0 = vadd.f32 %v2299_v54, %v4010_v6  ;;  %v2883_v4 = vmul.f32 -1.442695, %v2310_v16 }
 0x75f   :  { %v2878_v63 = vmul.f32 -1.442695, %v2319_v24  ;;  %v2320_v8 = vadd.f32 %v2252_v61, %v4001_v52  ;;  %3351 = vpow2.f32 %v2881_v25  ;;  %v2321_v52 = vadd.f32 %v2303_v33, %v4010_v6 }
 0x760   :  { %v2322_v59 = vadd.f32 %v2305_v48, %v4008_v40  ;;  %v2885_v41 = vmul.f32 -1.442695, %v2318_v9 }
 0x761   :  { %v2882_v39 = vmul.f32 -1.442695, %v2320_v8  ;;  %3353 = vpow2.f32 %v2878_v63 }
 0x762   :  { %v2886_v31 = vmul.f32 -1.442695, %v2322_v59 }
 0x763   :  { %3355 = vpow2.f32 %v2882_v39 }
 0x764   :  { %3357 = vtanh.f32 %v2309_v30  ;;  %v3342_v1 = vpop.eup %3341 }
 0x765   :  { %3359 = vtanh.f32 %v2313_v18  ;;  %v2359_v47 = vadd.f32 1.0, %v3342_v1 }
 0x766   :  { %v3344_v62 = vpop.eup %3343  ;;  %3361 = vpow2.f32 %v2884_v17 }
 0x767   :  { %3363 = vtanh.f32 %v2317_v0  ;;  %v2336_v19 = vadd.f32 1.0, %v3344_v62  ;;  %v2443_v0 = vpop.permute.xlu0 %2442 }
 0x768   :  { %v3346_v29 = vpop.eup %3345  ;;  %3365 = vtanh.f32 %v2321_v52  ;;  %vm2447_vm15 = vcmp.eq.s32.totalorder %v2443_v0, 1 }
 0x769   :  { %v3348_v3 = vpop.eup %3347  ;;  %v2360_v10 = vadd.f32 1.0, %v3346_v29  ;;  %3367 = vpow2.f32 %v2885_v41  ;;  %v2440_v41 = vpop.permute.xlu1 %2439 }
 0x76a   :  { %v3350_v58 = vpop.eup %3349  ;;  %3369 = vpow2.f32 %v2886_v31  ;;  %v2335_v13 = vadd.f32 1.0, %v3348_v3  ;;  %vm2446_vm1 = vcmp.eq.s32.totalorder %v2440_v41, 1 }
 0x76b   :  { %v2337_v32 = vadd.f32 1.0, %v3350_v58  ;;  %3371 = vrcp.f32 %v2360_v10  ;;  %v2437_v20 = vpop.permute.xlu0 %2436 }
 0x76c   :  { %v3352_v6 = vpop.eup %3351  ;;  %3373 = vrcp.f32 %v2336_v19  ;;  %vm2445_vm2 = vcmp.eq.s32.totalorder %v2437_v20, 1 }
 0x76d   :  { %3375 = vrcp.f32 %v2337_v32  ;;  %v2361_v14 = vadd.f32 1.0, %v3352_v6 }
 0x76e   :  { %v3354_v26 = vpop.eup %3353  ;;  %3377 = vrcp.f32 %v2359_v47  ;;  %v2434_v47 = vpop.permute.xlu1 %2433 }
 0x76f   :  { %3379 = vrcp.f32 %v2361_v14  ;;  %v2338_v44 = vadd.f32 1.0, %v3354_v26  ;;  %vm2444_vm3 = vcmp.eq.s32.totalorder %v2434_v47, 1  ;;  %v2893_v26 = vld [vmem:[%s4729_s8 + $0x8] sm:$0x3f] }
 0x770   :  { %v3356_v5 = vpop.eup %3355  ;;  %3381 = vrcp.f32 %v2335_v13 }
 0x771   :  { %v2362_v57 = vadd.f32 1.0, %v3356_v5  ;;  %v3358_v60 = vpop.eup %3357  ;;  %3383 = vrcp.f32 %v2338_v44 }
 0x772   :  { %v3360_v49 = vpop.eup %3359 }
 0x773   :  { %3385 = vrcp.f32 %v2362_v57  ;;  %v3362_v50 = vpop.eup %3361 }
 0x774   :  { %v3364_v56 = vpop.eup %3363  ;;  %3387 = vpow2.f32 %v2883_v4  ;;  %v2388_v18 = vadd.f32 1.0, %v3362_v50 }
 0x775   :  { %v3366_v27 = vpop.eup %3365 }
 0x776   :  { %v3368_v40 = vpop.eup %3367 }
 0x777   :  { %v3370_v51 = vpop.eup %3369  ;;  %v2389_v45 = vadd.f32 1.0, %v3368_v40  ;;  %v2895_v40 = vld [vmem:[%s4729_s8 + $0x18] sm:$0x3f] }
 0x778   :  { %v3372_v36 = vpop.eup %3371  ;;  %v2390_v22 = vadd.f32 1.0, %v3370_v51 }
 0x779   :  { %v3374_v55 = vpop.eup %3373  ;;  %v2400_v12 = vmul.f32 %v3372_v36, %v4497_v11  ;;  %3389 = vrcp.f32 %v2389_v45 }
 0x77a   :  { %v3376_v53 = vpop.eup %3375  ;;  %v2404_v61 = vmul.f32 %v3374_v55, %v3360_v49  ;;  %3391 = vrcp.f32 %v2390_v22 }
 0x77b   :  { %v3378_v21 = vpop.eup %3377  ;;  %v2405_v2 = vmul.f32 %v3376_v53, %v3364_v56 }
 0x77c   :  { %v3380_v46 = vpop.eup %3379  ;;  %v2399_v63 = vmul.f32 %v3378_v21, %v4493_v38  ;;  %v2408_v54 = vadd.f32 %v2404_v61, %v2400_v12  ;;  %v2900_v21 = vld [vmem:[%s4729_s8 + $0x40] sm:$0x3f]  ;;  %v2897_v12 = vld [vmem:[%s4729_s8 + $0x28] sm:$0x3f] }
 0x77d   :  { %v3382_v24 = vpop.eup %3381  ;;  %v2401_v25 = vmul.f32 %v3380_v46, %v4505_v34 }
 0x77e   :  { %v3384_v7 = vpop.eup %3383  ;;  %v2403_v30 = vmul.f32 %v3382_v24, %v3358_v60 }
 0x77f   :  { %v2409_v48 = vadd.f32 %v2405_v2, %v2401_v25  ;;  %v2406_v33 = vmul.f32 %v3384_v7, %v3366_v27  ;;  %v2898_v27 = vld [vmem:[%s4729_s8 + $0x30] sm:$0x3f]  ;;  %v2899_v2 = vld [vmem:[%s4729_s8 + $0x38] sm:$0x3f] }
 0x780   :  { %v3386_v8 = vpop.eup %3385  ;;  %v2407_v17 = vadd.f32 %v2403_v30, %v2399_v63 }
 0x781   :  { %v2402_v39 = vmul.f32 %v3386_v8, %v4511_v42  ;;  %v3388_v11 = vpop.eup %3387  ;;  %3393 = vtanh.f32 %v2409_v48  ;;  %v4966_v8 = vlaneseq }
 0x782   :  { %3395 = vtanh.f32 %v2408_v54  ;;  %v2387_v34 = vadd.f32 1.0, %v3388_v11 }
 0x783   :  { %v2410_v9 = vadd.f32 %v2406_v33, %v2402_v39  ;;  %v2599_v48 = vand.u32 127, %v4966_v8 }
 0x785   :  { %3397 = vtanh.f32 %v2410_v9  ;;  %vm2614_vm5 = vcmp.eq.s32.totalorder %v2599_v48, 1  ;;  %vm2622_vm6 = vcmp.eq.s32.totalorder %v2599_v48, 2  ;;  %vm2630_vm7 = vcmp.eq.s32.totalorder %v2599_v48, 3 }
 0x786   :  { %3399 = vrcp.f32 %v2388_v18  ;;  %v3390_v38 = vpop.eup %3389  ;;  %vm2638_vm8 = vcmp.eq.s32.totalorder %v2599_v48, 4  ;;  %vm2646_vm9 = vcmp.eq.s32.totalorder %v2599_v48, 5  ;;  %vm2654_vm10 = vcmp.eq.s32.totalorder %v2599_v48, 6 }
 0x787   :  { %3401 = vtanh.f32 %v2407_v17  ;;  %v3392_v59 = vpop.eup %3391  ;;  %vm2662_vm11 = vcmp.eq.s32.totalorder %v2599_v48, 7  ;;  %vm2670_vm12 = vcmp.eq.s32.totalorder %v2599_v48, 8 }
 0x788   :  { %3403 = vrcp.f32 %v2387_v34 }
 0x78e   :  { %v3394_v52 = vpop.eup %3393 }
 0x78f   :  { %v3396_v1 = vpop.eup %3395  ;;  %v2417_v29 = vmul.f32 %v3394_v52, %v3390_v38 }
 0x791   :  { %v2450_v32 = vsel %vm2446_vm1, %v2417_v29, %v4619_v28 }
 0x792   :  { %v3398_v62 = vpop.eup %3397 }
 0x793   :  { %v3400_v42 = vpop.eup %3399  ;;  %v2418_v31 = vmul.f32 %v3398_v62, %v3392_v59 }
 0x794   :  { %v3402_v3 = vpop.eup %3401  ;;  %v2416_v10 = vmul.f32 %v3400_v42, %v3396_v1 }
 0x795   :  { %v2451_v19 = vsel %vm2447_vm15, %v2418_v31, %v4623_v35  ;;  %v3404_v58 = vpop.eup %3403  ;;  %v2891_v35 = vld [vmem:[%s4728_s7 + $0x18] sm:$0x3f] }
 0x796   :  { %3008 = vmatpush3.msra.mxu0 %v2451_v19  ;;  %3019 = vmatpush3.xpose.msra.mxu1 %v2451_v19  ;;  %v2415_v6 = vmul.f32 %v3404_v58, %v3402_v3  ;;  %v2449_v13 = vsel %vm2445_vm2, %v2416_v10, %v4625_v43 }
 0x797   :  { %3009 = vmatprep.subr.mxu0 %v4915_v15  ;;  %3020 = vmatprep.subr.mxu1 %v4915_v15 }
 0x798   :  { %3010 = vmatpush3.msra.mxu0 %v2450_v32  ;;  %v2448_v28 = vsel %vm2444_vm3, %v2415_v6, %v4621_v37  ;;  %v2600_v37 = vld [vmem:[%s4729_s8] sm:$0x3f] }
 0x799   :  { %3011 = vmatprep.subr.mxu0 %v4915_v15 }
 0x79a   :  { %3012 = vmatpush3.msra.mxu0 %v2449_v13  ;;  %3021 = vmatpush3.xpose.msra.mxu1 %v2450_v32 }
 0x79b   :  { %3013 = vmatprep.subr.mxu0 %v4915_v15  ;;  %3022 = vmatprep.subr.mxu1 %v4915_v15 }
 0x79c   :  { %3014 = vmatpush3.msra.mxu0 %v2448_v28 }
 0x79d   :  { %3016 = vmatmul.mubr.msk.f32.vlgmr.msra.gmra.mxu0 %vm167_vm0, %v2891_v35  ;;  %vm2606_vm0 = vcmp.eq.s32.totalorder %v2599_v48, 0 }
 0x79e   :  { %3023 = vmatpush3.xpose.msra.mxu1 %v2449_v13 }
 0x79f   :  { %3024 = vmatprep.subr.mxu1 %v4915_v15  ;;  %v2896_v15 = vld [vmem:[%s4729_s8 + $0x20] sm:$0x3f] }
 0x7a2   :  { %3025 = vmatpush3.xpose.msra.mxu1 %v2448_v28 }
 0x85d   :  { %v2523_v43 = vpop.f32.mrf.mxu0 }
 0x85e   :  { %v2527_v16 = vadd.f32 %v2523_v43, %v4617_v23  ;;  %v2894_v23 = vld [vmem:[%s4729_s8 + $0x10] sm:$0x3f]  ;;  %s3593_s8 = smov [#allocation8]  }
 0x85f   :  { %v3017_v14 = vpop.f32.mrf.mxu0  ;;  %s2710_s15 = sshll.u32 %s3593_s8, 4  ;;  %s2711_s15 = int_to_ptr.vmem [resolvable:$true] %s2710_s15 }
 0x860   :  { %3027 = vmatmul.mubr.f32.vlgmr.msra.gmra.mxu1 %v2527_v16  ;;  %s3535_s16 = scalar_lea.vmem %s2711_s15, 128  ;;  %p3540_p2 = scmp.lt.s32.totalorder %s2711_s15, %s2711_s15 }
 0x861   :  { %p3536_p1 = scmp.ne.s32.totalorder %s2711_s15, %s3535_s16  ;;  %p3541_p3 = scmp.lt.s32.totalorder %s3535_s16, %s3535_s16 }
 0x863   :  { %p3542_p4 = por %p3541_p3, %p3540_p2 }
 0x865   :  { %p3543_p5 = pnand %p3542_p4, %p3536_p1 }
 0x920   :  { %v2594_v5 = vpop.f32.mrf.mxu1 }
 0x921   :  { %v2610_v44 = vmul.f32 %v2893_v26, %v2594_v5  ;;  %v2601_v4 = vmul.f32 %v2600_v37, %v2594_v5  ;;  %v2634_v50 = vmul.f32 %v2896_v15, %v2594_v5  ;;  %v2618_v56 = vmul.f32 %v2894_v23, %v2594_v5 }
 0x922   :  { %v3028_v57 = vpop.f32.mrf.mxu1  ;;  %v2650_v55 = vmul.f32 %v2898_v27, %v2594_v5  ;;  %v2626_v53 = vmul.f32 %v2895_v40, %v2594_v5  ;;  %v2666_v24 = vmul.f32 %v2900_v21, %v2594_v5  ;;  %v2642_v61 = vmul.f32 %v2897_v12, %v2594_v5 }
 0x923   :  { %v2611_v60 = vsel %vm2602_vm4, %v2610_v44, 0.0  ;;  %v2603_v49 = vsel %vm2602_vm4, %v2601_v4, 0.0  ;;  %v2635_v51 = vsel %vm2602_vm4, %v2634_v50, 0.0  ;;  %v2619_v36 = vsel %vm2602_vm4, %v2618_v56, 0.0 }
 0x924   :  { %2612 = vadd.xlane.f32.xlu1 %v2611_v60  ;;  %2604 = vadd.xlane.f32.xlu0 %v2603_v49  ;;  %v2651_v46 = vsel %vm2602_vm4, %v2650_v55, 0.0  ;;  %v2627_v45 = vsel %vm2602_vm4, %v2626_v53, 0.0  ;;  %v2667_v25 = vsel %vm2602_vm4, %v2666_v24, 0.0  ;;  %v2643_v22 = vsel %vm2602_vm4, %v2642_v61, 0.0 }
 0x925   :  { %v2658_v7 = vmul.f32 %v2899_v2, %v2594_v5 }
 0x927   :  { %v2659_v63 = vsel %vm2602_vm4, %v2658_v7, 0.0 }
 0x928   :  { %2636 = vadd.xlane.f32.xlu1 %v2635_v51  ;;  %2620 = vadd.xlane.f32.xlu0 %v2619_v36 }
 0x92c   :  { %2652 = vadd.xlane.f32.xlu1 %v2651_v46  ;;  %2628 = vadd.xlane.f32.xlu0 %v2627_v45 }
 0x930   :  { %2668 = vadd.xlane.f32.xlu1 %v2667_v25  ;;  %2644 = vadd.xlane.f32.xlu0 %v2643_v22 }
 0x934   :  { %2660 = vadd.xlane.f32.xlu0 %v2659_v63 }
 0x9ad   :  { %v2613_v54 = vpop.xlane.xlu1 %2612  ;;  %v2605_v30 = vpop.xlane.xlu0 %2604 }
 0x9ae   :  { %v2607_v33 = vsel %vm2606_vm0, %v2605_v30, 0.0 }
 0x9af   :  { %v2615_v18 = vsel %vm2614_vm5, %v2613_v54, %v2607_v33 }
 0x9b1   :  { %v2621_v39 = vpop.xlane.xlu0 %2620  ;;  %v2637_v11 = vpop.xlane.xlu1 %2636 }
 0x9b2   :  { %v2623_v9 = vsel %vm2622_vm6, %v2621_v39, %v2615_v18 }
 0x9b5   :  { %v2629_v17 = vpop.xlane.xlu0 %2628  ;;  %v2653_v38 = vpop.xlane.xlu1 %2652 }
 0x9b6   :  { %v2631_v34 = vsel %vm2630_vm7, %v2629_v17, %v2623_v9 }
 0x9b7   :  { %v2639_v59 = vsel %vm2638_vm8, %v2637_v11, %v2631_v34 }
 0x9b9   :  { %v2645_v0 = vpop.xlane.xlu0 %2644  ;;  %v2669_v62 = vpop.xlane.xlu1 %2668 }
 0x9ba   :  { %v2647_v52 = vsel %vm2646_vm9, %v2645_v0, %v2639_v59 }
 0x9bb   :  { %v2655_v1 = vsel %vm2654_vm10, %v2653_v38, %v2647_v52 }
 0x9bd   :  { %v2661_v41 = vpop.xlane.xlu0 %2660 }
 0x9be   :  { %v2663_v42 = vsel %vm2662_vm11, %v2661_v41, %v2655_v1 }
 0x9bf   :  { %v2671_v31 = vsel %vm2670_vm12, %v2669_v62, %v2663_v42 }
 0x9c0   :  { %v2674_v29 = vsel %vm2672_vm13, %v2671_v31, -inf  ;;  %2673 = vst.msk [vmem:[#allocation8] sm:$0x3f] %vm2672_vm13, %v2671_v31 }
 0x9c1   :  { %2675 = vmax.xlane.f32.xlu0 %v2674_v29 }
 0xa4a   :  { %v2676_v3 = vpop.xlane.xlu0 %2675 }
 0xa4b   :  { %v2677_v20 = vsub.f32 %v2671_v31, %v2676_v3 }
 0xa4d   :  { %v2678_v19 = vmul.f32 1.442695, %v2677_v20 }
 0xa4f   :  { %3405 = vpow2.f32 %v2678_v19 }
 0xa5c   :  { %v3406_v10 = vpop.eup %3405 }
 0xa5d   :  { %v2680_v58 = vsel %vm2672_vm13, %v3406_v10, 0.0 }
 0xa5e   :  { %2681 = vadd.xlane.f32.xlu1 %v2680_v58 }
 0xae7   :  { %v2682_v47 = vpop.xlane.xlu1 %2681 }
 0xae8   :  { %3407 = vlog2.f32 %v2682_v47 }
 0xaf5   :  { %v3408_v32 = vpop.eup %3407 }
 0xaf6   :  { %v2684_v6 = vmul.f32 0.6931472, %v3408_v32 }
 0xaf8   :  { %v2685_v13 = vadd.f32 %v2684_v6, %v2676_v3 }
 0xafa   :  { %v2686_v35 = vsub.f32 %v2685_v13, %v2671_v31 }
 0xafc   :  { %v2688_v28 = vsel %vm2687_vm14, %v2686_v35, 0.0 }
 0xafd   :  { %2689 = vadd.xlane.f32.xlu0 %v2688_v28 }
 0xafe   :  { %3546 = shalt.err (!%p3543_p5)
}
 0xaff   :  { %2713 = dma.vmem_to_hbm [thread:$0]  %s2711_s15, 128, %s4730_s9, [#allocation4]   ;;  %vm2702_vm15 = vcmask 0  }
 0xb00   :  { %s3594_s2 = smov [#allocation9]  }
 0xb01   :  { %s2720_s19 = sshll.u32 %s3594_s2, 4  ;;  %s2721_s19 = int_to_ptr.vmem [resolvable:$true] %s2720_s19 }
 0xb02   :  { %s3555_s0 = scalar_lea.vmem %s2721_s19, 16  ;;  %s3559_s22 = scalar_lea.vmem %s2721_s19, 32 }
 0xb03   :  { %p3556_p6 = scmp.ne.s32.totalorder %s2721_s19, %s3555_s0  ;;  %p3560_p7 = scmp.lt.s32.totalorder %s2721_s19, %s2721_s19 }
 0xb04   :  { %p3561_p8 = scmp.lt.s32.totalorder %s3559_s22, %s3555_s0 }
 0xb06   :  { %p3562_p9 = por %p3561_p8, %p3560_p7 }
 0xb08   :  { %p3563_p10 = pnand %p3562_p9, %p3556_p6 }
 0xb86   :  { %v2690_v43 = vpop.xlane.xlu0 %2689 }
 0xb87   :  { %v2691_v16 = vrot.slane %v2690_v43, 4 }
 0xb89   :  { %v2692_v14 = vadd.f32 %v2691_v16, %v2690_v43 }
 0xb8b   :  { %v2693_v26 = vrot.slane %v2692_v14, 2 }
 0xb8d   :  { %v2694_v37 = vadd.f32 %v2693_v26, %v2692_v14 }
 0xb8f   :  { %v2695_v5 = vrot.slane %v2694_v37, 1 }
 0xb91   :  { %v2696_v15 = vadd.f32 %v2695_v5, %v2694_v37 }
 0xb93   :  { %3029 = vpush %v2696_v15 }
 0xbc4   :  { %s3030_s20 = spop %3029 }
 0xbc5   :  { %s2700_s21 = smul.f32 0.16666667, %s3030_s20 }
 0xbc7   :  { %v2701_v23 = vstv %s2700_s21 }
 0xbc8   :  { %2703 = vst.msk [vmem:[#allocation9] sm:$0x1] %vm2702_vm15, %v2701_v23 }
 0xbc9   :  { %3566 = shalt.err (!%p3563_p10)
}
 0xbca   :  { %2723 = dma.vmem_to_hbm [thread:$0]  %s2721_s19, 16, %s4731_s10, [#allocation10]  }
 0xbcb   :  { %3579 = dma.done.wait [#allocation4], 128  }
 0xbcc   :  { %3580 = vsyncadd [#allocation4], 4294967168 }
 0xbcd   :  { %3581 = dma.done.wait [#allocation10], 16  }
 0xbce   :  { %3582 = vsyncadd [#allocation10], 4294967280 }
 0xbcf   :  { %2730 = vsyncpa [#allocation3], 1 }
 0xbd0   :  { %2731 = vsyncpa [#allocation6], 1 }
 0xbd1   :  { %2732 = vsyncpa [#allocation4], 1 }
 0xbd2   :  { %2733 = vsyncpa [#allocation10], 1 }

</bundles_post_ra>
